<compile_context>
chip_gen: v7x
topology: tpu7x:2x2x1
jax: 0.10.0
libtpu: 0.0.40
codegen_flags: <defaults>
</compile_context>

<pallas_src>
import numpy as np
import jax
import jax.numpy as jnp
from jax.experimental import pallas as pl
from jax.experimental.pallas import tpu as pltpu

HIDDEN = 32          # hidden_layer_size
BATCH = 2

# logical sizes
N_FC = 30 * 7 * 7        # 1470
N_MID = 10 * 14 * 14     # 1960
N_OUT = 28 * 28          # 784  (single output channel)

# padded, lane-aligned sizes used inside the kernel
D0 = 32                  # fc1 contraction dim (== HIDDEN, full-dim block)
D1 = 1536                # 1470 -> 12*128
D2 = 2048                # 1960 -> 16*128
D3 = 896                 # 784  ->  7*128
TK = 512                 # tile of D2 -> the single grid axis
KT = D2 // TK            # 4 grid steps


# -----------------------------------------------------------------------------
# Pallas kernel: whole decoder fused, D2 tiled, y accumulated in VMEM scratch.
# -----------------------------------------------------------------------------
def _decoder_kernel(x_ref, wa_ref, ba_ref,
                    wb_ref, sb_ref, bb_ref,
                    wc_ref, sc_ref, bc_ref,
                    o_ref, h1_ref, acc_ref):
    k = pl.program_id(0)

    @pl.when(k == 0)
    def _():
        # fc1 + relu, computed once; h1 stays resident in VMEM scratch (f32).
        h1 = jnp.dot(x_ref[...], wa_ref[...],
                     preferred_element_type=jnp.float32)
        h1_ref[...] = jnp.maximum(h1 + ba_ref[...], 0.0)
        acc_ref[...] = jnp.zeros_like(acc_ref)

    # (bilinear x2 ∘ conv1) column tile: dequant int8 -> f32, matmul,
    # per-column scale + bias + relu epilogue (all f32).
    wb = wb_ref[...].astype(jnp.float32)
    h2 = jnp.dot(h1_ref[...], wb, preferred_element_type=jnp.float32)
    h2 = jnp.maximum(h2 * sb_ref[...] + bb_ref[...], 0.0)

    # (bilinear x2 ∘ conv2) row tile: accumulate partial y (in Wc-int units;
    # the per-output-column scale is applied once at finalize).
    wc = wc_ref[...].astype(jnp.float32)
    acc_ref[...] += jnp.dot(h2, wc, preferred_element_type=jnp.float32)

    @pl.when(k == pl.num_programs(0) - 1)
    def _():
        y = acc_ref[...] * sc_ref[...] + bc_ref[...]
        # numerically-stable sigmoid via tanh (EUP slot), f32 epilogue
        o_ref[...] = 0.5 * (jnp.tanh(0.5 * y) + 1.0)


def _fused_decoder_call(xp, ops):
    MP = xp.shape[0]
    return pl.pallas_call(
        _decoder_kernel,
        out_shape=jax.ShapeDtypeStruct((MP, D3), jnp.float32),
        grid=(KT,),
        in_specs=[
            pl.BlockSpec((MP, D0), lambda k: (0, 0)),    # x   (bf16, resident)
            pl.BlockSpec((D0, D1), lambda k: (0, 0)),    # Wa  (bf16, resident)
            pl.BlockSpec((1, D1), lambda k: (0, 0)),     # ba  (f32,  resident)
            pl.BlockSpec((D1, TK), lambda k: (0, k)),    # Wb  int8 column tile
            pl.BlockSpec((1, TK), lambda k: (0, k)),     # Wb scale tile
            pl.BlockSpec((1, TK), lambda k: (0, k)),     # bb tile
            pl.BlockSpec((TK, D3), lambda k: (k, 0)),    # Wc  int8 row tile
            pl.BlockSpec((1, D3), lambda k: (0, 0)),     # Wc scale (resident)
            pl.BlockSpec((1, D3), lambda k: (0, 0)),     # bc (resident)
        ],
        out_specs=pl.BlockSpec((MP, D3), lambda k: (0, 0)),
        scratch_shapes=[pltpu.VMEM((MP, D1), jnp.float32),   # h1
                        pltpu.VMEM((MP, D3), jnp.float32)],  # y accumulator
        compiler_params=pltpu.CompilerParams(
            dimension_semantics=("arbitrary",)),
    )(xp, ops["wa"], ops["ba"], ops["wb_q"], ops["sb"], ops["bb"],
      ops["wc_q"], ops["sc"], ops["bc"])


# -----------------------------------------------------------------------------
# One-time (init) construction of the composed constant operators (numpy, f64).
# -----------------------------------------------------------------------------
def _bilinear_up2_1d(n, pad=2):
    """1-D PyTorch bilinear x2 upsample matrix (align_corners=False), with the
    following conv's `pad` zero rows folded in.  Shape: (2n + 2*pad, n)."""
    out = 2 * n
    U = np.zeros((out + 2 * pad, n), dtype=np.float64)
    for o in range(out):
        src = max((o + 0.5) * 0.5 - 0.5, 0.0)
        i0 = min(int(np.floor(src)), n - 1)
        i1 = min(i0 + 1, n - 1)
        w1 = src - i0
        U[pad + o, i0] += 1.0 - w1
        U[pad + o, i1] += w1
    return U


def _compose_up2_conv(conv_w, n):
    """Dense matrix of (bilinear x2 upsample -> zero-pad 2 -> 5x5 conv, stride 1).
    conv_w: (Cout, Cin, 5, 5).  Maps flat (Cin*n*n,) -> flat (Cout*(2n)*(2n,))
    with NCHW flattening on both sides (matches x.view(-1, C, H, W))."""
    cout, cin, kh, kw = conv_w.shape
    H = 2 * n
    U = _bilinear_up2_1d(n, pad=2)                              # (2n+4, n)
    A = np.stack([U[k:k + H, :] for k in range(kh)])            # (5, 2n, n)
    # M[co,ci,oh,ow,ih,iw] = sum_{kh,kw} W[co,ci,kh,kw]*A[kh,oh,ih]*A[kw,ow,iw]
    M = np.einsum('oikl,kha,lwb->oihwab',
                  conv_w.astype(np.float64), A, A, optimize=True)
    M = M.transpose(1, 4, 5, 0, 2, 3)                           # (ci,ih,iw,co,oh,ow)
    return M.reshape(cin * n * n, cout * H * H)


def _pad2(m, rows, cols):
    out = np.zeros((rows, cols), dtype=np.float64)
    out[:m.shape[0], :m.shape[1]] = m
    return out


def _pad_bias(v, cols):
    out = np.zeros((1, cols), dtype=np.float64)
    out[0, :v.shape[0]] = v
    return out


def _quantize_cols(w_padded):
    """Symmetric per-output-column int8 quantization of an already padded
    (rows, cols) f64 matrix.  Returns (int8 matrix, (1, cols) f32 scales)."""
    amax = np.abs(w_padded).max(axis=0)                         # (cols,)
    scale = np.where(amax > 0.0, amax / 127.0, 1.0)
    q = np.clip(np.rint(w_padded / scale), -127, 127).astype(np.int8)
    return q, scale.astype(np.float32)[None, :]


def init_params(key):
    """Synthetic weights in PyTorch layout (deterministic)."""
    k1, k2, k3, k4, k5, k6 = jax.random.split(key, 6)
    return {
        "fc1_w": jax.random.normal(k1, (N_FC, HIDDEN), jnp.float32) * 0.05,
        "fc1_b": jax.random.normal(k2, (N_FC,), jnp.float32) * 0.05,
        "conv1_w": jax.random.normal(k3, (10, 30, 5, 5), jnp.float32) * 0.05,
        "conv1_b": jax.random.normal(k4, (10,), jnp.float32) * 0.05,
        "conv2_w": jax.random.normal(k5, (1, 10, 5, 5), jnp.float32) * 0.05,
        "conv2_b": jax.random.normal(k6, (1,), jnp.float32) * 0.05,
    }


def build_operators(params):
    """Compose + pre-transpose + pad + quantize the constant operators once."""
    wa = np.asarray(params["fc1_w"], np.float64).T              # (32, 1470)
    ba = np.asarray(params["fc1_b"], np.float64)                # (1470,)
    wb = _compose_up2_conv(np.asarray(params["conv1_w"], np.float64), 7)   # (1470,1960)
    bb = np.repeat(np.asarray(params["conv1_b"], np.float64), 14 * 14)     # (1960,)
    wc = _compose_up2_conv(np.asarray(params["conv2_w"], np.float64), 14)  # (1960,784)
    bc = np.repeat(np.asarray(params["conv2_b"], np.float64), 28 * 28)     # (784,)

    wb_q, sb = _quantize_cols(_pad2(wb, D1, D2))
    wc_q, sc = _quantize_cols(_pad2(wc, D2, D3))
    return {
        "wa": jnp.asarray(_pad2(wa, D0, D1), jnp.bfloat16),
        "ba": jnp.asarray(_pad_bias(ba, D1), jnp.float32),
        "wb_q": jnp.asarray(wb_q),                              # int8 (D1, D2)
        "sb": jnp.asarray(sb),                                  # f32  (1, D2)
        "bb": jnp.asarray(_pad_bias(bb, D2), jnp.float32),
        "wc_q": jnp.asarray(wc_q),                              # int8 (D2, D3)
        "sc": jnp.asarray(sc),                                  # f32  (1, D3)
        "bc": jnp.asarray(_pad_bias(bc, D3), jnp.float32),
    }


# -----------------------------------------------------------------------------
# Forward pass == MnistDecoder.forward (output NCHW, (B, 1, 28, 28))
# -----------------------------------------------------------------------------
def mnist_decoder_forward(x, ops):
    B = x.shape[0]
    MP = max(8, ((B + 7) // 8) * 8)               # pad batch into full sublanes
    xp = jnp.zeros((MP, D0), jnp.bfloat16).at[:B, :HIDDEN].set(
        x.astype(jnp.bfloat16))
    out = _fused_decoder_call(xp, ops)            # (MP, D3) f32, lane-dense
    return out[:B, :N_OUT].reshape(B, 1, 28, 28)


if __name__ == "__main__":
    key = jax.random.PRNGKey(0)
    pkey, xkey = jax.random.split(key)
    params = init_params(pkey)
    ops = build_operators(params)
    x = jax.random.normal(xkey, (BATCH, HIDDEN), jnp.float32)

    out = jax.jit(mnist_decoder_forward)(x, ops)
    out = jax.block_until_ready(out)

    assert out.shape == (BATCH, 1, 28, 28), out.shape
    assert bool(jnp.all(jnp.isfinite(out)))
    assert bool(jnp.all(out >= 0.0)) and bool(jnp.all(out <= 1.0))   # sigmoid range
    print("KERNEL_OK")
</pallas_src>

<mosaic_0001>
module attributes {stable_mosaic.version = 11 : i64} {
  func.func @_decoder_kernel(%arg0: i32, %arg1: memref<8x32xbf16, #tpu.memory_space<vmem>>, %arg2: memref<32x1536xbf16, #tpu.memory_space<vmem>>, %arg3: memref<1x1536xf32, #tpu.memory_space<vmem>>, %arg4: memref<1536x512xi8, #tpu.memory_space<vmem>>, %arg5: memref<1x512xf32, #tpu.memory_space<vmem>>, %arg6: memref<1x512xf32, #tpu.memory_space<vmem>>, %arg7: memref<512x896xi8, #tpu.memory_space<vmem>>, %arg8: memref<1x896xf32, #tpu.memory_space<vmem>>, %arg9: memref<1x896xf32, #tpu.memory_space<vmem>>, %arg10: memref<8x896xf32, #tpu.memory_space<vmem>>, %arg11: memref<8x1536xf32, #tpu.memory_space<vmem>>, %arg12: memref<8x896xf32, #tpu.memory_space<vmem>>) attributes {dimension_semantics = [#tpu.dimension_semantics<arbitrary>], iteration_bounds = array<i64: 4>, scalar_prefetch = 0 : i64, scratch_operands = 2 : i64, tpu.core_type = #tpu.core_type<tc>, window_params = [{pipeline_mode = #tpu.pipeline_mode<synchronous>, transform_indices = @transform_0, window_bounds = array<i64: 8, 32>}, {pipeline_mode = #tpu.pipeline_mode<synchronous>, transform_indices = @transform_1, window_bounds = array<i64: 32, 1536>}, {pipeline_mode = #tpu.pipeline_mode<synchronous>, transform_indices = @transform_2, window_bounds = array<i64: 1, 1536>}, {transform_indices = @transform_3, window_bounds = array<i64: 1536, 512>}, {transform_indices = @transform_4, window_bounds = array<i64: 1, 512>}, {transform_indices = @transform_5, window_bounds = array<i64: 1, 512>}, {transform_indices = @transform_6, window_bounds = array<i64: 512, 896>}, {pipeline_mode = #tpu.pipeline_mode<synchronous>, transform_indices = @transform_7, window_bounds = array<i64: 1, 896>}, {pipeline_mode = #tpu.pipeline_mode<synchronous>, transform_indices = @transform_8, window_bounds = array<i64: 1, 896>}, {pipeline_mode = #tpu.pipeline_mode<synchronous>, transform_indices = @transform_9, window_bounds = array<i64: 8, 896>}]} {
    %c0_i32 = arith.constant 0 : i32
    %0 = arith.cmpi eq, %arg0, %c0_i32 : i32
    %1 = arith.extui %0 : i1 to i32
    %c0_i32_0 = arith.constant 0 : i32
    %2 = arith.cmpi ne, %1, %c0_i32_0 : i32
    scf.if %2 {
      %c0_17 = arith.constant 0 : index
      %c0_18 = arith.constant 0 : index
      %24 = vector.load %arg1[%c0_17, %c0_18] : memref<8x32xbf16, #tpu.memory_space<vmem>>, vector<8x32xbf16>
      %c0_19 = arith.constant 0 : index
      %c0_20 = arith.constant 0 : index
      %25 = vector.load %arg2[%c0_19, %c0_20] : memref<32x1536xbf16, #tpu.memory_space<vmem>>, vector<32x1536xbf16>
      %cst_21 = arith.constant dense<0.000000e+00> : vector<8x1536xf32>
      %26 = tpu.matmul %24, %25, %cst_21 {dimension_numbers = #tpu.dot_dimension_numbers<[1], [0], [0], [1], [0, 0, 1, 1], [], []>} : vector<8x32xbf16>, vector<32x1536xbf16>, vector<8x1536xf32> -> vector<8x1536xf32>
      %c0_22 = arith.constant 0 : index
      %c0_23 = arith.constant 0 : index
      %27 = vector.load %arg3[%c0_22, %c0_23] : memref<1x1536xf32, #tpu.memory_space<vmem>>, vector<1x1536xf32>
      %28 = vector.broadcast %27 : vector<1x1536xf32> to vector<8x1536xf32>
      %29 = arith.addf %26, %28 : vector<8x1536xf32>
      %cst_24 = arith.constant 0.000000e+00 : f32
      %30 = vector.broadcast %cst_24 : f32 to vector<8x1536xf32>
      %31 = arith.maximumf %29, %30 : vector<8x1536xf32>
      %c0_25 = arith.constant 0 : index
      %c0_26 = arith.constant 0 : index
      %32 = vector.load %arg11[%c0_25, %c0_26] : memref<8x1536xf32, #tpu.memory_space<vmem>>, vector<8x1536xf32>
      tpu.vector_store %arg11[%c0_25, %c0_26], %31 {strides = array<i32>} : memref<8x1536xf32, #tpu.memory_space<vmem>>, vector<8x1536xf32>,
      %cst_27 = arith.constant 0.000000e+00 : f32
      %33 = vector.broadcast %cst_27 : f32 to vector<8x896xf32>
      %c0_28 = arith.constant 0 : index
      %c0_29 = arith.constant 0 : index
      %34 = vector.load %arg12[%c0_28, %c0_29] : memref<8x896xf32, #tpu.memory_space<vmem>>, vector<8x896xf32>
      tpu.vector_store %arg12[%c0_28, %c0_29], %33 {strides = array<i32>} : memref<8x896xf32, #tpu.memory_space<vmem>>, vector<8x896xf32>,
    } else {
    }
    %c0 = arith.constant 0 : index
    %c0_1 = arith.constant 0 : index
    %3 = vector.load %arg4[%c0, %c0_1] : memref<1536x512xi8, #tpu.memory_space<vmem>>, vector<1536x512xi8>
    %4 = arith.sitofp %3 : vector<1536x512xi8> to vector<1536x512xf32>
    %c0_2 = arith.constant 0 : index
    %c0_3 = arith.constant 0 : index
    %5 = vector.load %arg11[%c0_2, %c0_3] : memref<8x1536xf32, #tpu.memory_space<vmem>>, vector<8x1536xf32>
    %cst = arith.constant dense<0.000000e+00> : vector<8x512xf32>
    %6 = tpu.matmul %5, %4, %cst {dimension_numbers = #tpu.dot_dimension_numbers<[1], [0], [0], [1], [0, 0, 1, 1], [], []>} : vector<8x1536xf32>, vector<1536x512xf32>, vector<8x512xf32> -> vector<8x512xf32>
    %c0_4 = arith.constant 0 : index
    %c0_5 = arith.constant 0 : index
    %7 = vector.load %arg5[%c0_4, %c0_5] : memref<1x512xf32, #tpu.memory_space<vmem>>, vector<1x512xf32>
    %8 = vector.broadcast %7 : vector<1x512xf32> to vector<8x512xf32>
    %9 = arith.mulf %6, %8 : vector<8x512xf32>
    %c0_6 = arith.constant 0 : index
    %c0_7 = arith.constant 0 : index
    %10 = vector.load %arg6[%c0_6, %c0_7] : memref<1x512xf32, #tpu.memory_space<vmem>>, vector<1x512xf32>
    %11 = vector.broadcast %10 : vector<1x512xf32> to vector<8x512xf32>
    %12 = arith.addf %9, %11 : vector<8x512xf32>
    %cst_8 = arith.constant 0.000000e+00 : f32
    %13 = vector.broadcast %cst_8 : f32 to vector<8x512xf32>
    %14 = arith.maximumf %12, %13 : vector<8x512xf32>
    %c0_9 = arith.constant 0 : index
    %c0_10 = arith.constant 0 : index
    %15 = vector.load %arg7[%c0_9, %c0_10] : memref<512x896xi8, #tpu.memory_space<vmem>>, vector<512x896xi8>
    %16 = arith.sitofp %15 : vector<512x896xi8> to vector<512x896xf32>
    %c0_11 = arith.constant 0 : index
    %c0_12 = arith.constant 0 : index
    %17 = vector.load %arg12[%c0_11, %c0_12] : memref<8x896xf32, #tpu.memory_space<vmem>>, vector<8x896xf32>
    %cst_13 = arith.constant dense<0.000000e+00> : vector<8x896xf32>
    %18 = tpu.matmul %14, %16, %cst_13 {dimension_numbers = #tpu.dot_dimension_numbers<[1], [0], [0], [1], [0, 0, 1, 1], [], []>} : vector<8x512xf32>, vector<512x896xf32>, vector<8x896xf32> -> vector<8x896xf32>
    %19 = arith.addf %17, %18 : vector<8x896xf32>
    %c0_14 = arith.constant 0 : index
    %c0_15 = arith.constant 0 : index
    %20 = vector.load %arg12[%c0_14, %c0_15] : memref<8x896xf32, #tpu.memory_space<vmem>>, vector<8x896xf32>
    tpu.vector_store %arg12[%c0_14, %c0_15], %19 {strides = array<i32>} : memref<8x896xf32, #tpu.memory_space<vmem>>, vector<8x896xf32>,
    %c3_i32 = arith.constant 3 : i32
    %21 = arith.cmpi eq, %arg0, %c3_i32 : i32
    %22 = arith.extui %21 : i1 to i32
    %c0_i32_16 = arith.constant 0 : i32
    %23 = arith.cmpi ne, %22, %c0_i32_16 : i32
    scf.if %23 {
      %c0_17 = arith.constant 0 : index
      %c0_18 = arith.constant 0 : index
      %24 = vector.load %arg12[%c0_17, %c0_18] : memref<8x896xf32, #tpu.memory_space<vmem>>, vector<8x896xf32>
      %c0_19 = arith.constant 0 : index
      %c0_20 = arith.constant 0 : index
      %25 = vector.load %arg8[%c0_19, %c0_20] : memref<1x896xf32, #tpu.memory_space<vmem>>, vector<1x896xf32>
      %26 = vector.broadcast %25 : vector<1x896xf32> to vector<8x896xf32>
      %27 = arith.mulf %24, %26 : vector<8x896xf32>
      %c0_21 = arith.constant 0 : index
      %c0_22 = arith.constant 0 : index
      %28 = vector.load %arg9[%c0_21, %c0_22] : memref<1x896xf32, #tpu.memory_space<vmem>>, vector<1x896xf32>
      %29 = vector.broadcast %28 : vector<1x896xf32> to vector<8x896xf32>
      %30 = arith.addf %27, %29 : vector<8x896xf32>
      %cst_23 = arith.constant 5.000000e-01 : f32
      %31 = vector.broadcast %cst_23 : f32 to vector<8x896xf32>
      %32 = arith.mulf %31, %30 : vector<8x896xf32>
      %33 = math.tanh %32 : vector<8x896xf32>
      %cst_24 = arith.constant 1.000000e+00 : f32
      %34 = vector.broadcast %cst_24 : f32 to vector<8x896xf32>
      %35 = arith.addf %33, %34 : vector<8x896xf32>
      %cst_25 = arith.constant 5.000000e-01 : f32
      %36 = vector.broadcast %cst_25 : f32 to vector<8x896xf32>
      %37 = arith.mulf %36, %35 : vector<8x896xf32>
      %c0_26 = arith.constant 0 : index
      %c0_27 = arith.constant 0 : index
      %38 = vector.load %arg10[%c0_26, %c0_27] : memref<8x896xf32, #tpu.memory_space<vmem>>, vector<8x896xf32>
      tpu.vector_store %arg10[%c0_26, %c0_27], %37 {strides = array<i32>} : memref<8x896xf32, #tpu.memory_space<vmem>>, vector<8x896xf32>,
    } else {
    }
    return
  }
  func.func @transform_0(%arg0: i32) -> (i32, i32) {
    %c0_i32 = arith.constant 0 : i32
    %c0_i32_0 = arith.constant 0 : i32
    %c0_i32_1 = arith.constant 0 : i32
    return %c0_i32, %c0_i32_0 : i32, i32
  }
  func.func @transform_1(%arg0: i32) -> (i32, i32) {
    %c0_i32 = arith.constant 0 : i32
    %c0_i32_0 = arith.constant 0 : i32
    %c0_i32_1 = arith.constant 0 : i32
    return %c0_i32, %c0_i32_0 : i32, i32
  }
  func.func @transform_2(%arg0: i32) -> (i32, i32) {
    %c0_i32 = arith.constant 0 : i32
    %c0_i32_0 = arith.constant 0 : i32
    %c0_i32_1 = arith.constant 0 : i32
    return %c0_i32, %c0_i32_0 : i32, i32
  }
  func.func @transform_3(%arg0: i32) -> (i32, i32) {
    %c0_i32 = arith.constant 0 : i32
    %c0_i32_0 = arith.constant 0 : i32
    return %c0_i32, %arg0 : i32, i32
  }
  func.func @transform_4(%arg0: i32) -> (i32, i32) {
    %c0_i32 = arith.constant 0 : i32
    %c0_i32_0 = arith.constant 0 : i32
    return %c0_i32, %arg0 : i32, i32
  }
  func.func @transform_5(%arg0: i32) -> (i32, i32) {
    %c0_i32 = arith.constant 0 : i32
    %c0_i32_0 = arith.constant 0 : i32
    return %c0_i32, %arg0 : i32, i32
  }
  func.func @transform_6(%arg0: i32) -> (i32, i32) {
    %c0_i32 = arith.constant 0 : i32
    %c0_i32_0 = arith.constant 0 : i32
    return %arg0, %c0_i32 : i32, i32
  }
  func.func @transform_7(%arg0: i32) -> (i32, i32) {
    %c0_i32 = arith.constant 0 : i32
    %c0_i32_0 = arith.constant 0 : i32
    %c0_i32_1 = arith.constant 0 : i32
    return %c0_i32, %c0_i32_0 : i32, i32
  }
  func.func @transform_8(%arg0: i32) -> (i32, i32) {
    %c0_i32 = arith.constant 0 : i32
    %c0_i32_0 = arith.constant 0 : i32
    %c0_i32_1 = arith.constant 0 : i32
    return %c0_i32, %c0_i32_0 : i32, i32
  }
  func.func @transform_9(%arg0: i32) -> (i32, i32) {
    %c0_i32 = arith.constant 0 : i32
    %c0_i32_0 = arith.constant 0 : i32
    %c0_i32_1 = arith.constant 0 : i32
    return %c0_i32, %c0_i32_0 : i32, i32
  }
}

</mosaic_0001>

<bundles_post_ra>
// kernel: mnist_decoder_forward.1
= control target key start
LH: loop header
LB: loop body
LE: loop exit
PB: predicated region body
PF: predicated region fallthrough
CT: control target
= control target key end

     0   :  { %s8130_s0 = inlined_call_operand.vmem [shape: bf16[8,32], index: 0, kind: input, shape index: {}]   ;;  %s8131_s1 = inlined_call_operand.hbm [shape: bf16[32,1536], index: 1, kind: input, shape index: {}]   ;;  %s8132_s2 = inlined_call_operand.hbm [shape: f32[1,1536], index: 2, kind: input, shape index: {}]   ;;  %s8133_s3 = inlined_call_operand.hbm [shape: s8[1536,2048], index: 3, kind: input, shape index: {}]   ;;  %s8134_s4 = inlined_call_operand.hbm [shape: f32[1,2048], index: 4, kind: input, shape index: {}]   ;;  %s8135_s5 = inlined_call_operand.hbm [shape: f32[1,2048], index: 5, kind: input, shape index: {}]   ;;  %s8136_s6 = inlined_call_operand.hbm [shape: s8[2048,896], index: 6, kind: input, shape index: {}]   ;;  %s8137_s7 = inlined_call_operand.hbm [shape: f32[1,896], index: 7, kind: input, shape index: {}]   ;;  %s8138_s8 = inlined_call_operand.hbm [shape: f32[1,896], index: 8, kind: input, shape index: {}]   ;;  %s8139_s9 = inlined_call_operand.vmem [shape: f32[8,896], index: 9, kind: output, shape index: {}]  }
   0x1   :  { %8158 = sst [smem:[#allocation24_spill]] %s8130_s0 }
   0x2   :  { %8159 = sst [smem:[#allocation25_spill]] %s8139_s9 }
   0x3   :  { %14 = vsyncpa [#allocation5], 0 }
   0x4   :  { %15 = vsyncpa [#allocation7], 0 }
   0x5   :  { %16 = vsyncpa [#allocation14], 0  ;;  %s7393_s30 = smov 0   ;;  %s7395_s10 = smov 0  }
   0x6   :  { %s7397_s11 = smov 0   ;;  %s7399_s12 = smov 0  }
   0x7 LB: > { %8160 = sst [smem:[#allocation20_spill]] %s7320_s11  ;;  %s7412_s13 = sadd.s32 4294967295, %s7324_s12   ;;  %s7324_s12 = sphi %s7399_s12, %s8195_s12   ;;  %s7320_s11 = sphi %s7397_s11, %s8197_s11   ;;  %s7316_s10 = sphi %s7395_s10, %s8199_s10   ;;  %s7312_s30 = sphi %s7393_s30, %s8198_s30  }
   0x8   : > { %s7415_s14 = sadd.s32 1, %s7324_s12   ;;  %s92_s16 = sadd.s32 1, %s7320_s11 }
   0x9   : > { %8161 = sst [smem:[#allocation21_spill]] %s7415_s14  ;;  %s89_s15 = ssub.s32 %s7324_s12, %s7415_s14 }
   0xa   : > { %p90_p0 = scmp.eq.s32.totalorder %s89_s15, 0  ;;  %p99_p1 = scmp.ne.s32.totalorder %s7320_s11, %s7316_s10 }
   0xb   : > { %p100_p2 = scmp.eq.s32.totalorder %s7324_s12, 0  ;;  %p105_p3 = scmp.ne.s32.totalorder %s7316_s10, %s7312_s30 }
   0xc   : > { %s7425_s17 = scalar_select %p90_p0, %s7320_s11, %s92_s16  }
   0xd   : > { %p7427_p4 = por %p100_p2, %p99_p1  ;;  %p8140_p5 = scmp.eq.s32.totalorder %s7412_s13, 0 }
   0xe   : > { %8162 = sst [smem:[#allocation22_spill]] %s7425_s17  ;;  %p5510_p6 = scmp.ge.s32.totalorder %s7324_s12, 1 }
   0xf   : > { %p257_p7 = scmp.lt.s32.totalorder %s7324_s12, 5  ;;  %p7436_p8 = por %p8140_p5, %p105_p3 }
  0x10   : > { %s7326_s21 = smov [#allocation4]   ;;  %p6942_p13 = scmp.lt.s32.totalorder %s7324_s12, 4 }
  0x11   : > { %s8164_s19 = scalar_select %p7436_p8, 1, 0 }
  0x12   : > { %p7441_p10 = pnand %p5510_p6, %p257_p7  ;;  %s272_s22 = sshll.u32 %s7326_s21, 4  ;;  %s273_s22 = int_to_ptr.vmem [resolvable:$true] %s272_s22 }
  0x13   : > { %8165 = sst [smem:[#allocation23_spill]] %s8164_s19  ;;  %s7456_s25 = sand.u32 1, %s7320_s11  }
  0x14   : > { %s8166_s20 = scalar_select %p7441_p10, 1, 0 }
  0x15   : > { %p6912_p11 = pneg %p7441_p10  ;;  %p7460_p0 = pnand %p6942_p13, %p7427_p4 }
  0x16   : > { %s7042_s29 = scalar_lea.hbm %s8131_s1, 3072 }
  0x17   : > { %p7449_p12 = pnand %p6912_p11, %p8140_p5  ;;  %p7043_p1 = scmp.ne.s32.totalorder %s8131_s1, %s7042_s29 }
  0x18   : > { %s8168_s26 = scalar_select %p7460_p0, 1, 0 }
  0x19   : > { %s8167_s23 = scalar_select %p7449_p12, 1, 0 }
  0x1a   : > { %p7472_p2 = pneg %p7449_p12  ;;  %p7049_p6 = scmp.lt.u32.totalorder %s7042_s29, %s8131_s1 }
  0x1c   : > { %s8169_s16 = scalar_select %p7472_p2, 1, 0 }
  0x1d   : > { %p7045_p3 = pnand %p7472_p2, %p7043_p1 }
  0x1f   : > { %p7046_p4 = pneg %p7045_p3 }
  0x21   : > { %p7051_p7 = pnand %p7049_p6, %p7046_p4 }
  0x23   : > { %7054 = shalt.err (!%p7051_p7)
}
  0x24   : > { %s7055_s27 = scalar_lea.vmem %s273_s22, 3072  ;;  %p7063_p5 = scmp.lt.s32.totalorder %s273_s22, %s273_s22 }
  0x25   : > { %p7056_p11 = scmp.ne.s32.totalorder %s273_s22, %s7055_s27  ;;  %p7064_p8 = scmp.lt.s32.totalorder %s7055_s27, %s7055_s27 }
  0x27   : > { %p7058_p13 = pnand %p7056_p11, %p7472_p2  ;;  %p7065_p10 = por %p7064_p8, %p7063_p5 }
  0x29   : > { %p7059_p9 = pneg %p7058_p13 }
  0x2b   : > { %p7066_p0 = pnand %p7065_p10, %p7059_p9 }
  0x2d   : > { %7069 = shalt.err (!%p7066_p0)
}
  0x2e   : > { %s7327_s28 = smov 768   ;;  %s7328_s29 = smov 48  }
  0x2f   : > { %6915 = dma.hbm_to_vmem [thread:$0]  (!%p7449_p12), %s8131_s1, 3072, %s273_s22, [#allocation5], %s7327_s28, %s7327_s28, %s7328_s29  }
  0x30   : > { %s6883_s18 = smul.u32 1536, %s7456_s25  ;;  %s5568_s21 = sshll.u32 %s7324_s12, 9 }
  0x31   : > { %s7493_s17 = scalar_lea.hbm %s8133_s3, %s5568_s21  ;;  %s8155_s9 = sshll.u32 %s7456_s25, 2 }
  0x32   : > { %s323_s11 = scalar_lea.vmem [#allocation8], %s6883_s18  ;;  %s8170_s0 = sand.u32 1, %s7324_s12  }
  0x33   : > { %s330_s14 = sshll.u32 %s323_s11, 4  ;;  %s7500_s19 = scalar_lea.sflag [#allocation5], %s8170_s0  ;;  %s7495_s14 = int_to_ptr.vmem [resolvable:$true] %s330_s14 }
  0x34   : > { %s7070_s22 = scalar_lea.hbm %s7493_s17, 24576  ;;  %p8171_p8 = scmp.ne.s32.totalorder %s8168_s26, 0 }
  0x35   : > { %p7071_p5 = scmp.ne.s32.totalorder %s7493_s17, %s7070_s22  ;;  %s7075_s11 = scalar_lea.hbm %s8133_s3, 98304 }
  0x36   : > { %p7506_p9 = pneg %p8171_p8  ;;  %p7076_p1 = scmp.lt.u32.totalorder %s7493_s17, %s8133_s3 }
  0x37   : > { %p7077_p3 = scmp.lt.u32.totalorder %s7075_s11, %s7070_s22  ;;  %p7079_p6 = scmp.lt.u32.totalorder %s7070_s22, %s7493_s17 }
  0x38   : > { %s8172_s28 = scalar_select %p7506_p9, 1, 0 }
  0x39   : > { %p7073_p10 = pnand %p7506_p9, %p7071_p5  ;;  %p7078_p4 = por %p7077_p3, %p7076_p1 }
  0x3b   : > { %p7074_p0 = pneg %p7073_p10  ;;  %p7080_p7 = por %p7079_p6, %p7078_p4 }
  0x3d   : > { %p7081_p11 = pnand %p7080_p7, %p7074_p0 }
  0x3f   : > { %7084 = shalt.err (!%p7081_p11)
}
  0x40   : > { %s7085_s0 = scalar_lea.vmem %s7495_s14, 24576  ;;  %s7329_s18 = smov [#allocation8]  }
  0x41   : > { %p7086_p13 = scmp.ne.s32.totalorder %s7495_s14, %s7085_s0  ;;  %s7090_s21 = sshll.u32 %s7329_s18, 4  ;;  %s7091_s21 = int_to_ptr.vmem [resolvable:$false] %s7090_s21 }
  0x42   : > { %s7092_s27 = scalar_lea.vmem %s7091_s21, 49152  ;;  %p7093_p12 = scmp.lt.s32.totalorder %s7495_s14, %s7091_s21 }
  0x43   : > { %p7088_p5 = pnand %p7086_p13, %p7506_p9  ;;  %p7094_p2 = scmp.lt.s32.totalorder %s7092_s27, %s7085_s0 }
  0x45   : > { %p7089_p10 = pneg %p7088_p5  ;;  %p7095_p1 = por %p7094_p2, %p7093_p12 }
  0x47   : > { %p7096_p3 = pnand %p7095_p1, %p7089_p10 }
  0x49   : > { %7099 = shalt.err (!%p7096_p3)
}
  0x4a   : > { %s7330_s22 = smov 2048   ;;  %s7331_s24 = smov 512  }
  0x4b   : > { %s7332_s29 = smov 32   ;;  %s5569_s11 = sshll.u32 %s7324_s12, 6 }
  0x4c   : > { %6928 = dma.hbm_to_vmem [thread:$0]  (!%p8171_p8), %s7493_s17, 24576, %s7495_s14, %s7500_s19, %s7330_s22, %s7331_s24, %s7332_s29  }
  0x4d   : > { %s7536_s0 = scalar_lea.hbm %s8134_s4, %s5569_s11  ;;  %s344_s18 = scalar_lea.vmem [#allocation9], %s8155_s9 }
  0x4e   : > { %s352_s21 = sshll.u32 %s344_s18, 4  ;;  %s7100_s27 = scalar_lea.hbm %s7536_s0, 64  ;;  %s353_s21 = int_to_ptr.vmem [resolvable:$true] %s352_s21 }
  0x4f   : > { %p7101_p12 = scmp.ne.s32.totalorder %s7536_s0, %s7100_s27  ;;  %s7105_s22 = scalar_lea.hbm %s8134_s4, 256 }
  0x50   : > { %p7106_p4 = scmp.lt.u32.totalorder %s7536_s0, %s8134_s4  ;;  %p7107_p6 = scmp.lt.u32.totalorder %s7105_s22, %s7100_s27 }
  0x51   : > { %p7103_p2 = pnand %p7101_p12, %p7506_p9  ;;  %p7109_p11 = scmp.lt.u32.totalorder %s7100_s27, %s7536_s0 }
  0x52   : > { %p7108_p7 = por %p7107_p6, %p7106_p4 }
  0x53   : > { %p7104_p0 = pneg %p7103_p2 }
  0x54   : > { %p7110_p13 = por %p7109_p11, %p7108_p7 }
  0x56   : > { %p7111_p5 = pnand %p7110_p13, %p7104_p0 }
  0x58   : > { %7114 = shalt.err (!%p7111_p5)
}
  0x59   : > { %s7115_s30 = scalar_lea.vmem %s353_s21, 64  ;;  %s7333_s15 = smov [#allocation9]  }
  0x5a   : > { %p7116_p10 = scmp.ne.s32.totalorder %s353_s21, %s7115_s30  ;;  %s7120_s18 = sshll.u32 %s7333_s15, 4  ;;  %s7121_s18 = int_to_ptr.vmem [resolvable:$false] %s7120_s18 }
  0x5b   : > { %s7122_s14 = scalar_lea.vmem %s7121_s18, 128  ;;  %p7123_p12 = scmp.lt.s32.totalorder %s353_s21, %s7121_s18 }
  0x5c   : > { %p7118_p1 = pnand %p7116_p10, %p7506_p9  ;;  %p7124_p2 = scmp.lt.s32.totalorder %s7122_s14, %s7115_s30 }
  0x5e   : > { %p7119_p3 = pneg %p7118_p1  ;;  %p7125_p8 = por %p7124_p2, %p7123_p12 }
  0x60   : > { %p7126_p4 = pnand %p7125_p8, %p7119_p3 }
  0x62   : > { %7129 = shalt.err (!%p7126_p4)
}
  0x63   : > { %p8173_p6 = scmp.ne.s32.totalorder %s8168_s26, 0  ;;  %s7334_s27 = smov [#allocation6]  }
  0x64   : > { %s286_s17 = sshll.u32 %s7334_s27, 4  ;;  %s7563_s29 = scalar_lea.hbm %s8135_s5, %s5569_s11  ;;  %s287_s17 = int_to_ptr.vmem [resolvable:$true] %s286_s17 }
  0x65   : > { %6931 = dma.hbm_to_vmem [thread:$0]  (!%p8173_p6), %s7536_s0, 64, %s353_s21, %s7500_s19  }
  0x66   : > { %s7130_s18 = scalar_lea.hbm %s8132_s2, 192  ;;  %p8174_p0 = scmp.ne.s32.totalorder %s8169_s16, 0 }
  0x67   : > { %p7131_p8 = scmp.ne.s32.totalorder %s8132_s2, %s7130_s18  ;;  %p7137_p13 = scmp.lt.u32.totalorder %s7130_s18, %s8132_s2 }
  0x69   : > { %p7133_p7 = pnand %p7131_p8, %p8174_p0 }
  0x6b   : > { %p7134_p11 = pneg %p7133_p7 }
  0x6d   : > { %p7139_p5 = pnand %p7137_p13, %p7134_p11 }
  0x6f   : > { %7142 = shalt.err (!%p7139_p5)
}
  0x70   : > { %s7143_s27 = scalar_lea.vmem %s287_s17, 192  ;;  %p7151_p12 = scmp.lt.s32.totalorder %s287_s17, %s287_s17 }
  0x71   : > { %p7144_p10 = scmp.ne.s32.totalorder %s287_s17, %s7143_s27  ;;  %p7152_p2 = scmp.lt.s32.totalorder %s7143_s27, %s7143_s27 }
  0x73   : > { %p7146_p1 = pnand %p7144_p10, %p8174_p0  ;;  %p7153_p4 = por %p7152_p2, %p7151_p12 }
  0x75   : > { %p7147_p3 = pneg %p7146_p1 }
  0x77   : > { %p7154_p6 = pnand %p7153_p4, %p7147_p3 }
  0x79   : > { %7157 = shalt.err (!%p7154_p6)
}
  0x7a   : > { %p8175_p8 = scmp.ne.s32.totalorder %s8167_s23, 0  ;;  %s8176_s22 = sshll.u32 %s7456_s25, 2 }
  0x7b   : > { %s363_s24 = scalar_lea.vmem [#allocation10], %s8176_s22  ;;  %s7335_s15 = smov [#allocation12]  }
  0x7c   : > { %6918 = dma.hbm_to_vmem [thread:$0]  (!%p8175_p8), %s8132_s2, 192, %s287_s17, [#allocation7]  }
  0x7d   : > { %s371_s30 = sshll.u32 %s363_s24, 4  ;;  %s297_s18 = sshll.u32 %s7335_s15, 4  ;;  %s7585_s30 = int_to_ptr.vmem [resolvable:$true] %s371_s30  ;;  %s298_s18 = int_to_ptr.vmem [resolvable:$true] %s297_s18 }
  0x7e   : > { %s7158_s14 = scalar_lea.hbm %s7563_s29, 64  ;;  %s7163_s27 = scalar_lea.hbm %s8135_s5, 256 }
  0x7f   : > { %p7159_p6 = scmp.ne.s32.totalorder %s7563_s29, %s7158_s14  ;;  %p7164_p13 = scmp.lt.u32.totalorder %s7563_s29, %s8135_s5 }
  0x80   : > { %p7165_p5 = scmp.lt.u32.totalorder %s7163_s27, %s7158_s14  ;;  %p7167_p1 = scmp.lt.u32.totalorder %s7158_s14, %s7563_s29 }
  0x81   : > { %p7161_p7 = pnand %p7159_p6, %p7506_p9 }
  0x82   : > { %p7166_p10 = por %p7165_p5, %p7164_p13 }
  0x83   : > { %p7162_p11 = pneg %p7161_p7 }
  0x84   : > { %p7168_p3 = por %p7167_p1, %p7166_p10 }
  0x86   : > { %p7169_p12 = pnand %p7168_p3, %p7162_p11 }
  0x88   : > { %7172 = shalt.err (!%p7169_p12)
}
  0x89   : > { %s7173_s17 = scalar_lea.vmem %s7585_s30, 64  ;;  %s7336_s22 = smov [#allocation10]  }
  0x8a   : > { %p7174_p2 = scmp.ne.s32.totalorder %s7585_s30, %s7173_s17  ;;  %s7178_s24 = sshll.u32 %s7336_s22, 4  ;;  %s7179_s24 = int_to_ptr.vmem [resolvable:$false] %s7178_s24 }
  0x8b   : > { %s7180_s15 = scalar_lea.vmem %s7179_s24, 128  ;;  %p7181_p7 = scmp.lt.s32.totalorder %s7585_s30, %s7179_s24 }
  0x8c   : > { %p7176_p4 = pnand %p7174_p2, %p7506_p9  ;;  %p7182_p8 = scmp.lt.s32.totalorder %s7180_s15, %s7173_s17 }
  0x8e   : > { %p7177_p6 = pneg %p7176_p4  ;;  %p7183_p13 = por %p7182_p8, %p7181_p7 }
  0x90   : > { %p7184_p5 = pnand %p7183_p13, %p7177_p6 }
  0x92   : > { %7187 = shalt.err (!%p7184_p5)
}
  0x93   : > { %p8177_p11 = scmp.ne.s32.totalorder %s8168_s26, 0  ;;  %s7188_s21 = scalar_lea.hbm %s8137_s7, 112 }
  0x94   : > { %p7189_p10 = scmp.ne.s32.totalorder %s8137_s7, %s7188_s21  ;;  %p7195_p3 = scmp.lt.u32.totalorder %s7188_s21, %s8137_s7 }
  0x95   : > { %6934 = dma.hbm_to_vmem [thread:$0]  (!%p8177_p11), %s7563_s29, 64, %s7585_s30, %s7500_s19  }
  0x96   : > { %p7191_p8 = pnand %p7189_p10, %p8174_p0 }
  0x98   : > { %p7192_p1 = pneg %p7191_p8 }
  0x9a   : > { %p7197_p12 = pnand %p7195_p3, %p7192_p1 }
  0x9c   : > { %7200 = shalt.err (!%p7197_p12)
}
  0x9d   : > { %s7201_s22 = scalar_lea.vmem %s298_s18, 112  ;;  %s7208_s29 = scalar_lea.vmem %s298_s18, 128 }
  0x9e   : > { %p7202_p2 = scmp.ne.s32.totalorder %s298_s18, %s7201_s22  ;;  %p7209_p7 = scmp.lt.s32.totalorder %s298_s18, %s298_s18 }
  0x9f   : > { %p7210_p13 = scmp.lt.s32.totalorder %s7208_s29, %s7201_s22 }
  0xa0   : > { %p7204_p4 = pnand %p7202_p2, %p8174_p0 }
  0xa1   : > { %p7211_p5 = por %p7210_p13, %p7209_p7 }
  0xa2   : > { %p7205_p6 = pneg %p7204_p4 }
  0xa4   : > { %p7212_p11 = pnand %p7211_p5, %p7205_p6 }
  0xa6   : > { %7215 = shalt.err (!%p7212_p11)
}
  0xa7   : > { %p8178_p10 = scmp.ne.s32.totalorder %s8167_s23, 0  ;;  %s7337_s15 = smov [#allocation13]  }
  0xa8   : > { %s308_s14 = sshll.u32 %s7337_s15, 4  ;;  %s6884_s0 = smul.u32 896, %s7456_s25  ;;  %s309_s14 = int_to_ptr.vmem [resolvable:$true] %s308_s14 }
  0xa9   : > { %6921 = dma.hbm_to_vmem [thread:$0]  (!%p8178_p10), %s8137_s7, 112, %s298_s18, [#allocation7]  }
  0xaa   : > { %s6885_s21 = smul.u32 14336, %s7324_s12  ;;  %s7216_s11 = scalar_lea.hbm %s8138_s8, 112 }
  0xab   : > { %p7217_p11 = scmp.ne.s32.totalorder %s8138_s8, %s7216_s11  ;;  %p7223_p3 = scmp.lt.u32.totalorder %s7216_s11, %s8138_s8 }
  0xad   : > { %p7219_p8 = pnand %p7217_p11, %p8174_p0 }
  0xaf   : > { %p7220_p1 = pneg %p7219_p8 }
  0xb1   : > { %p7225_p12 = pnand %p7223_p3, %p7220_p1 }
  0xb3   : > { %7228 = shalt.err (!%p7225_p12)
}
  0xb4   : > { %s7229_s25 = scalar_lea.vmem %s309_s14, 112  ;;  %s7236_s12 = scalar_lea.vmem %s309_s14, 128 }
  0xb5   : > { %p7230_p2 = scmp.ne.s32.totalorder %s309_s14, %s7229_s25  ;;  %p7237_p7 = scmp.lt.s32.totalorder %s309_s14, %s309_s14 }
  0xb6   : > { %p7238_p13 = scmp.lt.s32.totalorder %s7236_s12, %s7229_s25 }
  0xb7   : > { %p7232_p4 = pnand %p7230_p2, %p8174_p0 }
  0xb8   : > { %p7239_p5 = por %p7238_p13, %p7237_p7 }
  0xb9   : > { %p7233_p6 = pneg %p7232_p4 }
  0xbb   : > { %p7240_p9 = pnand %p7239_p5, %p7233_p6 }
  0xbd   : > { %7243 = shalt.err (!%p7240_p9)
}
  0xbe   : > { %6924 = dma.hbm_to_vmem [thread:$0]  (!%p8178_p10), %s8138_s8, 112, %s309_s14, [#allocation14]  }
  0xbf   : > { %s7650_s9 = scalar_lea.hbm %s8136_s6, %s6885_s21  ;;  %s382_s16 = scalar_lea.vmem [#allocation11], %s6884_s0 }
  0xc0   : > { %s390_s11 = sshll.u32 %s382_s16, 4  ;;  %s7244_s17 = scalar_lea.hbm %s7650_s9, 14336  ;;  %s7652_s11 = int_to_ptr.vmem [resolvable:$true] %s390_s11 }
  0xc1   : > { %p7245_p9 = scmp.ne.s32.totalorder %s7650_s9, %s7244_s17  ;;  %p8179_p0 = scmp.ne.s32.totalorder %s8172_s28, 0 }
  0xc2   : > { %s7249_s22 = scalar_lea.hbm %s8136_s6, 57344  ;;  %p7250_p10 = scmp.lt.u32.totalorder %s7650_s9, %s8136_s6 }
  0xc3   : > { %p7247_p11 = pnand %p7245_p9, %p8179_p0  ;;  %p7251_p1 = scmp.lt.u32.totalorder %s7249_s22, %s7244_s17 }
  0xc4   : > { %p7253_p12 = scmp.lt.u32.totalorder %s7244_s17, %s7650_s9 }
  0xc5   : > { %p7248_p8 = pneg %p7247_p11  ;;  %p7252_p3 = por %p7251_p1, %p7250_p10 }
  0xc7   : > { %p7254_p2 = por %p7253_p12, %p7252_p3 }
  0xc9   : > { %p7255_p4 = pnand %p7254_p2, %p7248_p8 }
  0xcb   : > { %7258 = shalt.err (!%p7255_p4)
}
  0xcc   : > { %s7259_s0 = scalar_lea.vmem %s7652_s11, 14336  ;;  %s7338_s30 = smov [#allocation11]  }
  0xcd   : > { %p7260_p6 = scmp.ne.s32.totalorder %s7652_s11, %s7259_s0  ;;  %s7264_s25 = sshll.u32 %s7338_s30, 4  ;;  %s7265_s25 = int_to_ptr.vmem [resolvable:$false] %s7264_s25 }
  0xce   : > { %s7266_s12 = scalar_lea.vmem %s7265_s25, 28672  ;;  %p7267_p5 = scmp.lt.s32.totalorder %s7652_s11, %s7265_s25 }
  0xcf   : > { %p7262_p7 = pnand %p7260_p6, %p8179_p0  ;;  %p7268_p9 = scmp.lt.s32.totalorder %s7266_s12, %s7259_s0 }
  0xd1   : > { %p7263_p13 = pneg %p7262_p7  ;;  %p7269_p11 = por %p7268_p9, %p7267_p5 }
  0xd3   : > { %p7270_p10 = pnand %p7269_p11, %p7263_p13 }
  0xd5   : > { %7273 = shalt.err (!%p7270_p10)
}
  0xd6   : > { %s7339_s18 = smov 896   ;;  %s7340_s24 = smov 56  }
  0xd7   : > { %p8180_p8 = scmp.ne.s32.totalorder %s8168_s26, 0  ;;  %p8181_p0 = scmp.ne.s32.totalorder %s8166_s20, 0 }
  0xd8   : > { %p8182_p1 = scmp.eq.s32.totalorder (!%p8181_p0), %s7412_s13, 0 }
  0xd9   : > { %6937 = dma.hbm_to_vmem [thread:$0]  (!%p8180_p8), %s7650_s9, 14336, %s7652_s11, %s7500_s19, %s7339_s18, %s7339_s18, %s7340_s24  }
  0xda   : > { %402 = sbr.rel (%p8181_p0) target bundleno = 1536 (0x600), region = 56 }
  0xe1   : > { %7291 = dma.done.wait (%p8182_p1), [#allocation5], 3072   ;;  %p8183_p3 = pmov %p8182_p1 }
  0xe2   : > { %p8184_p12 = pmov %p8182_p1 }
  0xe3   : > { %7293 = vsyncadd (%p8183_p3), [#allocation5], 4294964224 }
  0xe4   : > { %7295 = dma.done.wait (%p8184_p12), [#allocation7], 192   ;;  %p8185_p2 = pmov %p8182_p1 }
  0xe5   : > { %s8186_s28 = sld [smem:[#allocation23_spill]]  ;;  %s412_s26 = sand.u32 1, %s7412_s13  }
  0xe6   : > { %7297 = vsyncadd (%p8185_p2), [#allocation7], 4294967104  ;;  %s414_s19 = sand.u32 1, %s7316_s10   ;;  %s413_s20 = scalar_lea.sflag [#allocation5], %s412_s26 }
  0xe7   : > { %s6886_s15 = smul.u32 1536, %s414_s19 }
  0xe9   : > { %s7688_s27 = scalar_lea.vmem [#allocation8], %s6886_s15 }
  0xeb   : > { %p8187_p4 = scmp.ne.s32.totalorder %s8186_s28, 0 }
  0xed   : > { %7299 = dma.done.wait (%p8187_p4), %s413_s20, 39040  }
  0xee   : > { %7301 = vsyncadd (%p8187_p4), %s413_s20, 4294928256  ;;  %s5530_s9 = sshll.u32 %s414_s19, 2  ;;  %s6887_s16 = smul.u32 896, %s414_s19 }
  0xef   : > { %s7694_s11 = scalar_lea.vmem [#allocation9], %s5530_s9  ;;  %s7696_s17 = scalar_lea.vmem [#allocation10], %s5530_s9 }
  0xf0   : > { %s7698_s23 = scalar_lea.vmem [#allocation11], %s6887_s16  ;;  %p8188_p6 = pmov %p8182_p1 }
  0xf1   : > { %p8189_p7 = pmov %p8182_p1 }
  0xf2   : > { %7303 = dma.done.wait (%p8188_p6), [#allocation7], 112  }
  0xf3   : > { %7305 = vsyncadd (%p8189_p7), [#allocation7], 4294967184  ;;  %p8190_p13 = pmov %p8182_p1 }
  0xf4   : > { %p8191_p5 = pmov %p8182_p1 }
  0xf5   : > { %7307 = dma.done.wait (%p8190_p13), [#allocation14], 112  }
  0xf6   : > { %7309 = vsyncadd (%p8191_p5), [#allocation14], 4294967184  ;;  %p8192_p9 = scmp.ne.s32.totalorder %s7412_s13, 0 }
  0xf7   : > { %v6992_v0 = vld [vmem:[#allocation4 + $0x4] ss:$48 sps:$4 sm:$0xff] (!%p8192_p9)   ;;  %v6994_v1 = vld [vmem:[#allocation4 + $0xc] ss:$48 sps:$4 sm:$0xff] (!%p8192_p9)   ;;  %v7341_v2 = vmov (!%p8192_p9), 0   ;;  %s8193_s29 = sld [smem:[#allocation24_spill]] (!%p8192_p9)  ;;  %v534_v27 = vlaneseq (!%p8192_p9) }
  0xf8   : > { %504 = sbr.rel (%p8192_p9) target bundleno = 491 (0x1eb), region = 92  ;;  %750 = vmatprep.mubr.bf16.mxu0 (!%p8192_p9), %v7341_v2  ;;  %791 = vmatprep.mubr.bf16.mxu1 (!%p8192_p9), %v7341_v2  ;;  %v6996_v3 = vld [vmem:[#allocation4] ss:$48 sps:$4 sm:$0xff] (!%p8192_p9)   ;;  %v6997_v4 = vld [vmem:[#allocation4 + $0x8] ss:$48 sps:$4 sm:$0xff] (!%p8192_p9)   ;;  %vm714_vm0 = vcmask (!%p8192_p9), 261120  }
  0xf9   : > { %718 = vmatprep.subr.bf16.mxu0 (!%p8192_p9), %v6992_v0  ;;  %759 = vmatprep.subr.bf16.mxu1 (!%p8192_p9), %v6994_v1  ;;  %v6998_v5 = vld [vmem:[#allocation4 + $0x64] ss:$48 sps:$4 sm:$0xff] (!%p8192_p9)   ;;  %v7000_v6 = vld [vmem:[#allocation4 + $0x6c] ss:$48 sps:$4 sm:$0xff] (!%p8192_p9)   ;;  %v7002_v7 = vld [vmem:[#allocation4 + $0x60] ss:$48 sps:$4 sm:$0xff] (!%p8192_p9)  }
  0xfa   : > { %719 = vmatpush1.bf16.msra.mxu0 (!%p8192_p9), %v6996_v3  ;;  %760 = vmatpush1.bf16.msra.mxu1 (!%p8192_p9), %v6997_v4  ;;  %v7003_v8 = vld [vmem:[#allocation4 + $0x68] ss:$48 sps:$4 sm:$0xff] (!%p8192_p9)   ;;  %v7004_v10 = vld [vmem:[#allocation4 + $0x10] ss:$48 sps:$4 sm:$0xff] (!%p8192_p9)   ;;  %v7006_v11 = vld [vmem:[#allocation4 + $0x14] ss:$48 sps:$4 sm:$0xff] (!%p8192_p9)  }
  0xfb   : > { %720 = vmatprep.subr.bf16.mxu0 (!%p8192_p9), %v6998_v5  ;;  %761 = vmatprep.subr.bf16.mxu1 (!%p8192_p9), %v7000_v6  ;;  %v7007_v12 = vld [vmem:[#allocation4 + $0x18] ss:$48 sps:$4 sm:$0xff] (!%p8192_p9)   ;;  %v7009_v13 = vld [vmem:[#allocation4 + $0x1c] ss:$48 sps:$4 sm:$0xff] (!%p8192_p9)   ;;  %v7012_v14 = vld [vmem:[#allocation4 + $0x74] ss:$48 sps:$4 sm:$0xff] (!%p8192_p9)  }
  0xfc   : > { %v7015_v15 = vld [vmem:[#allocation4 + $0x7c] ss:$48 sps:$4 sm:$0xff] (!%p8192_p9)   ;;  %v7010_v16 = vld [vmem:[#allocation4 + $0x70] ss:$48 sps:$4 sm:$0xff] (!%p8192_p9)   ;;  %v7013_v17 = vld [vmem:[#allocation4 + $0x78] ss:$48 sps:$4 sm:$0xff] (!%p8192_p9)  }
  0xfd   : > { %v505_v9 = vld [vmem:[%s8193_s29] sm:$0xf] (!%p8192_p9)  ;;  %v7018_v18 = vld [vmem:[#allocation4 + $0x24] ss:$48 sps:$4 sm:$0xff] (!%p8192_p9)   ;;  %v7021_v19 = vld [vmem:[#allocation4 + $0x2c] ss:$48 sps:$4 sm:$0xff] (!%p8192_p9)  }
  0xfe   : > { %721 = vmatpush1.bf16.msra.mxu0 (!%p8192_p9), %v7002_v7  ;;  %762 = vmatpush1.bf16.msra.mxu1 (!%p8192_p9), %v7003_v8  ;;  %v7016_v20 = vld [vmem:[#allocation4 + $0x20] ss:$48 sps:$4 sm:$0xff] (!%p8192_p9)   ;;  %v7019_v21 = vld [vmem:[#allocation4 + $0x28] ss:$48 sps:$4 sm:$0xff] (!%p8192_p9)   ;;  %v7024_v22 = vld [vmem:[#allocation4 + $0x84] ss:$48 sps:$4 sm:$0xff] (!%p8192_p9)  }
  0xff   : > { %800 = vmatprep.subr.bf16.mxu0 %v7006_v11  ;;  %841 = vmatprep.subr.bf16.mxu1 %v7009_v13  ;;  %v7027_v23 = vld [vmem:[#allocation4 + $0x8c] ss:$48 sps:$4 sm:$0xff]   ;;  %v7022_v24 = vld [vmem:[#allocation4 + $0x80] ss:$48 sps:$4 sm:$0xff]   ;;  %v7025_v25 = vld [vmem:[#allocation4 + $0x88] ss:$48 sps:$4 sm:$0xff]  }
 0x100   : > { %v7342_v26 = vmov 0.0   ;;  %v7719_v28 = vshrl.u32 %v534_v27, 7  ;;  %v530_v31 = vld [vmem:[#allocation6] sm:$0xff]  ;;  %v531_v8 = vld [vmem:[#allocation6 + $0x8] sm:$0xf] }
 0x101   : > { %5559 = vmatmul.mubr.msk.bf16.vlgmr.msra.gmra.mrb[0].mxu0 %vm714_vm0, %v505_v9  ;;  %5560 = vmatmul.mubr.msk.bf16.vlgmr.msra.gmra.mrb[0].mxu1 %vm714_vm0, %v505_v9  ;;  %988 = vst [vmem:[#allocation3] sm:$0xff] %v7342_v26  ;;  %989 = vst [vmem:[#allocation3 + $0x8] sm:$0xff] %v7342_v26 }
 0x102   : > { %801 = vmatpush1.bf16.msra.mxu0 %v7004_v10  ;;  %842 = vmatpush1.bf16.msra.mxu1 %v7007_v12  ;;  %990 = vst [vmem:[#allocation3 + $0x10] sm:$0xff] %v7342_v26  ;;  %991 = vst [vmem:[#allocation3 + $0x18] sm:$0xff] %v7342_v26  ;;  %v536_v29 = vsub.s32 0, %v7719_v28  ;;  %v544_v30 = vsub.s32 2, %v7719_v28  ;;  %v540_v32 = vsub.s32 1, %v7719_v28  ;;  %v548_v33 = vsub.s32 3, %v7719_v28 }
 0x103   : > { %802 = vmatprep.subr.bf16.mxu0 %v7012_v14  ;;  %843 = vmatprep.subr.bf16.mxu1 %v7015_v15  ;;  %992 = vst [vmem:[#allocation3 + $0x20] sm:$0xff] %v7342_v26  ;;  %993 = vst [vmem:[#allocation3 + $0x28] sm:$0xff] %v7342_v26  ;;  %v552_v44 = vsub.s32 4, %v7719_v28  ;;  %v560_v45 = vsub.s32 6, %v7719_v28  ;;  %v556_v50 = vsub.s32 5, %v7719_v28  ;;  %v564_v51 = vsub.s32 7, %v7719_v28 }
 0x104   : > { %832 = vmatprep.mubr.bf16.mxu0 %v7341_v2  ;;  %873 = vmatprep.mubr.bf16.mxu1 %v7341_v2  ;;  %994 = vst [vmem:[#allocation3 + $0x30] sm:$0xff] %v7342_v26  ;;  %v537_v34 = vrot.slane %v530_v31, %v536_v29  ;;  %v545_v35 = vrot.slane %v530_v31, %v544_v30 }
 0x105   : > { %v541_v36 = vrot.slane %v530_v31, %v540_v32  ;;  %v549_v37 = vrot.slane %v530_v31, %v548_v33  ;;  %v553_v58 = vrot.slane %v530_v31, %v552_v44  ;;  %v561_v59 = vrot.slane %v530_v31, %v560_v45 }
 0x106   : > { %803 = vmatpush1.bf16.msra.mxu0 %v7010_v16  ;;  %844 = vmatpush1.bf16.msra.mxu1 %v7013_v17  ;;  %v557_v60 = vrot.slane %v530_v31, %v556_v50  ;;  %v565_v61 = vrot.slane %v530_v31, %v564_v51  ;;  %v569_v15 = vrot.slane %v531_v8, %v536_v29 }
 0x107   : > { %882 = vmatprep.subr.bf16.mxu0 %v7018_v18  ;;  %923 = vmatprep.subr.bf16.mxu1 %v7021_v19  ;;  %v577_v16 = vrot.slane %v531_v8, %v544_v30  ;;  %v573_v17 = vrot.slane %v531_v8, %v540_v32  ;;  %v581_v18 = vrot.slane %v531_v8, %v548_v33 }
 0x109   : > { %5561 = vmatmul.mubr.msk.bf16.vlgmr.msra.gmra.mrb[4].mxu0 %vm714_vm0, %v505_v9  ;;  %5562 = vmatmul.mubr.msk.bf16.vlgmr.msra.gmra.mrb[4].mxu1 %vm714_vm0, %v505_v9 }
 0x10a   : > { %883 = vmatpush1.bf16.msra.mxu0 %v7016_v20  ;;  %924 = vmatpush1.bf16.msra.mxu1 %v7019_v21 }
 0x10b   : > { %884 = vmatprep.subr.bf16.mxu0 %v7024_v22  ;;  %925 = vmatprep.subr.bf16.mxu1 %v7027_v23 }
 0x10c   : > { %914 = vmatprep.mubr.bf16.mxu0 %v7341_v2  ;;  %955 = vmatprep.mubr.bf16.mxu1 %v7341_v2 }
 0x10e   : > { %885 = vmatpush1.bf16.msra.mxu0 %v7022_v24  ;;  %926 = vmatpush1.bf16.msra.mxu1 %v7025_v25 }
 0x111   : > { %5563 = vmatmul.mubr.msk.bf16.vlgmr.msra.gmra.mrb[8].mxu0 %vm714_vm0, %v505_v9  ;;  %5564 = vmatmul.mubr.msk.bf16.vlgmr.msra.gmra.mrb[8].mxu1 %vm714_vm0, %v505_v9 }
 0x1d4   : > { %v752_v38 = vpop.f32.mrb[0].mxu0  ;;  %v793_v39 = vpop.f32.mrb[0].mxu1 }
 0x1d5   : > { %v753_v40 = vadd.f32 %v752_v38, %v537_v34  ;;  %v794_v41 = vadd.f32 %v793_v39, %v545_v35  ;;  %v754_v42 = vpop.f32.mrb[1].mxu0  ;;  %v795_v43 = vpop.f32.mrb[1].mxu1 }
 0x1d6   : > { %v755_v46 = vadd.f32 %v754_v42, %v541_v36  ;;  %v796_v47 = vadd.f32 %v795_v43, %v549_v37  ;;  %v756_v48 = vpop.f32.mrb[2].mxu0  ;;  %v797_v49 = vpop.f32.mrb[2].mxu1 }
 0x1d7   : > { %v964_v52 = vmax.f32 %v753_v40, 0.0  ;;  %v966_v53 = vmax.f32 %v794_v41, 0.0  ;;  %v757_v54 = vpop.f32.mrb[3].mxu0  ;;  %v798_v55 = vpop.f32.mrb[3].mxu1 }
 0x1d8   : > { %v965_v56 = vmax.f32 %v755_v46, 0.0  ;;  %v967_v57 = vmax.f32 %v796_v47, 0.0 }
 0x1d9   : > { %976 = vst [vmem:[#allocation2] sm:$0xff] %v964_v52  ;;  %978 = vst [vmem:[#allocation2 + $0x10] sm:$0xff] %v966_v53 }
 0x1da   : > { %977 = vst [vmem:[#allocation2 + $0x8] sm:$0xff] %v965_v56  ;;  %979 = vst [vmem:[#allocation2 + $0x18] sm:$0xff] %v967_v57 }
 0x1dc   : > { %v834_v62 = vpop.f32.mrb[4].mxu0  ;;  %v875_v63 = vpop.f32.mrb[4].mxu1 }
 0x1dd   : > { %v835_v0 = vadd.f32 %v834_v62, %v553_v58  ;;  %v876_v1 = vadd.f32 %v875_v63, %v561_v59  ;;  %v836_v2 = vpop.f32.mrb[5].mxu0  ;;  %v877_v3 = vpop.f32.mrb[5].mxu1 }
 0x1de   : > { %v837_v4 = vadd.f32 %v836_v2, %v557_v60  ;;  %v878_v5 = vadd.f32 %v877_v3, %v565_v61  ;;  %v838_v6 = vpop.f32.mrb[6].mxu0  ;;  %v879_v7 = vpop.f32.mrb[6].mxu1 }
 0x1df   : > { %v968_v9 = vmax.f32 %v835_v0, 0.0  ;;  %v970_v10 = vmax.f32 %v876_v1, 0.0  ;;  %v839_v11 = vpop.f32.mrb[7].mxu0  ;;  %v880_v12 = vpop.f32.mrb[7].mxu1 }
 0x1e0   : > { %v969_v13 = vmax.f32 %v837_v4, 0.0  ;;  %v971_v14 = vmax.f32 %v878_v5, 0.0 }
 0x1e1   : > { %980 = vst [vmem:[#allocation2 + $0x20] sm:$0xff] %v968_v9  ;;  %982 = vst [vmem:[#allocation2 + $0x30] sm:$0xff] %v970_v10 }
 0x1e2   : > { %981 = vst [vmem:[#allocation2 + $0x28] sm:$0xff] %v969_v13  ;;  %983 = vst [vmem:[#allocation2 + $0x38] sm:$0xff] %v971_v14 }
 0x1e4   : > { %v916_v19 = vpop.f32.mrb[8].mxu0  ;;  %v957_v20 = vpop.f32.mrb[8].mxu1 }
 0x1e5   : > { %v917_v21 = vadd.f32 %v916_v19, %v569_v15  ;;  %v958_v22 = vadd.f32 %v957_v20, %v577_v16  ;;  %v918_v23 = vpop.f32.mrb[9].mxu0  ;;  %v959_v24 = vpop.f32.mrb[9].mxu1 }
 0x1e6   : > { %v919_v25 = vadd.f32 %v918_v23, %v573_v17  ;;  %v960_v26 = vadd.f32 %v959_v24, %v581_v18  ;;  %v920_v27 = vpop.f32.mrb[10].mxu0  ;;  %v961_v28 = vpop.f32.mrb[10].mxu1 }
 0x1e7   : > { %v972_v31 = vmax.f32 %v917_v21, 0.0  ;;  %v974_v34 = vmax.f32 %v958_v22, 0.0  ;;  %v921_v35 = vpop.f32.mrb[11].mxu0  ;;  %v962_v36 = vpop.f32.mrb[11].mxu1 }
 0x1e8   : > { %v973_v29 = vmax.f32 %v919_v25, 0.0  ;;  %v975_v30 = vmax.f32 %v960_v26, 0.0 }
 0x1e9   : > { %984 = vst [vmem:[#allocation2 + $0x40] sm:$0xff] %v972_v31  ;;  %986 = vst [vmem:[#allocation2 + $0x50] sm:$0xff] %v974_v34 }
 0x1ea   : > { %985 = vst [vmem:[#allocation2 + $0x48] sm:$0xff] %v973_v29  ;;  %987 = vst [vmem:[#allocation2 + $0x58] sm:$0xff] %v975_v30 }
 0x1eb PF: > { %v996_v32 = vld [vmem:[%s7688_s27 + $0x8] sm:$0xff]  ;;  %v998_v33 = vld [vmem:[%s7688_s27 + $0x18] sm:$0xff]  ;;  %v995_v37 = vld [vmem:[%s7688_s27] sm:$0xff]  ;;  %p5565_p11 = scmp.ne.s32.totalorder %s7412_s13, 3 }
 0x1ec   : > { %v5641_v38 = vunpack.c.l.s8.bf16 %v996_v32  ;;  %v5645_v39 = vunpack.c.h.s8.bf16 %v996_v32  ;;  %v6025_v40 = vunpack.c.l.s8.bf16 %v998_v33  ;;  %v6029_v41 = vunpack.c.h.s8.bf16 %v998_v33  ;;  %v997_v42 = vld [vmem:[%s7688_s27 + $0x10] sm:$0xff]  ;;  %v1000_v45 = vld [vmem:[%s7688_s27 + $0x28] sm:$0xff]  ;;  %v1002_v46 = vld [vmem:[%s7688_s27 + $0x38] sm:$0xff]  ;;  %s8194_s0 = sld [smem:[#allocation25_spill]] (!%p5565_p11) }
 0x1ed   : > { %v5643_v43 = vunpack.c.l.s8.bf16 %v995_v37  ;;  %v6027_v44 = vunpack.c.l.s8.bf16 %v997_v42  ;;  %v5647_v47 = vunpack.c.h.s8.bf16 %v995_v37  ;;  %v6031_v48 = vunpack.c.h.s8.bf16 %v997_v42  ;;  %v999_v51 = vld [vmem:[%s7688_s27 + $0x20] sm:$0xff]  ;;  %v1001_v52 = vld [vmem:[%s7688_s27 + $0x30] sm:$0xff]  ;;  %v1004_v57 = vld [vmem:[%s7688_s27 + $0x48] sm:$0xff] }
 0x1ee   : > { %5642 = vmatprep.subr.bf16.mxu0 %v5641_v38  ;;  %6026 = vmatprep.subr.bf16.mxu1 %v6025_v40  ;;  %v5649_v49 = vunpack.c.l.s8.bf16 %v1000_v45  ;;  %v6033_v50 = vunpack.c.l.s8.bf16 %v1002_v46  ;;  %v5651_v53 = vunpack.c.l.s8.bf16 %v999_v51  ;;  %v6035_v54 = vunpack.c.l.s8.bf16 %v1001_v52  ;;  %v1006_v58 = vld [vmem:[%s7688_s27 + $0x58] sm:$0xff]  ;;  %v2724_v59 = vld [vmem:[#allocation2 + $0x8] sm:$0xff]  ;;  %v1005_v1 = vld [vmem:[%s7688_s27 + $0x50] sm:$0xff] }
 0x1ef   : > { %5644 = vmatpush1.bf16.msra.mxu0 %v5643_v43  ;;  %6028 = vmatpush1.bf16.msra.mxu1 %v6027_v44  ;;  %v5653_v55 = vunpack.c.h.s8.bf16 %v1000_v45  ;;  %v6037_v56 = vunpack.c.h.s8.bf16 %v1002_v46  ;;  %v5655_v60 = vunpack.c.h.s8.bf16 %v999_v51  ;;  %v6039_v61 = vunpack.c.h.s8.bf16 %v1001_v52  ;;  %v1003_v0 = vld [vmem:[%s7688_s27 + $0x40] sm:$0xff]  ;;  %v1008_v6 = vld [vmem:[%s7688_s27 + $0x68] sm:$0xff]  ;;  %v1010_v7 = vld [vmem:[%s7688_s27 + $0x78] sm:$0xff] }
 0x1f0   : > { %5646 = vmatprep.subr.bf16.mxu0 %v5645_v39  ;;  %6030 = vmatprep.subr.bf16.mxu1 %v6029_v41  ;;  %v5657_v62 = vunpack.c.l.s8.bf16 %v1004_v57  ;;  %v6041_v63 = vunpack.c.l.s8.bf16 %v1006_v58  ;;  %v5659_v2 = vunpack.c.l.s8.bf16 %v1003_v0  ;;  %v6043_v3 = vunpack.c.l.s8.bf16 %v1005_v1  ;;  %v1007_v12 = vld [vmem:[%s7688_s27 + $0x60] sm:$0xff]  ;;  %v1009_v13 = vld [vmem:[%s7688_s27 + $0x70] sm:$0xff]  ;;  %v1012_v18 = vld [vmem:[%s7688_s27 + $0x88] sm:$0xff] }
 0x1f1   : > { %2799 = vmatprep.mubr.f32.mxu0 %v2724_v59  ;;  %3225 = vmatprep.mubr.f32.mxu1 %v2724_v59  ;;  %v5661_v4 = vunpack.c.h.s8.bf16 %v1004_v57  ;;  %v6045_v5 = vunpack.c.h.s8.bf16 %v1006_v58  ;;  %v5663_v8 = vunpack.c.h.s8.bf16 %v1003_v0  ;;  %v6047_v9 = vunpack.c.h.s8.bf16 %v1005_v1  ;;  %v1014_v19 = vld [vmem:[%s7688_s27 + $0x98] sm:$0xff]  ;;  %v1011_v24 = vld [vmem:[%s7688_s27 + $0x80] sm:$0xff]  ;;  %v1013_v25 = vld [vmem:[%s7688_s27 + $0x90] sm:$0xff] }
 0x1f2   : > { %v5665_v10 = vunpack.c.l.s8.bf16 %v1008_v6  ;;  %v6049_v11 = vunpack.c.l.s8.bf16 %v1010_v7  ;;  %v5667_v14 = vunpack.c.l.s8.bf16 %v1007_v12  ;;  %v6051_v15 = vunpack.c.l.s8.bf16 %v1009_v13  ;;  %v1016_v34 = vld [vmem:[%s7688_s27 + $0xa8] sm:$0xff]  ;;  %v1018_v35 = vld [vmem:[%s7688_s27 + $0xb8] sm:$0xff]  ;;  %v1015_v33 = vld [vmem:[%s7688_s27 + $0xa0] sm:$0xff] }
 0x1f3   : > { %5648 = vmatpush1.bf16.msra.mxu0 %v5647_v47  ;;  %6032 = vmatpush1.bf16.msra.mxu1 %v6031_v48  ;;  %v5669_v16 = vunpack.c.h.s8.bf16 %v1008_v6  ;;  %v6053_v17 = vunpack.c.h.s8.bf16 %v1010_v7  ;;  %v5671_v20 = vunpack.c.h.s8.bf16 %v1007_v12  ;;  %v6055_v21 = vunpack.c.h.s8.bf16 %v1009_v13  ;;  %v1017_v37 = vld [vmem:[%s7688_s27 + $0xb0] sm:$0xff]  ;;  %v1020_v42 = vld [vmem:[%s7688_s27 + $0xc8] sm:$0xff]  ;;  %v1022_v43 = vld [vmem:[%s7688_s27 + $0xd8] sm:$0xff] }
 0x1f4   : > { %5650 = vmatprep.subr.bf16.mxu0 %v5649_v49  ;;  %6034 = vmatprep.subr.bf16.mxu1 %v6033_v50  ;;  %v5673_v22 = vunpack.c.l.s8.bf16 %v1012_v18  ;;  %v6057_v23 = vunpack.c.l.s8.bf16 %v1014_v19  ;;  %v5675_v26 = vunpack.c.l.s8.bf16 %v1011_v24  ;;  %v6059_v27 = vunpack.c.l.s8.bf16 %v1013_v25  ;;  %v1019_v48 = vld [vmem:[%s7688_s27 + $0xc0] sm:$0xff]  ;;  %v1021_v49 = vld [vmem:[%s7688_s27 + $0xd0] sm:$0xff] }
 0x1f5   : > { %v5677_v28 = vunpack.c.h.s8.bf16 %v1012_v18  ;;  %v6061_v31 = vunpack.c.h.s8.bf16 %v1014_v19  ;;  %v5679_v36 = vunpack.c.h.s8.bf16 %v1011_v24  ;;  %v6063_v29 = vunpack.c.h.s8.bf16 %v1013_v25 }
 0x1f6   : > { %v5681_v30 = vunpack.c.l.s8.bf16 %v1016_v34  ;;  %v6065_v32 = vunpack.c.l.s8.bf16 %v1018_v35  ;;  %v5683_v38 = vunpack.c.l.s8.bf16 %v1015_v33  ;;  %v6067_v39 = vunpack.c.l.s8.bf16 %v1017_v37 }
 0x1f7   : > { %5652 = vmatpush1.bf16.msra.mxu0 %v5651_v53  ;;  %6036 = vmatpush1.bf16.msra.mxu1 %v6035_v54  ;;  %v5685_v40 = vunpack.c.h.s8.bf16 %v1016_v34  ;;  %v6069_v41 = vunpack.c.h.s8.bf16 %v1018_v35  ;;  %v5687_v44 = vunpack.c.h.s8.bf16 %v1015_v33  ;;  %v6071_v45 = vunpack.c.h.s8.bf16 %v1017_v37  ;;  %v1024_v54 = vld [vmem:[%s7688_s27 + $0xe8] sm:$0xff] }
 0x1f8   : > { %5654 = vmatprep.subr.bf16.mxu0 %v5653_v55  ;;  %6038 = vmatprep.subr.bf16.mxu1 %v6037_v56  ;;  %v5689_v46 = vunpack.c.l.s8.bf16 %v1020_v42  ;;  %v6073_v47 = vunpack.c.l.s8.bf16 %v1022_v43  ;;  %v5691_v50 = vunpack.c.l.s8.bf16 %v1019_v48  ;;  %v6075_v51 = vunpack.c.l.s8.bf16 %v1021_v49  ;;  %v1026_v55 = vld [vmem:[%s7688_s27 + $0xf8] sm:$0xff] }
 0x1f9   : > { %v5693_v52 = vunpack.c.h.s8.bf16 %v1020_v42  ;;  %v6077_v53 = vunpack.c.h.s8.bf16 %v1022_v43  ;;  %v5695_v56 = vunpack.c.h.s8.bf16 %v1019_v48  ;;  %v6079_v57 = vunpack.c.h.s8.bf16 %v1021_v49 }
 0x1fa   : > { %v5697_v58 = vunpack.c.l.s8.bf16 %v1024_v54  ;;  %v6081_v59 = vunpack.c.l.s8.bf16 %v1026_v55  ;;  %v5701_v0 = vunpack.c.h.s8.bf16 %v1024_v54  ;;  %v6085_v1 = vunpack.c.h.s8.bf16 %v1026_v55 }
 0x1fb   : > { %5656 = vmatpush1.bf16.msra.mxu0 %v5655_v60  ;;  %6040 = vmatpush1.bf16.msra.mxu1 %v6039_v61  ;;  %v1023_v60 = vld [vmem:[%s7688_s27 + $0xe0] sm:$0xff]  ;;  %v1025_v61 = vld [vmem:[%s7688_s27 + $0xf0] sm:$0xff] }
 0x1fc   : > { %5658 = vmatprep.subr.bf16.mxu0 %v5657_v62  ;;  %6042 = vmatprep.subr.bf16.mxu1 %v6041_v63  ;;  %v5699_v62 = vunpack.c.l.s8.bf16 %v1023_v60  ;;  %v6083_v63 = vunpack.c.l.s8.bf16 %v1025_v61 }
 0x1ff   : > { %5660 = vmatpush1.bf16.msra.mxu0 %v5659_v2  ;;  %6044 = vmatpush1.bf16.msra.mxu1 %v6043_v3  ;;  %v1028_v2 = vld [vmem:[%s7688_s27 + $0x108] sm:$0xff]  ;;  %v1030_v3 = vld [vmem:[%s7688_s27 + $0x118] sm:$0xff] }
 0x200   : > { %5662 = vmatprep.subr.bf16.mxu0 %v5661_v4  ;;  %6046 = vmatprep.subr.bf16.mxu1 %v6045_v5  ;;  %v5703_v4 = vunpack.c.h.s8.bf16 %v1023_v60  ;;  %v6087_v5 = vunpack.c.h.s8.bf16 %v1025_v61  ;;  %v5705_v6 = vunpack.c.l.s8.bf16 %v1028_v2  ;;  %v6089_v7 = vunpack.c.l.s8.bf16 %v1030_v3 }
 0x201   : > { %v5709_v13 = vunpack.c.h.s8.bf16 %v1028_v2 }
 0x203   : > { %5664 = vmatpush1.bf16.msra.mxu0 %v5663_v8  ;;  %6048 = vmatpush1.bf16.msra.mxu1 %v6047_v9  ;;  %v1027_v8 = vld [vmem:[%s7688_s27 + $0x100] sm:$0xff]  ;;  %v1029_v9 = vld [vmem:[%s7688_s27 + $0x110] sm:$0xff] }
 0x204   : > { %5666 = vmatprep.subr.bf16.mxu0 %v5665_v10  ;;  %6050 = vmatprep.subr.bf16.mxu1 %v6049_v11  ;;  %v2723_v10 = vld [vmem:[#allocation2] sm:$0xff]  ;;  %v5707_v11 = vunpack.c.l.s8.bf16 %v1027_v8  ;;  %v6091_v12 = vunpack.c.l.s8.bf16 %v1029_v9  ;;  %v5711_v18 = vunpack.c.h.s8.bf16 %v1027_v8  ;;  %v6095_v19 = vunpack.c.h.s8.bf16 %v1029_v9 }
 0x207   : > { %5668 = vmatpush1.bf16.msra.mxu0 %v5667_v14  ;;  %6052 = vmatpush1.bf16.msra.mxu1 %v6051_v15  ;;  %v6093_v14 = vunpack.c.h.s8.bf16 %v1030_v3  ;;  %v1032_v15 = vld [vmem:[%s7688_s27 + $0x128] sm:$0xff] }
 0x208   : > { %5670 = vmatprep.subr.bf16.mxu0 %v5669_v16  ;;  %6054 = vmatprep.subr.bf16.mxu1 %v6053_v17  ;;  %v1034_v16 = vld [vmem:[%s7688_s27 + $0x138] sm:$0xff] }
 0x209   : > { %v2726_v17 = vld [vmem:[#allocation2 + $0x18] sm:$0xff] }
 0x20b   : > { %5672 = vmatpush1.bf16.msra.mxu0 %v5671_v20  ;;  %6056 = vmatpush1.bf16.msra.mxu1 %v6055_v21  ;;  %v5713_v20 = vunpack.c.l.s8.bf16 %v1032_v15  ;;  %v6097_v21 = vunpack.c.l.s8.bf16 %v1034_v16 }
 0x20c   : > { %5674 = vmatprep.subr.bf16.mxu0 %v5673_v22  ;;  %6058 = vmatprep.subr.bf16.mxu1 %v6057_v23  ;;  %v1031_v22 = vld [vmem:[%s7688_s27 + $0x120] sm:$0xff]  ;;  %v1033_v23 = vld [vmem:[%s7688_s27 + $0x130] sm:$0xff] }
 0x20d   : > { %v5715_v24 = vunpack.c.l.s8.bf16 %v1031_v22  ;;  %v6099_v25 = vunpack.c.l.s8.bf16 %v1033_v23  ;;  %v5719_v34 = vunpack.c.h.s8.bf16 %v1031_v22  ;;  %v6103_v35 = vunpack.c.h.s8.bf16 %v1033_v23 }
 0x20f   : > { %5676 = vmatpush1.bf16.msra.mxu0 %v5675_v26  ;;  %6060 = vmatpush1.bf16.msra.mxu1 %v6059_v27  ;;  %v5717_v26 = vunpack.c.h.s8.bf16 %v1032_v15  ;;  %v6101_v27 = vunpack.c.h.s8.bf16 %v1034_v16 }
 0x210   : > { %5678 = vmatprep.subr.bf16.mxu0 %v5677_v28  ;;  %6062 = vmatprep.subr.bf16.mxu1 %v6061_v31  ;;  %v1036_v28 = vld [vmem:[%s7688_s27 + $0x148] sm:$0xff]  ;;  %v1038_v31 = vld [vmem:[%s7688_s27 + $0x158] sm:$0xff] }
 0x213   : > { %5680 = vmatpush1.bf16.msra.mxu0 %v5679_v36  ;;  %6064 = vmatpush1.bf16.msra.mxu1 %v6063_v29  ;;  %v5721_v36 = vunpack.c.l.s8.bf16 %v1036_v28  ;;  %v6105_v29 = vunpack.c.l.s8.bf16 %v1038_v31 }
 0x214   : > { %5682 = vmatprep.subr.bf16.mxu0 %v5681_v30  ;;  %6066 = vmatprep.subr.bf16.mxu1 %v6065_v32  ;;  %v1035_v30 = vld [vmem:[%s7688_s27 + $0x140] sm:$0xff]  ;;  %v1037_v32 = vld [vmem:[%s7688_s27 + $0x150] sm:$0xff] }
 0x215   : > { %v5723_v33 = vunpack.c.l.s8.bf16 %v1035_v30  ;;  %v6107_v37 = vunpack.c.l.s8.bf16 %v1037_v32  ;;  %v5727_v42 = vunpack.c.h.s8.bf16 %v1035_v30  ;;  %v6111_v43 = vunpack.c.h.s8.bf16 %v1037_v32 }
 0x217   : > { %5684 = vmatpush1.bf16.msra.mxu0 %v5683_v38  ;;  %6068 = vmatpush1.bf16.msra.mxu1 %v6067_v39  ;;  %v5725_v38 = vunpack.c.h.s8.bf16 %v1036_v28  ;;  %v6109_v39 = vunpack.c.h.s8.bf16 %v1038_v31 }
 0x218   : > { %5686 = vmatprep.subr.bf16.mxu0 %v5685_v40  ;;  %6070 = vmatprep.subr.bf16.mxu1 %v6069_v41  ;;  %v1040_v40 = vld [vmem:[%s7688_s27 + $0x168] sm:$0xff]  ;;  %v1042_v41 = vld [vmem:[%s7688_s27 + $0x178] sm:$0xff] }
 0x21b   : > { %5688 = vmatpush1.bf16.msra.mxu0 %v5687_v44  ;;  %6072 = vmatpush1.bf16.msra.mxu1 %v6071_v45  ;;  %v5729_v44 = vunpack.c.l.s8.bf16 %v1040_v40  ;;  %v6113_v45 = vunpack.c.l.s8.bf16 %v1042_v41 }
 0x21c   : > { %5690 = vmatprep.subr.bf16.mxu0 %v5689_v46  ;;  %6074 = vmatprep.subr.bf16.mxu1 %v6073_v47  ;;  %v1039_v46 = vld [vmem:[%s7688_s27 + $0x160] sm:$0xff]  ;;  %v1041_v47 = vld [vmem:[%s7688_s27 + $0x170] sm:$0xff] }
 0x21d   : > { %v5731_v48 = vunpack.c.l.s8.bf16 %v1039_v46  ;;  %v6115_v49 = vunpack.c.l.s8.bf16 %v1041_v47  ;;  %v5735_v54 = vunpack.c.h.s8.bf16 %v1039_v46  ;;  %v6119_v55 = vunpack.c.h.s8.bf16 %v1041_v47 }
 0x21f   : > { %5692 = vmatpush1.bf16.msra.mxu0 %v5691_v50  ;;  %6076 = vmatpush1.bf16.msra.mxu1 %v6075_v51  ;;  %v5733_v50 = vunpack.c.h.s8.bf16 %v1040_v40  ;;  %v6117_v51 = vunpack.c.h.s8.bf16 %v1042_v41 }
 0x220   : > { %5694 = vmatprep.subr.bf16.mxu0 %v5693_v52  ;;  %6078 = vmatprep.subr.bf16.mxu1 %v6077_v53  ;;  %v1044_v52 = vld [vmem:[%s7688_s27 + $0x188] sm:$0xff]  ;;  %v1046_v53 = vld [vmem:[%s7688_s27 + $0x198] sm:$0xff] }
 0x223   : > { %5696 = vmatpush1.bf16.msra.mxu0 %v5695_v56  ;;  %6080 = vmatpush1.bf16.msra.mxu1 %v6079_v57  ;;  %v5737_v56 = vunpack.c.l.s8.bf16 %v1044_v52  ;;  %v6121_v57 = vunpack.c.l.s8.bf16 %v1046_v53 }
 0x224   : > { %5698 = vmatprep.subr.bf16.mxu0 %v5697_v58  ;;  %6082 = vmatprep.subr.bf16.mxu1 %v6081_v59  ;;  %v1043_v58 = vld [vmem:[%s7688_s27 + $0x180] sm:$0xff]  ;;  %v1045_v59 = vld [vmem:[%s7688_s27 + $0x190] sm:$0xff] }
 0x225   : > { %v5739_v60 = vunpack.c.l.s8.bf16 %v1043_v58  ;;  %v6123_v61 = vunpack.c.l.s8.bf16 %v1045_v59  ;;  %v5743_v2 = vunpack.c.h.s8.bf16 %v1043_v58  ;;  %v6127_v3 = vunpack.c.h.s8.bf16 %v1045_v59 }
 0x227   : > { %5700 = vmatpush1.bf16.msra.mxu0 %v5699_v62  ;;  %6084 = vmatpush1.bf16.msra.mxu1 %v6083_v63  ;;  %v5741_v62 = vunpack.c.h.s8.bf16 %v1044_v52  ;;  %v6125_v63 = vunpack.c.h.s8.bf16 %v1046_v53 }
 0x228   : > { %5702 = vmatprep.subr.bf16.mxu0 %v5701_v0  ;;  %6086 = vmatprep.subr.bf16.mxu1 %v6085_v1  ;;  %v1048_v0 = vld [vmem:[%s7688_s27 + $0x1a8] sm:$0xff]  ;;  %v1050_v1 = vld [vmem:[%s7688_s27 + $0x1b8] sm:$0xff] }
 0x22b   : > { %5704 = vmatpush1.bf16.msra.mxu0 %v5703_v4  ;;  %6088 = vmatpush1.bf16.msra.mxu1 %v6087_v5  ;;  %v5745_v4 = vunpack.c.l.s8.bf16 %v1048_v0  ;;  %v6129_v5 = vunpack.c.l.s8.bf16 %v1050_v1 }
 0x22c   : > { %5706 = vmatprep.subr.bf16.mxu0 %v5705_v6  ;;  %6090 = vmatprep.subr.bf16.mxu1 %v6089_v7  ;;  %v1047_v6 = vld [vmem:[%s7688_s27 + $0x1a0] sm:$0xff]  ;;  %v1049_v7 = vld [vmem:[%s7688_s27 + $0x1b0] sm:$0xff] }
 0x22d   : > { %v5747_v8 = vunpack.c.l.s8.bf16 %v1047_v6  ;;  %v6131_v9 = vunpack.c.l.s8.bf16 %v1049_v7  ;;  %v6135_v15 = vunpack.c.h.s8.bf16 %v1049_v7 }
 0x22e   : > { %2800 = vmatmul.mubr.f32.vlgmr.msra.gmra.mrb[0].mxu0 %v2723_v10  ;;  %3226 = vmatmul.mubr.f32.vlgmr.msra.gmra.mrb[0].mxu1 %v2723_v10  ;;  %v5749_v10 = vunpack.c.h.s8.bf16 %v1048_v0 }
 0x22f   : > { %5708 = vmatpush1.bf16.msra.mxu0 %v5707_v11  ;;  %6092 = vmatpush1.bf16.msra.mxu1 %v6091_v12  ;;  %v6133_v11 = vunpack.c.h.s8.bf16 %v1050_v1  ;;  %v1052_v12 = vld [vmem:[%s7688_s27 + $0x1c8] sm:$0xff] }
 0x230   : > { %5710 = vmatprep.subr.bf16.mxu0 %v5709_v13  ;;  %6094 = vmatprep.subr.bf16.mxu1 %v6093_v14  ;;  %v1054_v13 = vld [vmem:[%s7688_s27 + $0x1d8] sm:$0xff]  ;;  %v5751_v14 = vunpack.c.h.s8.bf16 %v1047_v6  ;;  %v5753_v16 = vunpack.c.l.s8.bf16 %v1052_v12  ;;  %v5757_v22 = vunpack.c.h.s8.bf16 %v1052_v12 }
 0x231   : > { %2870 = vmatprep.mubr.f32.mxu0 %v2726_v17  ;;  %3296 = vmatprep.mubr.f32.mxu1 %v2726_v17  ;;  %v6137_v17 = vunpack.c.l.s8.bf16 %v1054_v13  ;;  %v6141_v23 = vunpack.c.h.s8.bf16 %v1054_v13 }
 0x233   : > { %5712 = vmatpush1.bf16.msra.mxu0 %v5711_v18  ;;  %6096 = vmatpush1.bf16.msra.mxu1 %v6095_v19  ;;  %v1051_v18 = vld [vmem:[%s7688_s27 + $0x1c0] sm:$0xff]  ;;  %v1053_v19 = vld [vmem:[%s7688_s27 + $0x1d0] sm:$0xff] }
 0x234   : > { %5714 = vmatprep.subr.bf16.mxu0 %v5713_v20  ;;  %6098 = vmatprep.subr.bf16.mxu1 %v6097_v21  ;;  %v5755_v20 = vunpack.c.l.s8.bf16 %v1051_v18  ;;  %v6139_v21 = vunpack.c.l.s8.bf16 %v1053_v19 }
 0x237   : > { %5716 = vmatpush1.bf16.msra.mxu0 %v5715_v24  ;;  %6100 = vmatpush1.bf16.msra.mxu1 %v6099_v25  ;;  %v1056_v24 = vld [vmem:[%s7688_s27 + $0x1e8] sm:$0xff]  ;;  %v1058_v25 = vld [vmem:[%s7688_s27 + $0x1f8] sm:$0xff] }
 0x238   : > { %5718 = vmatprep.subr.bf16.mxu0 %v5717_v26  ;;  %6102 = vmatprep.subr.bf16.mxu1 %v6101_v27  ;;  %v5759_v26 = vunpack.c.h.s8.bf16 %v1051_v18  ;;  %v6143_v27 = vunpack.c.h.s8.bf16 %v1053_v19  ;;  %v5761_v28 = vunpack.c.l.s8.bf16 %v1056_v24  ;;  %v6145_v31 = vunpack.c.l.s8.bf16 %v1058_v25 }
 0x239   : > { %v5765_v30 = vunpack.c.h.s8.bf16 %v1056_v24  ;;  %v6149_v32 = vunpack.c.h.s8.bf16 %v1058_v25 }
 0x23b   : > { %5720 = vmatpush1.bf16.msra.mxu0 %v5719_v34  ;;  %6104 = vmatpush1.bf16.msra.mxu1 %v6103_v35  ;;  %v1055_v34 = vld [vmem:[%s7688_s27 + $0x1e0] sm:$0xff]  ;;  %v1057_v35 = vld [vmem:[%s7688_s27 + $0x1f0] sm:$0xff] }
 0x23c   : > { %5722 = vmatprep.subr.bf16.mxu0 %v5721_v36  ;;  %6106 = vmatprep.subr.bf16.mxu1 %v6105_v29  ;;  %v5763_v36 = vunpack.c.l.s8.bf16 %v1055_v34  ;;  %v6147_v29 = vunpack.c.l.s8.bf16 %v1057_v35 }
 0x23f   : > { %5724 = vmatpush1.bf16.msra.mxu0 %v5723_v33  ;;  %6108 = vmatpush1.bf16.msra.mxu1 %v6107_v37  ;;  %v1060_v33 = vld [vmem:[%s7688_s27 + $0x208] sm:$0xff]  ;;  %v1062_v37 = vld [vmem:[%s7688_s27 + $0x218] sm:$0xff] }
 0x240   : > { %5726 = vmatprep.subr.bf16.mxu0 %v5725_v38  ;;  %6110 = vmatprep.subr.bf16.mxu1 %v6109_v39  ;;  %v5767_v38 = vunpack.c.h.s8.bf16 %v1055_v34  ;;  %v6151_v39 = vunpack.c.h.s8.bf16 %v1057_v35  ;;  %v5769_v40 = vunpack.c.l.s8.bf16 %v1060_v33  ;;  %v6153_v41 = vunpack.c.l.s8.bf16 %v1062_v37 }
 0x241   : > { %v5773_v47 = vunpack.c.h.s8.bf16 %v1060_v33 }
 0x243   : > { %5728 = vmatpush1.bf16.msra.mxu0 %v5727_v42  ;;  %6112 = vmatpush1.bf16.msra.mxu1 %v6111_v43  ;;  %v1059_v42 = vld [vmem:[%s7688_s27 + $0x200] sm:$0xff]  ;;  %v1061_v43 = vld [vmem:[%s7688_s27 + $0x210] sm:$0xff] }
 0x244   : > { %5730 = vmatprep.subr.bf16.mxu0 %v5729_v44  ;;  %6114 = vmatprep.subr.bf16.mxu1 %v6113_v45  ;;  %v2725_v44 = vld [vmem:[#allocation2 + $0x10] sm:$0xff]  ;;  %v5771_v45 = vunpack.c.l.s8.bf16 %v1059_v42  ;;  %v6155_v46 = vunpack.c.l.s8.bf16 %v1061_v43  ;;  %v5775_v52 = vunpack.c.h.s8.bf16 %v1059_v42  ;;  %v6159_v53 = vunpack.c.h.s8.bf16 %v1061_v43 }
 0x247   : > { %5732 = vmatpush1.bf16.msra.mxu0 %v5731_v48  ;;  %6116 = vmatpush1.bf16.msra.mxu1 %v6115_v49  ;;  %v6157_v48 = vunpack.c.h.s8.bf16 %v1062_v37  ;;  %v1064_v49 = vld [vmem:[%s7688_s27 + $0x228] sm:$0xff] }
 0x248   : > { %5734 = vmatprep.subr.bf16.mxu0 %v5733_v50  ;;  %6118 = vmatprep.subr.bf16.mxu1 %v6117_v51  ;;  %v1066_v50 = vld [vmem:[%s7688_s27 + $0x238] sm:$0xff]  ;;  %v2728_v51 = vld [vmem:[#allocation2 + $0x28] sm:$0xff] }
 0x24b   : > { %5736 = vmatpush1.bf16.msra.mxu0 %v5735_v54  ;;  %6120 = vmatpush1.bf16.msra.mxu1 %v6119_v55  ;;  %v5777_v54 = vunpack.c.l.s8.bf16 %v1064_v49  ;;  %v6161_v55 = vunpack.c.l.s8.bf16 %v1066_v50 }
 0x24c   : > { %5738 = vmatprep.subr.bf16.mxu0 %v5737_v56  ;;  %6122 = vmatprep.subr.bf16.mxu1 %v6121_v57  ;;  %v1063_v56 = vld [vmem:[%s7688_s27 + $0x220] sm:$0xff]  ;;  %v1065_v57 = vld [vmem:[%s7688_s27 + $0x230] sm:$0xff] }
 0x24d   : > { %v5779_v58 = vunpack.c.l.s8.bf16 %v1063_v56  ;;  %v6163_v59 = vunpack.c.l.s8.bf16 %v1065_v57  ;;  %v5783_v0 = vunpack.c.h.s8.bf16 %v1063_v56  ;;  %v6167_v1 = vunpack.c.h.s8.bf16 %v1065_v57 }
 0x24f   : > { %5740 = vmatpush1.bf16.msra.mxu0 %v5739_v60  ;;  %6124 = vmatpush1.bf16.msra.mxu1 %v6123_v61  ;;  %v5781_v60 = vunpack.c.h.s8.bf16 %v1064_v49  ;;  %v6165_v61 = vunpack.c.h.s8.bf16 %v1066_v50 }
 0x250   : > { %5742 = vmatprep.subr.bf16.mxu0 %v5741_v62  ;;  %6126 = vmatprep.subr.bf16.mxu1 %v6125_v63  ;;  %v1068_v62 = vld [vmem:[%s7688_s27 + $0x248] sm:$0xff]  ;;  %v1070_v63 = vld [vmem:[%s7688_s27 + $0x258] sm:$0xff] }
 0x253   : > { %5744 = vmatpush1.bf16.msra.mxu0 %v5743_v2  ;;  %6128 = vmatpush1.bf16.msra.mxu1 %v6127_v3  ;;  %v5785_v2 = vunpack.c.l.s8.bf16 %v1068_v62  ;;  %v6169_v3 = vunpack.c.l.s8.bf16 %v1070_v63 }
 0x254   : > { %5746 = vmatprep.subr.bf16.mxu0 %v5745_v4  ;;  %6130 = vmatprep.subr.bf16.mxu1 %v6129_v5  ;;  %v1067_v4 = vld [vmem:[%s7688_s27 + $0x240] sm:$0xff]  ;;  %v1069_v5 = vld [vmem:[%s7688_s27 + $0x250] sm:$0xff] }
 0x255   : > { %v5787_v6 = vunpack.c.l.s8.bf16 %v1067_v4  ;;  %v6171_v7 = vunpack.c.l.s8.bf16 %v1069_v5  ;;  %v5791_v12 = vunpack.c.h.s8.bf16 %v1067_v4  ;;  %v6175_v13 = vunpack.c.h.s8.bf16 %v1069_v5 }
 0x257   : > { %5748 = vmatpush1.bf16.msra.mxu0 %v5747_v8  ;;  %6132 = vmatpush1.bf16.msra.mxu1 %v6131_v9  ;;  %v5789_v8 = vunpack.c.h.s8.bf16 %v1068_v62  ;;  %v6173_v9 = vunpack.c.h.s8.bf16 %v1070_v63 }
 0x258   : > { %5750 = vmatprep.subr.bf16.mxu0 %v5749_v10  ;;  %6134 = vmatprep.subr.bf16.mxu1 %v6133_v11  ;;  %v1072_v10 = vld [vmem:[%s7688_s27 + $0x268] sm:$0xff]  ;;  %v1074_v11 = vld [vmem:[%s7688_s27 + $0x278] sm:$0xff] }
 0x25b   : > { %5752 = vmatpush1.bf16.msra.mxu0 %v5751_v14  ;;  %6136 = vmatpush1.bf16.msra.mxu1 %v6135_v15  ;;  %v5793_v14 = vunpack.c.l.s8.bf16 %v1072_v10  ;;  %v6177_v15 = vunpack.c.l.s8.bf16 %v1074_v11 }
 0x25c   : > { %5754 = vmatprep.subr.bf16.mxu0 %v5753_v16  ;;  %6138 = vmatprep.subr.bf16.mxu1 %v6137_v17  ;;  %v1071_v16 = vld [vmem:[%s7688_s27 + $0x260] sm:$0xff]  ;;  %v1073_v17 = vld [vmem:[%s7688_s27 + $0x270] sm:$0xff] }
 0x25d   : > { %v5795_v18 = vunpack.c.l.s8.bf16 %v1071_v16  ;;  %v6179_v19 = vunpack.c.l.s8.bf16 %v1073_v17  ;;  %v5799_v24 = vunpack.c.h.s8.bf16 %v1071_v16  ;;  %v6183_v25 = vunpack.c.h.s8.bf16 %v1073_v17 }
 0x25f   : > { %5756 = vmatpush1.bf16.msra.mxu0 %v5755_v20  ;;  %6140 = vmatpush1.bf16.msra.mxu1 %v6139_v21  ;;  %v5797_v20 = vunpack.c.h.s8.bf16 %v1072_v10  ;;  %v6181_v21 = vunpack.c.h.s8.bf16 %v1074_v11 }
 0x260   : > { %5758 = vmatprep.subr.bf16.mxu0 %v5757_v22  ;;  %6142 = vmatprep.subr.bf16.mxu1 %v6141_v23  ;;  %v1076_v22 = vld [vmem:[%s7688_s27 + $0x288] sm:$0xff]  ;;  %v1078_v23 = vld [vmem:[%s7688_s27 + $0x298] sm:$0xff] }
 0x263   : > { %5760 = vmatpush1.bf16.msra.mxu0 %v5759_v26  ;;  %6144 = vmatpush1.bf16.msra.mxu1 %v6143_v27  ;;  %v5801_v26 = vunpack.c.l.s8.bf16 %v1076_v22  ;;  %v6185_v27 = vunpack.c.l.s8.bf16 %v1078_v23 }
 0x264   : > { %5762 = vmatprep.subr.bf16.mxu0 %v5761_v28  ;;  %6146 = vmatprep.subr.bf16.mxu1 %v6145_v31  ;;  %v1075_v28 = vld [vmem:[%s7688_s27 + $0x280] sm:$0xff]  ;;  %v1077_v31 = vld [vmem:[%s7688_s27 + $0x290] sm:$0xff] }
 0x265   : > { %v5803_v34 = vunpack.c.l.s8.bf16 %v1075_v28  ;;  %v6187_v35 = vunpack.c.l.s8.bf16 %v1077_v31  ;;  %v5807_v33 = vunpack.c.h.s8.bf16 %v1075_v28  ;;  %v6191_v37 = vunpack.c.h.s8.bf16 %v1077_v31 }
 0x267   : > { %5764 = vmatpush1.bf16.msra.mxu0 %v5763_v36  ;;  %6148 = vmatpush1.bf16.msra.mxu1 %v6147_v29  ;;  %v5805_v36 = vunpack.c.h.s8.bf16 %v1076_v22  ;;  %v6189_v29 = vunpack.c.h.s8.bf16 %v1078_v23 }
 0x268   : > { %5766 = vmatprep.subr.bf16.mxu0 %v5765_v30  ;;  %6150 = vmatprep.subr.bf16.mxu1 %v6149_v32  ;;  %v1080_v30 = vld [vmem:[%s7688_s27 + $0x2a8] sm:$0xff]  ;;  %v1082_v32 = vld [vmem:[%s7688_s27 + $0x2b8] sm:$0xff] }
 0x26b   : > { %5768 = vmatpush1.bf16.msra.mxu0 %v5767_v38  ;;  %6152 = vmatpush1.bf16.msra.mxu1 %v6151_v39  ;;  %v5809_v38 = vunpack.c.l.s8.bf16 %v1080_v30  ;;  %v6193_v39 = vunpack.c.l.s8.bf16 %v1082_v32 }
 0x26c   : > { %5770 = vmatprep.subr.bf16.mxu0 %v5769_v40  ;;  %6154 = vmatprep.subr.bf16.mxu1 %v6153_v41  ;;  %v1079_v40 = vld [vmem:[%s7688_s27 + $0x2a0] sm:$0xff]  ;;  %v1081_v41 = vld [vmem:[%s7688_s27 + $0x2b0] sm:$0xff] }
 0x26d   : > { %v5811_v42 = vunpack.c.l.s8.bf16 %v1079_v40  ;;  %v6195_v43 = vunpack.c.l.s8.bf16 %v1081_v41  ;;  %v6199_v49 = vunpack.c.h.s8.bf16 %v1081_v41 }
 0x26e   : > { %2871 = vmatmul.mubr.f32.vlgmr.msra.gmra.mrb[0].mxu0 %v2725_v44  ;;  %3297 = vmatmul.mubr.f32.vlgmr.msra.gmra.mrb[0].mxu1 %v2725_v44  ;;  %v5813_v44 = vunpack.c.h.s8.bf16 %v1080_v30 }
 0x26f   : > { %5772 = vmatpush1.bf16.msra.mxu0 %v5771_v45  ;;  %6156 = vmatpush1.bf16.msra.mxu1 %v6155_v46  ;;  %v6197_v45 = vunpack.c.h.s8.bf16 %v1082_v32  ;;  %v1084_v46 = vld [vmem:[%s7688_s27 + $0x2c8] sm:$0xff] }
 0x270   : > { %5774 = vmatprep.subr.bf16.mxu0 %v5773_v47  ;;  %6158 = vmatprep.subr.bf16.mxu1 %v6157_v48  ;;  %v1086_v47 = vld [vmem:[%s7688_s27 + $0x2d8] sm:$0xff]  ;;  %v5815_v48 = vunpack.c.h.s8.bf16 %v1079_v40  ;;  %v5817_v50 = vunpack.c.l.s8.bf16 %v1084_v46  ;;  %v5821_v56 = vunpack.c.h.s8.bf16 %v1084_v46 }
 0x271   : > { %2941 = vmatprep.mubr.f32.mxu0 %v2728_v51  ;;  %3367 = vmatprep.mubr.f32.mxu1 %v2728_v51  ;;  %v6201_v51 = vunpack.c.l.s8.bf16 %v1086_v47  ;;  %v6205_v57 = vunpack.c.h.s8.bf16 %v1086_v47 }
 0x273   : > { %5776 = vmatpush1.bf16.msra.mxu0 %v5775_v52  ;;  %6160 = vmatpush1.bf16.msra.mxu1 %v6159_v53  ;;  %v1083_v52 = vld [vmem:[%s7688_s27 + $0x2c0] sm:$0xff]  ;;  %v1085_v53 = vld [vmem:[%s7688_s27 + $0x2d0] sm:$0xff] }
 0x274   : > { %5778 = vmatprep.subr.bf16.mxu0 %v5777_v54  ;;  %6162 = vmatprep.subr.bf16.mxu1 %v6161_v55  ;;  %v5819_v54 = vunpack.c.l.s8.bf16 %v1083_v52  ;;  %v6203_v55 = vunpack.c.l.s8.bf16 %v1085_v53 }
 0x277   : > { %5780 = vmatpush1.bf16.msra.mxu0 %v5779_v58  ;;  %6164 = vmatpush1.bf16.msra.mxu1 %v6163_v59  ;;  %v1088_v58 = vld [vmem:[%s7688_s27 + $0x2e8] sm:$0xff]  ;;  %v1090_v59 = vld [vmem:[%s7688_s27 + $0x2f8] sm:$0xff] }
 0x278   : > { %5782 = vmatprep.subr.bf16.mxu0 %v5781_v60  ;;  %6166 = vmatprep.subr.bf16.mxu1 %v6165_v61  ;;  %v5823_v60 = vunpack.c.h.s8.bf16 %v1083_v52  ;;  %v6207_v61 = vunpack.c.h.s8.bf16 %v1085_v53  ;;  %v5825_v62 = vunpack.c.l.s8.bf16 %v1088_v58  ;;  %v6209_v63 = vunpack.c.l.s8.bf16 %v1090_v59 }
 0x279   : > { %v5829_v4 = vunpack.c.h.s8.bf16 %v1088_v58  ;;  %v6213_v5 = vunpack.c.h.s8.bf16 %v1090_v59 }
 0x27b   : > { %5784 = vmatpush1.bf16.msra.mxu0 %v5783_v0  ;;  %6168 = vmatpush1.bf16.msra.mxu1 %v6167_v1  ;;  %v1087_v0 = vld [vmem:[%s7688_s27 + $0x2e0] sm:$0xff]  ;;  %v1089_v1 = vld [vmem:[%s7688_s27 + $0x2f0] sm:$0xff] }
 0x27c   : > { %5786 = vmatprep.subr.bf16.mxu0 %v5785_v2  ;;  %6170 = vmatprep.subr.bf16.mxu1 %v6169_v3  ;;  %v5827_v2 = vunpack.c.l.s8.bf16 %v1087_v0  ;;  %v6211_v3 = vunpack.c.l.s8.bf16 %v1089_v1 }
 0x27f   : > { %5788 = vmatpush1.bf16.msra.mxu0 %v5787_v6  ;;  %6172 = vmatpush1.bf16.msra.mxu1 %v6171_v7  ;;  %v1092_v6 = vld [vmem:[%s7688_s27 + $0x308] sm:$0xff]  ;;  %v1094_v7 = vld [vmem:[%s7688_s27 + $0x318] sm:$0xff] }
 0x280   : > { %5790 = vmatprep.subr.bf16.mxu0 %v5789_v8  ;;  %6174 = vmatprep.subr.bf16.mxu1 %v6173_v9  ;;  %v5831_v8 = vunpack.c.h.s8.bf16 %v1087_v0  ;;  %v6215_v9 = vunpack.c.h.s8.bf16 %v1089_v1  ;;  %v5833_v10 = vunpack.c.l.s8.bf16 %v1092_v6  ;;  %v6217_v11 = vunpack.c.l.s8.bf16 %v1094_v7 }
 0x281   : > { %v5837_v17 = vunpack.c.h.s8.bf16 %v1092_v6 }
 0x283   : > { %5792 = vmatpush1.bf16.msra.mxu0 %v5791_v12  ;;  %6176 = vmatpush1.bf16.msra.mxu1 %v6175_v13  ;;  %v1091_v12 = vld [vmem:[%s7688_s27 + $0x300] sm:$0xff]  ;;  %v1093_v13 = vld [vmem:[%s7688_s27 + $0x310] sm:$0xff] }
 0x284   : > { %5794 = vmatprep.subr.bf16.mxu0 %v5793_v14  ;;  %6178 = vmatprep.subr.bf16.mxu1 %v6177_v15  ;;  %v2727_v14 = vld [vmem:[#allocation2 + $0x20] sm:$0xff]  ;;  %v5835_v15 = vunpack.c.l.s8.bf16 %v1091_v12  ;;  %v6219_v16 = vunpack.c.l.s8.bf16 %v1093_v13  ;;  %v5839_v22 = vunpack.c.h.s8.bf16 %v1091_v12  ;;  %v6223_v23 = vunpack.c.h.s8.bf16 %v1093_v13 }
 0x287   : > { %5796 = vmatpush1.bf16.msra.mxu0 %v5795_v18  ;;  %6180 = vmatpush1.bf16.msra.mxu1 %v6179_v19  ;;  %v6221_v18 = vunpack.c.h.s8.bf16 %v1094_v7  ;;  %v1096_v19 = vld [vmem:[%s7688_s27 + $0x328] sm:$0xff] }
 0x288   : > { %5798 = vmatprep.subr.bf16.mxu0 %v5797_v20  ;;  %6182 = vmatprep.subr.bf16.mxu1 %v6181_v21  ;;  %v1098_v20 = vld [vmem:[%s7688_s27 + $0x338] sm:$0xff] }
 0x289   : > { %v2730_v21 = vld [vmem:[#allocation2 + $0x38] sm:$0xff] }
 0x28b   : > { %5800 = vmatpush1.bf16.msra.mxu0 %v5799_v24  ;;  %6184 = vmatpush1.bf16.msra.mxu1 %v6183_v25  ;;  %v5841_v24 = vunpack.c.l.s8.bf16 %v1096_v19  ;;  %v6225_v25 = vunpack.c.l.s8.bf16 %v1098_v20 }
 0x28c   : > { %5802 = vmatprep.subr.bf16.mxu0 %v5801_v26  ;;  %6186 = vmatprep.subr.bf16.mxu1 %v6185_v27  ;;  %v1095_v26 = vld [vmem:[%s7688_s27 + $0x320] sm:$0xff]  ;;  %v1097_v27 = vld [vmem:[%s7688_s27 + $0x330] sm:$0xff] }
 0x28d   : > { %v5843_v28 = vunpack.c.l.s8.bf16 %v1095_v26  ;;  %v6227_v31 = vunpack.c.l.s8.bf16 %v1097_v27  ;;  %v5847_v30 = vunpack.c.h.s8.bf16 %v1095_v26  ;;  %v6231_v32 = vunpack.c.h.s8.bf16 %v1097_v27 }
 0x28f   : > { %5804 = vmatpush1.bf16.msra.mxu0 %v5803_v34  ;;  %6188 = vmatpush1.bf16.msra.mxu1 %v6187_v35  ;;  %v5845_v34 = vunpack.c.h.s8.bf16 %v1096_v19  ;;  %v6229_v35 = vunpack.c.h.s8.bf16 %v1098_v20 }
 0x290   : > { %5806 = vmatprep.subr.bf16.mxu0 %v5805_v36  ;;  %6190 = vmatprep.subr.bf16.mxu1 %v6189_v29  ;;  %v1100_v36 = vld [vmem:[%s7688_s27 + $0x348] sm:$0xff]  ;;  %v1102_v29 = vld [vmem:[%s7688_s27 + $0x358] sm:$0xff] }
 0x293   : > { %5808 = vmatpush1.bf16.msra.mxu0 %v5807_v33  ;;  %6192 = vmatpush1.bf16.msra.mxu1 %v6191_v37  ;;  %v5849_v33 = vunpack.c.l.s8.bf16 %v1100_v36  ;;  %v6233_v37 = vunpack.c.l.s8.bf16 %v1102_v29 }
 0x294   : > { %5810 = vmatprep.subr.bf16.mxu0 %v5809_v38  ;;  %6194 = vmatprep.subr.bf16.mxu1 %v6193_v39  ;;  %v1099_v38 = vld [vmem:[%s7688_s27 + $0x340] sm:$0xff]  ;;  %v1101_v39 = vld [vmem:[%s7688_s27 + $0x350] sm:$0xff] }
 0x295   : > { %v5851_v40 = vunpack.c.l.s8.bf16 %v1099_v38  ;;  %v6235_v41 = vunpack.c.l.s8.bf16 %v1101_v39  ;;  %v5855_v46 = vunpack.c.h.s8.bf16 %v1099_v38  ;;  %v6239_v47 = vunpack.c.h.s8.bf16 %v1101_v39 }
 0x297   : > { %5812 = vmatpush1.bf16.msra.mxu0 %v5811_v42  ;;  %6196 = vmatpush1.bf16.msra.mxu1 %v6195_v43  ;;  %v5853_v42 = vunpack.c.h.s8.bf16 %v1100_v36  ;;  %v6237_v43 = vunpack.c.h.s8.bf16 %v1102_v29 }
 0x298   : > { %5814 = vmatprep.subr.bf16.mxu0 %v5813_v44  ;;  %6198 = vmatprep.subr.bf16.mxu1 %v6197_v45  ;;  %v1104_v44 = vld [vmem:[%s7688_s27 + $0x368] sm:$0xff]  ;;  %v1106_v45 = vld [vmem:[%s7688_s27 + $0x378] sm:$0xff] }
 0x29b   : > { %5816 = vmatpush1.bf16.msra.mxu0 %v5815_v48  ;;  %6200 = vmatpush1.bf16.msra.mxu1 %v6199_v49  ;;  %v5857_v48 = vunpack.c.l.s8.bf16 %v1104_v44  ;;  %v6241_v49 = vunpack.c.l.s8.bf16 %v1106_v45 }
 0x29c   : > { %5818 = vmatprep.subr.bf16.mxu0 %v5817_v50  ;;  %6202 = vmatprep.subr.bf16.mxu1 %v6201_v51  ;;  %v1103_v50 = vld [vmem:[%s7688_s27 + $0x360] sm:$0xff]  ;;  %v1105_v51 = vld [vmem:[%s7688_s27 + $0x370] sm:$0xff] }
 0x29d   : > { %v5859_v52 = vunpack.c.l.s8.bf16 %v1103_v50  ;;  %v6243_v53 = vunpack.c.l.s8.bf16 %v1105_v51  ;;  %v5863_v58 = vunpack.c.h.s8.bf16 %v1103_v50  ;;  %v6247_v59 = vunpack.c.h.s8.bf16 %v1105_v51 }
 0x29f   : > { %5820 = vmatpush1.bf16.msra.mxu0 %v5819_v54  ;;  %6204 = vmatpush1.bf16.msra.mxu1 %v6203_v55  ;;  %v5861_v54 = vunpack.c.h.s8.bf16 %v1104_v44  ;;  %v6245_v55 = vunpack.c.h.s8.bf16 %v1106_v45 }
 0x2a0   : > { %5822 = vmatprep.subr.bf16.mxu0 %v5821_v56  ;;  %6206 = vmatprep.subr.bf16.mxu1 %v6205_v57  ;;  %v1108_v56 = vld [vmem:[%s7688_s27 + $0x388] sm:$0xff]  ;;  %v1110_v57 = vld [vmem:[%s7688_s27 + $0x398] sm:$0xff] }
 0x2a3   : > { %5824 = vmatpush1.bf16.msra.mxu0 %v5823_v60  ;;  %6208 = vmatpush1.bf16.msra.mxu1 %v6207_v61  ;;  %v5865_v60 = vunpack.c.l.s8.bf16 %v1108_v56  ;;  %v6249_v61 = vunpack.c.l.s8.bf16 %v1110_v57 }
 0x2a4   : > { %5826 = vmatprep.subr.bf16.mxu0 %v5825_v62  ;;  %6210 = vmatprep.subr.bf16.mxu1 %v6209_v63  ;;  %v1107_v62 = vld [vmem:[%s7688_s27 + $0x380] sm:$0xff]  ;;  %v1109_v63 = vld [vmem:[%s7688_s27 + $0x390] sm:$0xff] }
 0x2a5   : > { %v5867_v0 = vunpack.c.l.s8.bf16 %v1107_v62  ;;  %v6251_v1 = vunpack.c.l.s8.bf16 %v1109_v63  ;;  %v5871_v6 = vunpack.c.h.s8.bf16 %v1107_v62  ;;  %v6255_v7 = vunpack.c.h.s8.bf16 %v1109_v63 }
 0x2a7   : > { %5828 = vmatpush1.bf16.msra.mxu0 %v5827_v2  ;;  %6212 = vmatpush1.bf16.msra.mxu1 %v6211_v3  ;;  %v5869_v2 = vunpack.c.h.s8.bf16 %v1108_v56  ;;  %v6253_v3 = vunpack.c.h.s8.bf16 %v1110_v57 }
 0x2a8   : > { %5830 = vmatprep.subr.bf16.mxu0 %v5829_v4  ;;  %6214 = vmatprep.subr.bf16.mxu1 %v6213_v5  ;;  %v1112_v4 = vld [vmem:[%s7688_s27 + $0x3a8] sm:$0xff]  ;;  %v1114_v5 = vld [vmem:[%s7688_s27 + $0x3b8] sm:$0xff] }
 0x2ab   : > { %5832 = vmatpush1.bf16.msra.mxu0 %v5831_v8  ;;  %6216 = vmatpush1.bf16.msra.mxu1 %v6215_v9  ;;  %v5873_v8 = vunpack.c.l.s8.bf16 %v1112_v4  ;;  %v6257_v9 = vunpack.c.l.s8.bf16 %v1114_v5 }
 0x2ac   : > { %5834 = vmatprep.subr.bf16.mxu0 %v5833_v10  ;;  %6218 = vmatprep.subr.bf16.mxu1 %v6217_v11  ;;  %v1111_v10 = vld [vmem:[%s7688_s27 + $0x3a0] sm:$0xff]  ;;  %v1113_v11 = vld [vmem:[%s7688_s27 + $0x3b0] sm:$0xff] }
 0x2ad   : > { %v5875_v12 = vunpack.c.l.s8.bf16 %v1111_v10  ;;  %v6259_v13 = vunpack.c.l.s8.bf16 %v1113_v11  ;;  %v6263_v19 = vunpack.c.h.s8.bf16 %v1113_v11 }
 0x2ae   : > { %2942 = vmatmul.mubr.f32.vlgmr.msra.gmra.mrb[0].mxu0 %v2727_v14  ;;  %3368 = vmatmul.mubr.f32.vlgmr.msra.gmra.mrb[0].mxu1 %v2727_v14  ;;  %v5877_v14 = vunpack.c.h.s8.bf16 %v1112_v4 }
 0x2af   : > { %5836 = vmatpush1.bf16.msra.mxu0 %v5835_v15  ;;  %6220 = vmatpush1.bf16.msra.mxu1 %v6219_v16  ;;  %v6261_v15 = vunpack.c.h.s8.bf16 %v1114_v5  ;;  %v1116_v16 = vld [vmem:[%s7688_s27 + $0x3c8] sm:$0xff] }
 0x2b0   : > { %5838 = vmatprep.subr.bf16.mxu0 %v5837_v17  ;;  %6222 = vmatprep.subr.bf16.mxu1 %v6221_v18  ;;  %v1118_v17 = vld [vmem:[%s7688_s27 + $0x3d8] sm:$0xff]  ;;  %v5879_v18 = vunpack.c.h.s8.bf16 %v1111_v10  ;;  %v5881_v20 = vunpack.c.l.s8.bf16 %v1116_v16  ;;  %v5885_v26 = vunpack.c.h.s8.bf16 %v1116_v16 }
 0x2b1   : > { %3012 = vmatprep.mubr.f32.mxu0 %v2730_v21  ;;  %3438 = vmatprep.mubr.f32.mxu1 %v2730_v21  ;;  %v6265_v21 = vunpack.c.l.s8.bf16 %v1118_v17  ;;  %v6269_v27 = vunpack.c.h.s8.bf16 %v1118_v17 }
 0x2b3   : > { %5840 = vmatpush1.bf16.msra.mxu0 %v5839_v22  ;;  %6224 = vmatpush1.bf16.msra.mxu1 %v6223_v23  ;;  %v1115_v22 = vld [vmem:[%s7688_s27 + $0x3c0] sm:$0xff]  ;;  %v1117_v23 = vld [vmem:[%s7688_s27 + $0x3d0] sm:$0xff] }
 0x2b4   : > { %5842 = vmatprep.subr.bf16.mxu0 %v5841_v24  ;;  %6226 = vmatprep.subr.bf16.mxu1 %v6225_v25  ;;  %v5883_v24 = vunpack.c.l.s8.bf16 %v1115_v22  ;;  %v6267_v25 = vunpack.c.l.s8.bf16 %v1117_v23 }
 0x2b7   : > { %5844 = vmatpush1.bf16.msra.mxu0 %v5843_v28  ;;  %6228 = vmatpush1.bf16.msra.mxu1 %v6227_v31  ;;  %v1120_v28 = vld [vmem:[%s7688_s27 + $0x3e8] sm:$0xff]  ;;  %v1122_v31 = vld [vmem:[%s7688_s27 + $0x3f8] sm:$0xff] }
 0x2b8   : > { %5846 = vmatprep.subr.bf16.mxu0 %v5845_v34  ;;  %6230 = vmatprep.subr.bf16.mxu1 %v6229_v35  ;;  %v5887_v34 = vunpack.c.h.s8.bf16 %v1115_v22  ;;  %v6271_v35 = vunpack.c.h.s8.bf16 %v1117_v23  ;;  %v5889_v36 = vunpack.c.l.s8.bf16 %v1120_v28  ;;  %v6273_v29 = vunpack.c.l.s8.bf16 %v1122_v31 }
 0x2b9   : > { %v5893_v38 = vunpack.c.h.s8.bf16 %v1120_v28  ;;  %v6277_v39 = vunpack.c.h.s8.bf16 %v1122_v31 }
 0x2bb   : > { %5848 = vmatpush1.bf16.msra.mxu0 %v5847_v30  ;;  %6232 = vmatpush1.bf16.msra.mxu1 %v6231_v32  ;;  %v1119_v30 = vld [vmem:[%s7688_s27 + $0x3e0] sm:$0xff]  ;;  %v1121_v32 = vld [vmem:[%s7688_s27 + $0x3f0] sm:$0xff] }
 0x2bc   : > { %5850 = vmatprep.subr.bf16.mxu0 %v5849_v33  ;;  %6234 = vmatprep.subr.bf16.mxu1 %v6233_v37  ;;  %v5891_v33 = vunpack.c.l.s8.bf16 %v1119_v30  ;;  %v6275_v37 = vunpack.c.l.s8.bf16 %v1121_v32 }
 0x2bf   : > { %5852 = vmatpush1.bf16.msra.mxu0 %v5851_v40  ;;  %6236 = vmatpush1.bf16.msra.mxu1 %v6235_v41  ;;  %v1124_v40 = vld [vmem:[%s7688_s27 + $0x408] sm:$0xff]  ;;  %v1126_v41 = vld [vmem:[%s7688_s27 + $0x418] sm:$0xff] }
 0x2c0   : > { %5854 = vmatprep.subr.bf16.mxu0 %v5853_v42  ;;  %6238 = vmatprep.subr.bf16.mxu1 %v6237_v43  ;;  %v5895_v42 = vunpack.c.h.s8.bf16 %v1119_v30  ;;  %v6279_v43 = vunpack.c.h.s8.bf16 %v1121_v32  ;;  %v5897_v44 = vunpack.c.l.s8.bf16 %v1124_v40  ;;  %v6281_v45 = vunpack.c.l.s8.bf16 %v1126_v41 }
 0x2c1   : > { %v5901_v51 = vunpack.c.h.s8.bf16 %v1124_v40 }
 0x2c3   : > { %5856 = vmatpush1.bf16.msra.mxu0 %v5855_v46  ;;  %6240 = vmatpush1.bf16.msra.mxu1 %v6239_v47  ;;  %v1123_v46 = vld [vmem:[%s7688_s27 + $0x400] sm:$0xff]  ;;  %v1125_v47 = vld [vmem:[%s7688_s27 + $0x410] sm:$0xff] }
 0x2c4   : > { %5858 = vmatprep.subr.bf16.mxu0 %v5857_v48  ;;  %6242 = vmatprep.subr.bf16.mxu1 %v6241_v49  ;;  %v2729_v48 = vld [vmem:[#allocation2 + $0x30] sm:$0xff]  ;;  %v5899_v49 = vunpack.c.l.s8.bf16 %v1123_v46  ;;  %v6283_v50 = vunpack.c.l.s8.bf16 %v1125_v47  ;;  %v5903_v56 = vunpack.c.h.s8.bf16 %v1123_v46  ;;  %v6287_v57 = vunpack.c.h.s8.bf16 %v1125_v47 }
 0x2c7   : > { %5860 = vmatpush1.bf16.msra.mxu0 %v5859_v52  ;;  %6244 = vmatpush1.bf16.msra.mxu1 %v6243_v53  ;;  %v6285_v52 = vunpack.c.h.s8.bf16 %v1126_v41  ;;  %v1128_v53 = vld [vmem:[%s7688_s27 + $0x428] sm:$0xff] }
 0x2c8   : > { %5862 = vmatprep.subr.bf16.mxu0 %v5861_v54  ;;  %6246 = vmatprep.subr.bf16.mxu1 %v6245_v55  ;;  %v1130_v54 = vld [vmem:[%s7688_s27 + $0x438] sm:$0xff]  ;;  %v2732_v55 = vld [vmem:[#allocation2 + $0x48] sm:$0xff] }
 0x2cb   : > { %5864 = vmatpush1.bf16.msra.mxu0 %v5863_v58  ;;  %6248 = vmatpush1.bf16.msra.mxu1 %v6247_v59  ;;  %v5905_v58 = vunpack.c.l.s8.bf16 %v1128_v53  ;;  %v6289_v59 = vunpack.c.l.s8.bf16 %v1130_v54 }
 0x2cc   : > { %5866 = vmatprep.subr.bf16.mxu0 %v5865_v60  ;;  %6250 = vmatprep.subr.bf16.mxu1 %v6249_v61  ;;  %v1127_v60 = vld [vmem:[%s7688_s27 + $0x420] sm:$0xff]  ;;  %v1129_v61 = vld [vmem:[%s7688_s27 + $0x430] sm:$0xff] }
 0x2cd   : > { %v5907_v62 = vunpack.c.l.s8.bf16 %v1127_v60  ;;  %v6291_v63 = vunpack.c.l.s8.bf16 %v1129_v61  ;;  %v5911_v4 = vunpack.c.h.s8.bf16 %v1127_v60  ;;  %v6295_v5 = vunpack.c.h.s8.bf16 %v1129_v61 }
 0x2cf   : > { %5868 = vmatpush1.bf16.msra.mxu0 %v5867_v0  ;;  %6252 = vmatpush1.bf16.msra.mxu1 %v6251_v1  ;;  %v5909_v0 = vunpack.c.h.s8.bf16 %v1128_v53  ;;  %v6293_v1 = vunpack.c.h.s8.bf16 %v1130_v54 }
 0x2d0   : > { %5870 = vmatprep.subr.bf16.mxu0 %v5869_v2  ;;  %6254 = vmatprep.subr.bf16.mxu1 %v6253_v3  ;;  %v1132_v2 = vld [vmem:[%s7688_s27 + $0x448] sm:$0xff]  ;;  %v1134_v3 = vld [vmem:[%s7688_s27 + $0x458] sm:$0xff] }
 0x2d3   : > { %5872 = vmatpush1.bf16.msra.mxu0 %v5871_v6  ;;  %6256 = vmatpush1.bf16.msra.mxu1 %v6255_v7  ;;  %v5913_v6 = vunpack.c.l.s8.bf16 %v1132_v2  ;;  %v6297_v7 = vunpack.c.l.s8.bf16 %v1134_v3 }
 0x2d4   : > { %5874 = vmatprep.subr.bf16.mxu0 %v5873_v8  ;;  %6258 = vmatprep.subr.bf16.mxu1 %v6257_v9  ;;  %v1131_v8 = vld [vmem:[%s7688_s27 + $0x440] sm:$0xff]  ;;  %v1133_v9 = vld [vmem:[%s7688_s27 + $0x450] sm:$0xff] }
 0x2d5   : > { %v5915_v10 = vunpack.c.l.s8.bf16 %v1131_v8  ;;  %v6299_v11 = vunpack.c.l.s8.bf16 %v1133_v9  ;;  %v5919_v16 = vunpack.c.h.s8.bf16 %v1131_v8  ;;  %v6303_v17 = vunpack.c.h.s8.bf16 %v1133_v9 }
 0x2d7   : > { %5876 = vmatpush1.bf16.msra.mxu0 %v5875_v12  ;;  %6260 = vmatpush1.bf16.msra.mxu1 %v6259_v13  ;;  %v5917_v12 = vunpack.c.h.s8.bf16 %v1132_v2  ;;  %v6301_v13 = vunpack.c.h.s8.bf16 %v1134_v3 }
 0x2d8   : > { %5878 = vmatprep.subr.bf16.mxu0 %v5877_v14  ;;  %6262 = vmatprep.subr.bf16.mxu1 %v6261_v15  ;;  %v1136_v14 = vld [vmem:[%s7688_s27 + $0x468] sm:$0xff]  ;;  %v1138_v15 = vld [vmem:[%s7688_s27 + $0x478] sm:$0xff] }
 0x2db   : > { %5880 = vmatpush1.bf16.msra.mxu0 %v5879_v18  ;;  %6264 = vmatpush1.bf16.msra.mxu1 %v6263_v19  ;;  %v5921_v18 = vunpack.c.l.s8.bf16 %v1136_v14  ;;  %v6305_v19 = vunpack.c.l.s8.bf16 %v1138_v15 }
 0x2dc   : > { %5882 = vmatprep.subr.bf16.mxu0 %v5881_v20  ;;  %6266 = vmatprep.subr.bf16.mxu1 %v6265_v21  ;;  %v1135_v20 = vld [vmem:[%s7688_s27 + $0x460] sm:$0xff]  ;;  %v1137_v21 = vld [vmem:[%s7688_s27 + $0x470] sm:$0xff] }
 0x2dd   : > { %v5923_v22 = vunpack.c.l.s8.bf16 %v1135_v20  ;;  %v6307_v23 = vunpack.c.l.s8.bf16 %v1137_v21  ;;  %v5927_v28 = vunpack.c.h.s8.bf16 %v1135_v20  ;;  %v6311_v31 = vunpack.c.h.s8.bf16 %v1137_v21 }
 0x2df   : > { %5884 = vmatpush1.bf16.msra.mxu0 %v5883_v24  ;;  %6268 = vmatpush1.bf16.msra.mxu1 %v6267_v25  ;;  %v5925_v24 = vunpack.c.h.s8.bf16 %v1136_v14  ;;  %v6309_v25 = vunpack.c.h.s8.bf16 %v1138_v15 }
 0x2e0   : > { %5886 = vmatprep.subr.bf16.mxu0 %v5885_v26  ;;  %6270 = vmatprep.subr.bf16.mxu1 %v6269_v27  ;;  %v1140_v26 = vld [vmem:[%s7688_s27 + $0x488] sm:$0xff]  ;;  %v1142_v27 = vld [vmem:[%s7688_s27 + $0x498] sm:$0xff] }
 0x2e3   : > { %5888 = vmatpush1.bf16.msra.mxu0 %v5887_v34  ;;  %6272 = vmatpush1.bf16.msra.mxu1 %v6271_v35  ;;  %v5929_v34 = vunpack.c.l.s8.bf16 %v1140_v26  ;;  %v6313_v35 = vunpack.c.l.s8.bf16 %v1142_v27 }
 0x2e4   : > { %5890 = vmatprep.subr.bf16.mxu0 %v5889_v36  ;;  %6274 = vmatprep.subr.bf16.mxu1 %v6273_v29  ;;  %v1139_v36 = vld [vmem:[%s7688_s27 + $0x480] sm:$0xff]  ;;  %v1141_v29 = vld [vmem:[%s7688_s27 + $0x490] sm:$0xff] }
 0x2e5   : > { %v5931_v30 = vunpack.c.l.s8.bf16 %v1139_v36  ;;  %v6315_v32 = vunpack.c.l.s8.bf16 %v1141_v29  ;;  %v5935_v40 = vunpack.c.h.s8.bf16 %v1139_v36  ;;  %v6319_v41 = vunpack.c.h.s8.bf16 %v1141_v29 }
 0x2e7   : > { %5892 = vmatpush1.bf16.msra.mxu0 %v5891_v33  ;;  %6276 = vmatpush1.bf16.msra.mxu1 %v6275_v37  ;;  %v5933_v33 = vunpack.c.h.s8.bf16 %v1140_v26  ;;  %v6317_v37 = vunpack.c.h.s8.bf16 %v1142_v27 }
 0x2e8   : > { %5894 = vmatprep.subr.bf16.mxu0 %v5893_v38  ;;  %6278 = vmatprep.subr.bf16.mxu1 %v6277_v39  ;;  %v1144_v38 = vld [vmem:[%s7688_s27 + $0x4a8] sm:$0xff]  ;;  %v1146_v39 = vld [vmem:[%s7688_s27 + $0x4b8] sm:$0xff] }
 0x2eb   : > { %5896 = vmatpush1.bf16.msra.mxu0 %v5895_v42  ;;  %6280 = vmatpush1.bf16.msra.mxu1 %v6279_v43  ;;  %v5937_v42 = vunpack.c.l.s8.bf16 %v1144_v38  ;;  %v6321_v43 = vunpack.c.l.s8.bf16 %v1146_v39 }
 0x2ec   : > { %5898 = vmatprep.subr.bf16.mxu0 %v5897_v44  ;;  %6282 = vmatprep.subr.bf16.mxu1 %v6281_v45  ;;  %v1143_v44 = vld [vmem:[%s7688_s27 + $0x4a0] sm:$0xff]  ;;  %v1145_v45 = vld [vmem:[%s7688_s27 + $0x4b0] sm:$0xff] }
 0x2ed   : > { %v5939_v46 = vunpack.c.l.s8.bf16 %v1143_v44  ;;  %v6323_v47 = vunpack.c.l.s8.bf16 %v1145_v45  ;;  %v6327_v53 = vunpack.c.h.s8.bf16 %v1145_v45 }
 0x2ee   : > { %3013 = vmatmul.mubr.f32.vlgmr.msra.gmra.mrb[0].mxu0 %v2729_v48  ;;  %3439 = vmatmul.mubr.f32.vlgmr.msra.gmra.mrb[0].mxu1 %v2729_v48  ;;  %v5941_v48 = vunpack.c.h.s8.bf16 %v1144_v38 }
 0x2ef   : > { %5900 = vmatpush1.bf16.msra.mxu0 %v5899_v49  ;;  %6284 = vmatpush1.bf16.msra.mxu1 %v6283_v50  ;;  %v6325_v49 = vunpack.c.h.s8.bf16 %v1146_v39  ;;  %v1148_v50 = vld [vmem:[%s7688_s27 + $0x4c8] sm:$0xff] }
 0x2f0   : > { %5902 = vmatprep.subr.bf16.mxu0 %v5901_v51  ;;  %6286 = vmatprep.subr.bf16.mxu1 %v6285_v52  ;;  %v1150_v51 = vld [vmem:[%s7688_s27 + $0x4d8] sm:$0xff]  ;;  %v5943_v52 = vunpack.c.h.s8.bf16 %v1143_v44  ;;  %v5945_v54 = vunpack.c.l.s8.bf16 %v1148_v50  ;;  %v5949_v60 = vunpack.c.h.s8.bf16 %v1148_v50 }
 0x2f1   : > { %3083 = vmatprep.mubr.f32.mxu0 %v2732_v55  ;;  %3509 = vmatprep.mubr.f32.mxu1 %v2732_v55  ;;  %v6329_v55 = vunpack.c.l.s8.bf16 %v1150_v51  ;;  %v6333_v61 = vunpack.c.h.s8.bf16 %v1150_v51 }
 0x2f3   : > { %5904 = vmatpush1.bf16.msra.mxu0 %v5903_v56  ;;  %6288 = vmatpush1.bf16.msra.mxu1 %v6287_v57  ;;  %v1147_v56 = vld [vmem:[%s7688_s27 + $0x4c0] sm:$0xff]  ;;  %v1149_v57 = vld [vmem:[%s7688_s27 + $0x4d0] sm:$0xff] }
 0x2f4   : > { %5906 = vmatprep.subr.bf16.mxu0 %v5905_v58  ;;  %6290 = vmatprep.subr.bf16.mxu1 %v6289_v59  ;;  %v5947_v58 = vunpack.c.l.s8.bf16 %v1147_v56  ;;  %v6331_v59 = vunpack.c.l.s8.bf16 %v1149_v57 }
 0x2f7   : > { %5908 = vmatpush1.bf16.msra.mxu0 %v5907_v62  ;;  %6292 = vmatpush1.bf16.msra.mxu1 %v6291_v63  ;;  %v1152_v62 = vld [vmem:[%s7688_s27 + $0x4e8] sm:$0xff]  ;;  %v1154_v63 = vld [vmem:[%s7688_s27 + $0x4f8] sm:$0xff] }
 0x2f8   : > { %5910 = vmatprep.subr.bf16.mxu0 %v5909_v0  ;;  %6294 = vmatprep.subr.bf16.mxu1 %v6293_v1  ;;  %v5951_v0 = vunpack.c.h.s8.bf16 %v1147_v56  ;;  %v6335_v1 = vunpack.c.h.s8.bf16 %v1149_v57  ;;  %v5953_v2 = vunpack.c.l.s8.bf16 %v1152_v62  ;;  %v6337_v3 = vunpack.c.l.s8.bf16 %v1154_v63 }
 0x2f9   : > { %v5957_v8 = vunpack.c.h.s8.bf16 %v1152_v62  ;;  %v6341_v9 = vunpack.c.h.s8.bf16 %v1154_v63 }
 0x2fb   : > { %5912 = vmatpush1.bf16.msra.mxu0 %v5911_v4  ;;  %6296 = vmatpush1.bf16.msra.mxu1 %v6295_v5  ;;  %v1151_v4 = vld [vmem:[%s7688_s27 + $0x4e0] sm:$0xff]  ;;  %v1153_v5 = vld [vmem:[%s7688_s27 + $0x4f0] sm:$0xff] }
 0x2fc   : > { %5914 = vmatprep.subr.bf16.mxu0 %v5913_v6  ;;  %6298 = vmatprep.subr.bf16.mxu1 %v6297_v7  ;;  %v5955_v6 = vunpack.c.l.s8.bf16 %v1151_v4  ;;  %v6339_v7 = vunpack.c.l.s8.bf16 %v1153_v5 }
 0x2ff   : > { %5916 = vmatpush1.bf16.msra.mxu0 %v5915_v10  ;;  %6300 = vmatpush1.bf16.msra.mxu1 %v6299_v11  ;;  %v1156_v10 = vld [vmem:[%s7688_s27 + $0x508] sm:$0xff]  ;;  %v1158_v11 = vld [vmem:[%s7688_s27 + $0x518] sm:$0xff] }
 0x300   : > { %5918 = vmatprep.subr.bf16.mxu0 %v5917_v12  ;;  %6302 = vmatprep.subr.bf16.mxu1 %v6301_v13  ;;  %v5959_v12 = vunpack.c.h.s8.bf16 %v1151_v4  ;;  %v6343_v13 = vunpack.c.h.s8.bf16 %v1153_v5  ;;  %v5961_v14 = vunpack.c.l.s8.bf16 %v1156_v10  ;;  %v6345_v15 = vunpack.c.l.s8.bf16 %v1158_v11 }
 0x301   : > { %v5965_v21 = vunpack.c.h.s8.bf16 %v1156_v10 }
 0x303   : > { %5920 = vmatpush1.bf16.msra.mxu0 %v5919_v16  ;;  %6304 = vmatpush1.bf16.msra.mxu1 %v6303_v17  ;;  %v1155_v16 = vld [vmem:[%s7688_s27 + $0x500] sm:$0xff]  ;;  %v1157_v17 = vld [vmem:[%s7688_s27 + $0x510] sm:$0xff] }
 0x304   : > { %5922 = vmatprep.subr.bf16.mxu0 %v5921_v18  ;;  %6306 = vmatprep.subr.bf16.mxu1 %v6305_v19  ;;  %v2731_v18 = vld [vmem:[#allocation2 + $0x40] sm:$0xff]  ;;  %v5963_v19 = vunpack.c.l.s8.bf16 %v1155_v16  ;;  %v6347_v20 = vunpack.c.l.s8.bf16 %v1157_v17  ;;  %v5967_v26 = vunpack.c.h.s8.bf16 %v1155_v16  ;;  %v6351_v27 = vunpack.c.h.s8.bf16 %v1157_v17 }
 0x307   : > { %5924 = vmatpush1.bf16.msra.mxu0 %v5923_v22  ;;  %6308 = vmatpush1.bf16.msra.mxu1 %v6307_v23  ;;  %v6349_v22 = vunpack.c.h.s8.bf16 %v1158_v11  ;;  %v1160_v23 = vld [vmem:[%s7688_s27 + $0x528] sm:$0xff] }
 0x308   : > { %5926 = vmatprep.subr.bf16.mxu0 %v5925_v24  ;;  %6310 = vmatprep.subr.bf16.mxu1 %v6309_v25  ;;  %v1162_v24 = vld [vmem:[%s7688_s27 + $0x538] sm:$0xff] }
 0x309   : > { %v2734_v25 = vld [vmem:[#allocation2 + $0x58] sm:$0xff] }
 0x30b   : > { %5928 = vmatpush1.bf16.msra.mxu0 %v5927_v28  ;;  %6312 = vmatpush1.bf16.msra.mxu1 %v6311_v31  ;;  %v5969_v28 = vunpack.c.l.s8.bf16 %v1160_v23  ;;  %v6353_v31 = vunpack.c.l.s8.bf16 %v1162_v24 }
 0x30c   : > { %5930 = vmatprep.subr.bf16.mxu0 %v5929_v34  ;;  %6314 = vmatprep.subr.bf16.mxu1 %v6313_v35  ;;  %v1159_v34 = vld [vmem:[%s7688_s27 + $0x520] sm:$0xff]  ;;  %v1161_v35 = vld [vmem:[%s7688_s27 + $0x530] sm:$0xff] }
 0x30d   : > { %v5971_v36 = vunpack.c.l.s8.bf16 %v1159_v34  ;;  %v6355_v29 = vunpack.c.l.s8.bf16 %v1161_v35  ;;  %v5975_v38 = vunpack.c.h.s8.bf16 %v1159_v34  ;;  %v6359_v39 = vunpack.c.h.s8.bf16 %v1161_v35 }
 0x30f   : > { %5932 = vmatpush1.bf16.msra.mxu0 %v5931_v30  ;;  %6316 = vmatpush1.bf16.msra.mxu1 %v6315_v32  ;;  %v5973_v30 = vunpack.c.h.s8.bf16 %v1160_v23  ;;  %v6357_v32 = vunpack.c.h.s8.bf16 %v1162_v24 }
 0x310   : > { %5934 = vmatprep.subr.bf16.mxu0 %v5933_v33  ;;  %6318 = vmatprep.subr.bf16.mxu1 %v6317_v37  ;;  %v1164_v33 = vld [vmem:[%s7688_s27 + $0x548] sm:$0xff]  ;;  %v1166_v37 = vld [vmem:[%s7688_s27 + $0x558] sm:$0xff] }
 0x313   : > { %5936 = vmatpush1.bf16.msra.mxu0 %v5935_v40  ;;  %6320 = vmatpush1.bf16.msra.mxu1 %v6319_v41  ;;  %v5977_v40 = vunpack.c.l.s8.bf16 %v1164_v33  ;;  %v6361_v41 = vunpack.c.l.s8.bf16 %v1166_v37 }
 0x314   : > { %5938 = vmatprep.subr.bf16.mxu0 %v5937_v42  ;;  %6322 = vmatprep.subr.bf16.mxu1 %v6321_v43  ;;  %v1163_v42 = vld [vmem:[%s7688_s27 + $0x540] sm:$0xff]  ;;  %v1165_v43 = vld [vmem:[%s7688_s27 + $0x550] sm:$0xff] }
 0x315   : > { %v5979_v44 = vunpack.c.l.s8.bf16 %v1163_v42  ;;  %v6363_v45 = vunpack.c.l.s8.bf16 %v1165_v43  ;;  %v5983_v50 = vunpack.c.h.s8.bf16 %v1163_v42  ;;  %v6367_v51 = vunpack.c.h.s8.bf16 %v1165_v43 }
 0x317   : > { %5940 = vmatpush1.bf16.msra.mxu0 %v5939_v46  ;;  %6324 = vmatpush1.bf16.msra.mxu1 %v6323_v47  ;;  %v5981_v46 = vunpack.c.h.s8.bf16 %v1164_v33  ;;  %v6365_v47 = vunpack.c.h.s8.bf16 %v1166_v37 }
 0x318   : > { %5942 = vmatprep.subr.bf16.mxu0 %v5941_v48  ;;  %6326 = vmatprep.subr.bf16.mxu1 %v6325_v49  ;;  %v1168_v48 = vld [vmem:[%s7688_s27 + $0x568] sm:$0xff]  ;;  %v1170_v49 = vld [vmem:[%s7688_s27 + $0x578] sm:$0xff] }
 0x31b   : > { %5944 = vmatpush1.bf16.msra.mxu0 %v5943_v52  ;;  %6328 = vmatpush1.bf16.msra.mxu1 %v6327_v53  ;;  %v5985_v52 = vunpack.c.l.s8.bf16 %v1168_v48  ;;  %v6369_v53 = vunpack.c.l.s8.bf16 %v1170_v49 }
 0x31c   : > { %5946 = vmatprep.subr.bf16.mxu0 %v5945_v54  ;;  %6330 = vmatprep.subr.bf16.mxu1 %v6329_v55  ;;  %v1167_v54 = vld [vmem:[%s7688_s27 + $0x560] sm:$0xff]  ;;  %v1169_v55 = vld [vmem:[%s7688_s27 + $0x570] sm:$0xff] }
 0x31d   : > { %v5987_v56 = vunpack.c.l.s8.bf16 %v1167_v54  ;;  %v6371_v57 = vunpack.c.l.s8.bf16 %v1169_v55  ;;  %v5991_v62 = vunpack.c.h.s8.bf16 %v1167_v54  ;;  %v6375_v63 = vunpack.c.h.s8.bf16 %v1169_v55 }
 0x31f   : > { %5948 = vmatpush1.bf16.msra.mxu0 %v5947_v58  ;;  %6332 = vmatpush1.bf16.msra.mxu1 %v6331_v59  ;;  %v5989_v58 = vunpack.c.h.s8.bf16 %v1168_v48  ;;  %v6373_v59 = vunpack.c.h.s8.bf16 %v1170_v49 }
 0x320   : > { %5950 = vmatprep.subr.bf16.mxu0 %v5949_v60  ;;  %6334 = vmatprep.subr.bf16.mxu1 %v6333_v61  ;;  %v1172_v60 = vld [vmem:[%s7688_s27 + $0x588] sm:$0xff]  ;;  %v1174_v61 = vld [vmem:[%s7688_s27 + $0x598] sm:$0xff] }
 0x323   : > { %5952 = vmatpush1.bf16.msra.mxu0 %v5951_v0  ;;  %6336 = vmatpush1.bf16.msra.mxu1 %v6335_v1  ;;  %v5993_v0 = vunpack.c.l.s8.bf16 %v1172_v60  ;;  %v6377_v1 = vunpack.c.l.s8.bf16 %v1174_v61 }
 0x324   : > { %5954 = vmatprep.subr.bf16.mxu0 %v5953_v2  ;;  %6338 = vmatprep.subr.bf16.mxu1 %v6337_v3  ;;  %v1171_v2 = vld [vmem:[%s7688_s27 + $0x580] sm:$0xff]  ;;  %v1173_v3 = vld [vmem:[%s7688_s27 + $0x590] sm:$0xff] }
 0x325   : > { %v5995_v4 = vunpack.c.l.s8.bf16 %v1171_v2  ;;  %v6379_v5 = vunpack.c.l.s8.bf16 %v1173_v3  ;;  %v5999_v10 = vunpack.c.h.s8.bf16 %v1171_v2  ;;  %v6383_v11 = vunpack.c.h.s8.bf16 %v1173_v3 }
 0x327   : > { %5956 = vmatpush1.bf16.msra.mxu0 %v5955_v6  ;;  %6340 = vmatpush1.bf16.msra.mxu1 %v6339_v7  ;;  %v5997_v6 = vunpack.c.h.s8.bf16 %v1172_v60  ;;  %v6381_v7 = vunpack.c.h.s8.bf16 %v1174_v61 }
 0x328   : > { %5958 = vmatprep.subr.bf16.mxu0 %v5957_v8  ;;  %6342 = vmatprep.subr.bf16.mxu1 %v6341_v9  ;;  %v1176_v8 = vld [vmem:[%s7688_s27 + $0x5a8] sm:$0xff]  ;;  %v1178_v9 = vld [vmem:[%s7688_s27 + $0x5b8] sm:$0xff] }
 0x32b   : > { %5960 = vmatpush1.bf16.msra.mxu0 %v5959_v12  ;;  %6344 = vmatpush1.bf16.msra.mxu1 %v6343_v13  ;;  %v6001_v12 = vunpack.c.l.s8.bf16 %v1176_v8  ;;  %v6385_v13 = vunpack.c.l.s8.bf16 %v1178_v9 }
 0x32c   : > { %5962 = vmatprep.subr.bf16.mxu0 %v5961_v14  ;;  %6346 = vmatprep.subr.bf16.mxu1 %v6345_v15  ;;  %v1175_v14 = vld [vmem:[%s7688_s27 + $0x5a0] sm:$0xff]  ;;  %v1177_v15 = vld [vmem:[%s7688_s27 + $0x5b0] sm:$0xff] }
 0x32d   : > { %v6003_v16 = vunpack.c.l.s8.bf16 %v1175_v14  ;;  %v6387_v17 = vunpack.c.l.s8.bf16 %v1177_v15  ;;  %v6391_v23 = vunpack.c.h.s8.bf16 %v1177_v15 }
 0x32e   : > { %3084 = vmatmul.mubr.f32.vlgmr.msra.gmra.mrb[0].mxu0 %v2731_v18  ;;  %3510 = vmatmul.mubr.f32.vlgmr.msra.gmra.mrb[0].mxu1 %v2731_v18  ;;  %v6005_v18 = vunpack.c.h.s8.bf16 %v1176_v8 }
 0x32f   : > { %5964 = vmatpush1.bf16.msra.mxu0 %v5963_v19  ;;  %6348 = vmatpush1.bf16.msra.mxu1 %v6347_v20  ;;  %v6389_v19 = vunpack.c.h.s8.bf16 %v1178_v9  ;;  %v1180_v20 = vld [vmem:[%s7688_s27 + $0x5c8] sm:$0xff] }
 0x330   : > { %5966 = vmatprep.subr.bf16.mxu0 %v5965_v21  ;;  %6350 = vmatprep.subr.bf16.mxu1 %v6349_v22  ;;  %v1182_v21 = vld [vmem:[%s7688_s27 + $0x5d8] sm:$0xff]  ;;  %v6007_v22 = vunpack.c.h.s8.bf16 %v1175_v14  ;;  %v6009_v24 = vunpack.c.l.s8.bf16 %v1180_v20  ;;  %v6013_v34 = vunpack.c.h.s8.bf16 %v1180_v20 }
 0x331   : > { %3154 = vmatprep.mubr.f32.mxu0 %v2734_v25  ;;  %3580 = vmatprep.mubr.f32.mxu1 %v2734_v25  ;;  %v6393_v25 = vunpack.c.l.s8.bf16 %v1182_v21  ;;  %v6397_v35 = vunpack.c.h.s8.bf16 %v1182_v21 }
 0x333   : > { %5968 = vmatpush1.bf16.msra.mxu0 %v5967_v26  ;;  %6352 = vmatpush1.bf16.msra.mxu1 %v6351_v27  ;;  %v1179_v26 = vld [vmem:[%s7688_s27 + $0x5c0] sm:$0xff]  ;;  %v1181_v27 = vld [vmem:[%s7688_s27 + $0x5d0] sm:$0xff] }
 0x334   : > { %5970 = vmatprep.subr.bf16.mxu0 %v5969_v28  ;;  %6354 = vmatprep.subr.bf16.mxu1 %v6353_v31  ;;  %v6011_v28 = vunpack.c.l.s8.bf16 %v1179_v26  ;;  %v6395_v31 = vunpack.c.l.s8.bf16 %v1181_v27 }
 0x337   : > { %5972 = vmatpush1.bf16.msra.mxu0 %v5971_v36  ;;  %6356 = vmatpush1.bf16.msra.mxu1 %v6355_v29  ;;  %v1184_v36 = vld [vmem:[%s7688_s27 + $0x5e8] sm:$0xff]  ;;  %v1186_v29 = vld [vmem:[%s7688_s27 + $0x5f8] sm:$0xff] }
 0x338   : > { %5974 = vmatprep.subr.bf16.mxu0 %v5973_v30  ;;  %6358 = vmatprep.subr.bf16.mxu1 %v6357_v32  ;;  %v6015_v30 = vunpack.c.h.s8.bf16 %v1179_v26  ;;  %v6399_v32 = vunpack.c.h.s8.bf16 %v1181_v27  ;;  %v6017_v33 = vunpack.c.l.s8.bf16 %v1184_v36  ;;  %v6401_v37 = vunpack.c.l.s8.bf16 %v1186_v29 }
 0x339   : > { %v6021_v42 = vunpack.c.h.s8.bf16 %v1184_v36  ;;  %v6405_v43 = vunpack.c.h.s8.bf16 %v1186_v29 }
 0x33b   : > { %5976 = vmatpush1.bf16.msra.mxu0 %v5975_v38  ;;  %6360 = vmatpush1.bf16.msra.mxu1 %v6359_v39  ;;  %v1183_v38 = vld [vmem:[%s7688_s27 + $0x5e0] sm:$0xff]  ;;  %v1185_v39 = vld [vmem:[%s7688_s27 + $0x5f0] sm:$0xff] }
 0x33c   : > { %5978 = vmatprep.subr.bf16.mxu0 %v5977_v40  ;;  %6362 = vmatprep.subr.bf16.mxu1 %v6361_v41  ;;  %v6019_v40 = vunpack.c.l.s8.bf16 %v1183_v38  ;;  %v6403_v41 = vunpack.c.l.s8.bf16 %v1185_v39 }
 0x33f   : > { %5980 = vmatpush1.bf16.msra.mxu0 %v5979_v44  ;;  %6364 = vmatpush1.bf16.msra.mxu1 %v6363_v45  ;;  %v3644_v44 = vld [vmem:[%s7698_s23 + $0x8] sm:$0xff]  ;;  %v3646_v45 = vld [vmem:[%s7698_s23 + $0x18] sm:$0xff] }
 0x340   : > { %5982 = vmatprep.subr.bf16.mxu0 %v5981_v46  ;;  %6366 = vmatprep.subr.bf16.mxu1 %v6365_v47  ;;  %v6023_v46 = vunpack.c.h.s8.bf16 %v1183_v38  ;;  %v6407_v47 = vunpack.c.h.s8.bf16 %v1185_v39  ;;  %v6409_v48 = vunpack.c.l.s8.bf16 %v3644_v44  ;;  %v6537_v49 = vunpack.c.l.s8.bf16 %v3646_v45 }
 0x341   : > { %v6413_v55 = vunpack.c.h.s8.bf16 %v3644_v44 }
 0x343   : > { %5984 = vmatpush1.bf16.msra.mxu0 %v5983_v50  ;;  %6368 = vmatpush1.bf16.msra.mxu1 %v6367_v51  ;;  %v3643_v50 = vld [vmem:[%s7698_s23] sm:$0xff]  ;;  %v3645_v51 = vld [vmem:[%s7698_s23 + $0x10] sm:$0xff] }
 0x344   : > { %5986 = vmatprep.subr.bf16.mxu0 %v5985_v52  ;;  %6370 = vmatprep.subr.bf16.mxu1 %v6369_v53  ;;  %v2733_v52 = vld [vmem:[#allocation2 + $0x50] sm:$0xff]  ;;  %v6411_v53 = vunpack.c.l.s8.bf16 %v3643_v50  ;;  %v6539_v54 = vunpack.c.l.s8.bf16 %v3645_v51  ;;  %v6543_v60 = vunpack.c.h.s8.bf16 %v3645_v51 }
 0x347   : > { %5988 = vmatpush1.bf16.msra.mxu0 %v5987_v56  ;;  %6372 = vmatpush1.bf16.msra.mxu1 %v6371_v57  ;;  %v6541_v56 = vunpack.c.h.s8.bf16 %v3646_v45  ;;  %v3651_v57 = vld [vmem:[%s7698_s23 + $0x40] sm:$0xff] }
 0x348   : > { %5990 = vmatprep.subr.bf16.mxu0 %v5989_v58  ;;  %6374 = vmatprep.subr.bf16.mxu1 %v6373_v59  ;;  %v3653_v58 = vld [vmem:[%s7698_s23 + $0x50] sm:$0xff]  ;;  %v6415_v59 = vunpack.c.h.s8.bf16 %v3643_v50  ;;  %v6417_v61 = vunpack.c.l.s8.bf16 %v3651_v57  ;;  %v6421_v3 = vunpack.c.h.s8.bf16 %v3651_v57 }
 0x34b   : > { %5992 = vmatpush1.bf16.msra.mxu0 %v5991_v62  ;;  %6376 = vmatpush1.bf16.msra.mxu1 %v6375_v63  ;;  %v6545_v62 = vunpack.c.l.s8.bf16 %v3653_v58  ;;  %v3650_v63 = vld [vmem:[%s7698_s23 + $0x38] sm:$0xff] }
 0x34c   : > { %5994 = vmatprep.subr.bf16.mxu0 %v5993_v0  ;;  %6378 = vmatprep.subr.bf16.mxu1 %v6377_v1  ;;  %v3652_v0 = vld [vmem:[%s7698_s23 + $0x48] sm:$0xff]  ;;  %v6419_v1 = vunpack.c.l.s8.bf16 %v3650_v63 }
 0x34d   : > { %v6547_v2 = vunpack.c.l.s8.bf16 %v3652_v0  ;;  %v6551_v8 = vunpack.c.h.s8.bf16 %v3652_v0 }
 0x34f   : > { %5996 = vmatpush1.bf16.msra.mxu0 %v5995_v4  ;;  %6380 = vmatpush1.bf16.msra.mxu1 %v6379_v5  ;;  %v6549_v4 = vunpack.c.h.s8.bf16 %v3653_v58  ;;  %v3658_v5 = vld [vmem:[%s7698_s23 + $0x78] sm:$0xff] }
 0x350   : > { %5998 = vmatprep.subr.bf16.mxu0 %v5997_v6  ;;  %6382 = vmatprep.subr.bf16.mxu1 %v6381_v7  ;;  %v3660_v6 = vld [vmem:[%s7698_s23 + $0x88] sm:$0xff]  ;;  %v6423_v7 = vunpack.c.h.s8.bf16 %v3650_v63  ;;  %v6425_v9 = vunpack.c.l.s8.bf16 %v3658_v5  ;;  %v6429_v15 = vunpack.c.h.s8.bf16 %v3658_v5 }
 0x353   : > { %6000 = vmatpush1.bf16.msra.mxu0 %v5999_v10  ;;  %6384 = vmatpush1.bf16.msra.mxu1 %v6383_v11  ;;  %v6553_v10 = vunpack.c.l.s8.bf16 %v3660_v6  ;;  %v3657_v11 = vld [vmem:[%s7698_s23 + $0x70] sm:$0xff] }
 0x354   : > { %6002 = vmatprep.subr.bf16.mxu0 %v6001_v12  ;;  %6386 = vmatprep.subr.bf16.mxu1 %v6385_v13  ;;  %v3659_v12 = vld [vmem:[%s7698_s23 + $0x80] sm:$0xff]  ;;  %v6427_v13 = vunpack.c.l.s8.bf16 %v3657_v11 }
 0x355   : > { %v6555_v14 = vunpack.c.l.s8.bf16 %v3659_v12  ;;  %v6559_v20 = vunpack.c.h.s8.bf16 %v3659_v12  ;;  %v3694_v12 = vld [vmem:[%s7698_s23 + $0x198] sm:$0xff] }
 0x357   : > { %6004 = vmatpush1.bf16.msra.mxu0 %v6003_v16  ;;  %6388 = vmatpush1.bf16.msra.mxu1 %v6387_v17  ;;  %v6557_v16 = vunpack.c.h.s8.bf16 %v3660_v6  ;;  %v3665_v17 = vld [vmem:[%s7698_s23 + $0xb0] sm:$0xff] }
 0x358   : > { %6006 = vmatprep.subr.bf16.mxu0 %v6005_v18  ;;  %6390 = vmatprep.subr.bf16.mxu1 %v6389_v19  ;;  %v3667_v18 = vld [vmem:[%s7698_s23 + $0xc0] sm:$0xff]  ;;  %v6431_v19 = vunpack.c.h.s8.bf16 %v3657_v11  ;;  %v6433_v21 = vunpack.c.l.s8.bf16 %v3665_v17  ;;  %v6437_v27 = vunpack.c.h.s8.bf16 %v3665_v17  ;;  %v3693_v6 = vld [vmem:[%s7698_s23 + $0x190] sm:$0xff]  ;;  %v3692_v11 = vld [vmem:[%s7698_s23 + $0x188] sm:$0xff] }
 0x35b   : > { %6008 = vmatpush1.bf16.msra.mxu0 %v6007_v22  ;;  %6392 = vmatpush1.bf16.msra.mxu1 %v6391_v23  ;;  %v6561_v22 = vunpack.c.l.s8.bf16 %v3667_v18  ;;  %v3664_v23 = vld [vmem:[%s7698_s23 + $0xa8] sm:$0xff] }
 0x35c   : > { %6010 = vmatprep.subr.bf16.mxu0 %v6009_v24  ;;  %6394 = vmatprep.subr.bf16.mxu1 %v6393_v25  ;;  %v3666_v24 = vld [vmem:[%s7698_s23 + $0xb8] sm:$0xff]  ;;  %v6435_v25 = vunpack.c.l.s8.bf16 %v3664_v23 }
 0x35d   : > { %v6563_v26 = vunpack.c.l.s8.bf16 %v3666_v24  ;;  %v6567_v36 = vunpack.c.h.s8.bf16 %v3666_v24 }
 0x35f   : > { %6012 = vmatpush1.bf16.msra.mxu0 %v6011_v28  ;;  %6396 = vmatpush1.bf16.msra.mxu1 %v6395_v31  ;;  %v6565_v28 = vunpack.c.h.s8.bf16 %v3667_v18  ;;  %v3672_v31 = vld [vmem:[%s7698_s23 + $0xe8] sm:$0xff]  ;;  %v6469_v18 = vunpack.c.h.s8.bf16 %v3693_v6 }
 0x360   : > { %6014 = vmatprep.subr.bf16.mxu0 %v6013_v34  ;;  %6398 = vmatprep.subr.bf16.mxu1 %v6397_v35  ;;  %v3674_v34 = vld [vmem:[%s7698_s23 + $0xf8] sm:$0xff]  ;;  %v6439_v35 = vunpack.c.h.s8.bf16 %v3664_v23  ;;  %v6441_v29 = vunpack.c.l.s8.bf16 %v3672_v31  ;;  %v6445_v39 = vunpack.c.h.s8.bf16 %v3672_v31 }
 0x361   : > { %v3702_v23 = vld [vmem:[%s7698_s23 + $0x1d8] sm:$0xff] }
 0x363   : > { %6016 = vmatpush1.bf16.msra.mxu0 %v6015_v30  ;;  %6400 = vmatpush1.bf16.msra.mxu1 %v6399_v32  ;;  %v6569_v30 = vunpack.c.l.s8.bf16 %v3674_v34  ;;  %v3671_v32 = vld [vmem:[%s7698_s23 + $0xe0] sm:$0xff] }
 0x364   : > { %6018 = vmatprep.subr.bf16.mxu0 %v6017_v33  ;;  %6402 = vmatprep.subr.bf16.mxu1 %v6401_v37  ;;  %v3673_v33 = vld [vmem:[%s7698_s23 + $0xf0] sm:$0xff]  ;;  %v6443_v37 = vunpack.c.l.s8.bf16 %v3671_v32 }
 0x365   : > { %v6571_v38 = vunpack.c.l.s8.bf16 %v3673_v33  ;;  %v6575_v44 = vunpack.c.h.s8.bf16 %v3673_v33 }
 0x367   : > { %6020 = vmatpush1.bf16.msra.mxu0 %v6019_v40  ;;  %6404 = vmatpush1.bf16.msra.mxu1 %v6403_v41  ;;  %v6573_v40 = vunpack.c.h.s8.bf16 %v3674_v34  ;;  %v3679_v41 = vld [vmem:[%s7698_s23 + $0x120] sm:$0xff] }
 0x368   : > { %6022 = vmatprep.subr.bf16.mxu0 %v6021_v42  ;;  %6406 = vmatprep.subr.bf16.mxu1 %v6405_v43  ;;  %v3681_v42 = vld [vmem:[%s7698_s23 + $0x130] sm:$0xff]  ;;  %v6447_v43 = vunpack.c.h.s8.bf16 %v3671_v32  ;;  %v6449_v45 = vunpack.c.l.s8.bf16 %v3679_v41  ;;  %v6453_v51 = vunpack.c.h.s8.bf16 %v3679_v41 }
 0x36b   : > { %6024 = vmatpush1.bf16.msra.mxu0 %v6023_v46  ;;  %6408 = vmatpush1.bf16.msra.mxu1 %v6407_v47  ;;  %v6577_v46 = vunpack.c.l.s8.bf16 %v3681_v42  ;;  %v3678_v47 = vld [vmem:[%s7698_s23 + $0x118] sm:$0xff] }
 0x36c   : > { %6410 = vmatprep.subr.bf16.mxu0 %v6409_v48  ;;  %6538 = vmatprep.subr.bf16.mxu1 %v6537_v49  ;;  %v3680_v48 = vld [vmem:[%s7698_s23 + $0x128] sm:$0xff]  ;;  %v6451_v49 = vunpack.c.l.s8.bf16 %v3678_v47 }
 0x36d   : > { %v6579_v50 = vunpack.c.l.s8.bf16 %v3680_v48 }
 0x36e   : > { %3155 = vmatmul.mubr.f32.vlgmr.msra.gmra.mrb[0].mxu0 %v2733_v52  ;;  %3581 = vmatmul.mubr.f32.vlgmr.msra.gmra.mrb[0].mxu1 %v2733_v52  ;;  %v6581_v52 = vunpack.c.h.s8.bf16 %v3681_v42 }
 0x36f   : > { %6412 = vmatpush1.bf16.msra.mxu0 %v6411_v53  ;;  %6540 = vmatpush1.bf16.msra.mxu1 %v6539_v54  ;;  %v3686_v53 = vld [vmem:[%s7698_s23 + $0x158] sm:$0xff]  ;;  %v3688_v54 = vld [vmem:[%s7698_s23 + $0x168] sm:$0xff] }
 0x370   : > { %6414 = vmatprep.subr.bf16.mxu0 %v6413_v55  ;;  %6542 = vmatprep.subr.bf16.mxu1 %v6541_v56  ;;  %v6455_v55 = vunpack.c.h.s8.bf16 %v3678_v47  ;;  %v6583_v56 = vunpack.c.h.s8.bf16 %v3680_v48  ;;  %v6457_v57 = vunpack.c.l.s8.bf16 %v3686_v53  ;;  %v6585_v58 = vunpack.c.l.s8.bf16 %v3688_v54 }
 0x371   : > { %v6461_v63 = vunpack.c.h.s8.bf16 %v3686_v53  ;;  %v6589_v0 = vunpack.c.h.s8.bf16 %v3688_v54  ;;  %v6605_v54 = vunpack.c.h.s8.bf16 %v3702_v23 }
 0x373   : > { %6416 = vmatpush1.bf16.msra.mxu0 %v6415_v59  ;;  %6544 = vmatpush1.bf16.msra.mxu1 %v6543_v60  ;;  %v3685_v59 = vld [vmem:[%s7698_s23 + $0x150] sm:$0xff]  ;;  %v3687_v60 = vld [vmem:[%s7698_s23 + $0x160] sm:$0xff] }
 0x374   : > { %6418 = vmatprep.subr.bf16.mxu0 %v6417_v61  ;;  %6546 = vmatprep.subr.bf16.mxu1 %v6545_v62  ;;  %v6459_v61 = vunpack.c.l.s8.bf16 %v3685_v59  ;;  %v6587_v62 = vunpack.c.l.s8.bf16 %v3687_v60 }
 0x377   : > { %6420 = vmatpush1.bf16.msra.mxu0 %v6419_v1  ;;  %6548 = vmatpush1.bf16.msra.mxu1 %v6547_v2  ;;  %v6463_v1 = vunpack.c.h.s8.bf16 %v3685_v59  ;;  %v6591_v2 = vunpack.c.h.s8.bf16 %v3687_v60 }
 0x378   : > { %6422 = vmatprep.subr.bf16.mxu0 %v6421_v3  ;;  %6550 = vmatprep.subr.bf16.mxu1 %v6549_v4  ;;  %v3589_v3 = vlaneseq }
 0x37a   : > { %v7949_v4 = vshrl.u32 %v3589_v3, 7 }
 0x37b   : > { %6424 = vmatpush1.bf16.msra.mxu0 %v6423_v7  ;;  %6552 = vmatpush1.bf16.msra.mxu1 %v6551_v8  ;;  %v3695_v7 = vld [vmem:[%s7698_s23 + $0x1a0] sm:$0xff]  ;;  %v3587_v8 = vld [vmem:[%s7694_s11] sm:$0xf] }
 0x37c   : > { %6426 = vmatprep.subr.bf16.mxu0 %v6425_v9  ;;  %6554 = vmatprep.subr.bf16.mxu1 %v6553_v10  ;;  %v7952_v5 = vsub.s32 2, %v7949_v4  ;;  %v6465_v9 = vunpack.c.l.s8.bf16 %v3693_v6  ;;  %v6593_v10 = vunpack.c.l.s8.bf16 %v3695_v7  ;;  %v3714_v6 = vld [vmem:[%s7698_s23 + $0x238] sm:$0xff] }
 0x37f   : > { %6428 = vmatpush1.bf16.msra.mxu0 %v6427_v13  ;;  %6556 = vmatpush1.bf16.msra.mxu1 %v6555_v14  ;;  %v3600_v13 = vrot.slane %v3587_v8, %v7952_v5  ;;  %v6467_v14 = vunpack.c.l.s8.bf16 %v3692_v11 }
 0x380   : > { %6430 = vmatprep.subr.bf16.mxu0 %v6429_v15  ;;  %6558 = vmatprep.subr.bf16.mxu1 %v6557_v16  ;;  %v6595_v15 = vunpack.c.l.s8.bf16 %v3694_v12  ;;  %v3613_v16 = vld [vmem:[%s7696_s17] sm:$0xf] }
 0x381   : > { %v3626_v17 = vrot.slane %v3613_v16, %v7952_v5 }
 0x383   : > { %6432 = vmatpush1.bf16.msra.mxu0 %v6431_v19  ;;  %6560 = vmatpush1.bf16.msra.mxu1 %v6559_v20  ;;  %v6597_v19 = vunpack.c.h.s8.bf16 %v3695_v7  ;;  %v6471_v20 = vunpack.c.h.s8.bf16 %v3692_v11  ;;  %v3716_v7 = vld [vmem:[%s7698_s23 + $0x248] sm:$0xff] }
 0x384   : > { %6434 = vmatprep.subr.bf16.mxu0 %v6433_v21  ;;  %6562 = vmatprep.subr.bf16.mxu1 %v6561_v22  ;;  %v6599_v21 = vunpack.c.h.s8.bf16 %v3694_v12  ;;  %v3700_v22 = vld [vmem:[%s7698_s23 + $0x1c8] sm:$0xff]  ;;  %v6617_v11 = vunpack.c.l.s8.bf16 %v3716_v7  ;;  %v3713_v12 = vld [vmem:[%s7698_s23 + $0x230] sm:$0xff] }
 0x385   : > { %v6473_v24 = vunpack.c.l.s8.bf16 %v3700_v22  ;;  %v6477_v53 = vunpack.c.h.s8.bf16 %v3700_v22 }
 0x387   : > { %6436 = vmatpush1.bf16.msra.mxu0 %v6435_v25  ;;  %6564 = vmatpush1.bf16.msra.mxu1 %v6563_v26  ;;  %v6601_v25 = vunpack.c.l.s8.bf16 %v3702_v23  ;;  %v7965_v26 = vsub.s32 0, %v7949_v4 }
 0x388   : > { %6438 = vmatprep.subr.bf16.mxu0 %v6437_v27  ;;  %6566 = vmatprep.subr.bf16.mxu1 %v6565_v28  ;;  %v7968_v27 = vsub.s32 1, %v7949_v4  ;;  %v7971_v28 = vsub.s32 3, %v7949_v4 }
 0x389   : > { %v3592_v31 = vrot.slane %v3587_v8, %v7965_v26 }
 0x38a   : > { %v3596_v34 = vrot.slane %v3587_v8, %v7968_v27  ;;  %v3622_v32 = vrot.slane %v3613_v16, %v7968_v27 }
 0x38b   : > { %6440 = vmatpush1.bf16.msra.mxu0 %v6439_v35  ;;  %6568 = vmatpush1.bf16.msra.mxu1 %v6567_v36  ;;  %v3604_v35 = vrot.slane %v3587_v8, %v7971_v28  ;;  %v3618_v36 = vrot.slane %v3613_v16, %v7965_v26 }
 0x38c   : > { %6442 = vmatprep.subr.bf16.mxu0 %v6441_v29  ;;  %6570 = vmatprep.subr.bf16.mxu1 %v6569_v30 }
 0x38f   : > { %6444 = vmatpush1.bf16.msra.mxu0 %v6443_v37  ;;  %6572 = vmatpush1.bf16.msra.mxu1 %v6571_v38 }
 0x390   : > { %6446 = vmatprep.subr.bf16.mxu0 %v6445_v39  ;;  %6574 = vmatprep.subr.bf16.mxu1 %v6573_v40  ;;  %v3630_v40 = vrot.slane %v3613_v16, %v7971_v28  ;;  %v6493_v16 = vunpack.c.h.s8.bf16 %v3714_v6 }
 0x393   : > { %6448 = vmatpush1.bf16.msra.mxu0 %v6447_v43  ;;  %6576 = vmatpush1.bf16.msra.mxu1 %v6575_v44 }
 0x394   : > { %6450 = vmatprep.subr.bf16.mxu0 %v6449_v45  ;;  %6578 = vmatprep.subr.bf16.mxu1 %v6577_v46  ;;  %v3699_v45 = vld [vmem:[%s7698_s23 + $0x1c0] sm:$0xff]  ;;  %v3701_v46 = vld [vmem:[%s7698_s23 + $0x1d0] sm:$0xff] }
 0x395   : > { %v6607_v59 = vunpack.c.h.s8.bf16 %v3701_v46 }
 0x397   : > { %6452 = vmatpush1.bf16.msra.mxu0 %v6451_v49  ;;  %6580 = vmatpush1.bf16.msra.mxu1 %v6579_v50  ;;  %v6475_v50 = vunpack.c.l.s8.bf16 %v3699_v45 }
 0x398   : > { %6454 = vmatprep.subr.bf16.mxu0 %v6453_v51  ;;  %6582 = vmatprep.subr.bf16.mxu1 %v6581_v52  ;;  %v6603_v51 = vunpack.c.l.s8.bf16 %v3701_v46  ;;  %v3735_v46 = vld [vmem:[%s7698_s23 + $0x2e0] sm:$0xff] }
 0x39b   : > { %6456 = vmatpush1.bf16.msra.mxu0 %v6455_v55  ;;  %6584 = vmatpush1.bf16.msra.mxu1 %v6583_v56  ;;  %v3707_v55 = vld [vmem:[%s7698_s23 + $0x200] sm:$0xff]  ;;  %v3709_v56 = vld [vmem:[%s7698_s23 + $0x210] sm:$0xff] }
 0x39c   : > { %6458 = vmatprep.subr.bf16.mxu0 %v6457_v57  ;;  %6586 = vmatprep.subr.bf16.mxu1 %v6585_v58  ;;  %v6479_v58 = vunpack.c.h.s8.bf16 %v3699_v45  ;;  %v6481_v60 = vunpack.c.l.s8.bf16 %v3707_v55  ;;  %v6613_v3 = vunpack.c.h.s8.bf16 %v3709_v56 }
 0x39f   : > { %6460 = vmatpush1.bf16.msra.mxu0 %v6459_v61  ;;  %6588 = vmatpush1.bf16.msra.mxu1 %v6587_v62  ;;  %v6609_v61 = vunpack.c.l.s8.bf16 %v3709_v56  ;;  %v3706_v62 = vld [vmem:[%s7698_s23 + $0x1f8] sm:$0xff] }
 0x3a0   : > { %6462 = vmatprep.subr.bf16.mxu0 %v6461_v63  ;;  %6590 = vmatprep.subr.bf16.mxu1 %v6589_v0  ;;  %v3708_v63 = vld [vmem:[%s7698_s23 + $0x208] sm:$0xff]  ;;  %v6483_v0 = vunpack.c.l.s8.bf16 %v3706_v62  ;;  %v6487_v8 = vunpack.c.h.s8.bf16 %v3706_v62 }
 0x3a1   : > { %v3744_v62 = vld [vmem:[%s7698_s23 + $0x328] sm:$0xff] }
 0x3a3   : > { %6464 = vmatpush1.bf16.msra.mxu0 %v6463_v1  ;;  %6592 = vmatpush1.bf16.msra.mxu1 %v6591_v2  ;;  %v6611_v1 = vunpack.c.l.s8.bf16 %v3708_v63  ;;  %v6485_v2 = vunpack.c.h.s8.bf16 %v3707_v55  ;;  %v3736_v55 = vld [vmem:[%s7698_s23 + $0x2e8] sm:$0xff] }
 0x3a4   : > { %6466 = vmatprep.subr.bf16.mxu0 %v6465_v9  ;;  %6594 = vmatprep.subr.bf16.mxu1 %v6593_v10  ;;  %v6615_v9 = vunpack.c.h.s8.bf16 %v3708_v63  ;;  %v6489_v10 = vunpack.c.l.s8.bf16 %v3714_v6  ;;  %v3743_v6 = vld [vmem:[%s7698_s23 + $0x320] sm:$0xff] }
 0x3a7   : > { %6468 = vmatpush1.bf16.msra.mxu0 %v6467_v14  ;;  %6596 = vmatpush1.bf16.msra.mxu1 %v6595_v15  ;;  %v6491_v14 = vunpack.c.l.s8.bf16 %v3713_v12 }
 0x3a8   : > { %6470 = vmatprep.subr.bf16.mxu0 %v6469_v18  ;;  %6598 = vmatprep.subr.bf16.mxu1 %v6597_v19  ;;  %v3721_v18 = vld [vmem:[%s7698_s23 + $0x270] sm:$0xff]  ;;  %v3723_v19 = vld [vmem:[%s7698_s23 + $0x280] sm:$0xff] }
 0x3a9   : > { %v6497_v22 = vunpack.c.l.s8.bf16 %v3721_v18  ;;  %v6625_v23 = vunpack.c.l.s8.bf16 %v3723_v19 }
 0x3ab   : > { %6472 = vmatpush1.bf16.msra.mxu0 %v6471_v20  ;;  %6600 = vmatpush1.bf16.msra.mxu1 %v6599_v21  ;;  %v6495_v20 = vunpack.c.h.s8.bf16 %v3713_v12  ;;  %v3751_v12 = vld [vmem:[%s7698_s23 + $0x360] sm:$0xff] }
 0x3ac   : > { %6474 = vmatprep.subr.bf16.mxu0 %v6473_v24  ;;  %6602 = vmatprep.subr.bf16.mxu1 %v6601_v25  ;;  %v3720_v24 = vld [vmem:[%s7698_s23 + $0x268] sm:$0xff]  ;;  %v3722_v25 = vld [vmem:[%s7698_s23 + $0x278] sm:$0xff] }
 0x441   : > { %v3156_v29 = vpop.f32.mrb[0].mxu0  ;;  %v3582_v30 = vpop.f32.mrb[0].mxu1 }
 0x442   : > { %v3609_v33 = vmul.f32 %v3592_v31, %v3156_v29  ;;  %v3611_v37 = vmul.f32 %v3600_v13, %v3582_v30  ;;  %v3158_v38 = vpop.f32.mrb[1].mxu0  ;;  %v3584_v39 = vpop.f32.mrb[1].mxu1  ;;  %v3715_v13 = vld [vmem:[%s7698_s23 + $0x240] sm:$0xff]  ;;  %v6499_v31 = vunpack.c.l.s8.bf16 %v3720_v24  ;;  %v3728_v29 = vld [vmem:[%s7698_s23 + $0x2a8] sm:$0xff]  ;;  %v3730_v30 = vld [vmem:[%s7698_s23 + $0x2b8] sm:$0xff] }
 0x443   : > { %v3610_v41 = vmul.f32 %v3596_v34, %v3158_v38  ;;  %v3612_v42 = vmul.f32 %v3604_v35, %v3584_v39  ;;  %v6619_v15 = vunpack.c.l.s8.bf16 %v3715_v13  ;;  %v6623_v21 = vunpack.c.h.s8.bf16 %v3715_v13  ;;  %v3727_v39 = vld [vmem:[%s7698_s23 + $0x2a0] sm:$0xff] }
 0x444   : > { %v3635_v43 = vadd.f32 %v3618_v36, %v3609_v33  ;;  %v7979_v44 = vadd.f32 %v3626_v17, %v3611_v37  ;;  %v6621_v17 = vunpack.c.h.s8.bf16 %v3716_v7  ;;  %v6627_v34 = vunpack.c.l.s8.bf16 %v3722_v25 }
 0x445   : > { %v3636_v47 = vadd.f32 %v3622_v32, %v3610_v41  ;;  %v3638_v48 = vadd.f32 %v3630_v40, %v3612_v42  ;;  %v6501_v35 = vunpack.c.h.s8.bf16 %v3721_v18  ;;  %v6629_v36 = vunpack.c.h.s8.bf16 %v3723_v19  ;;  %v3729_v40 = vld [vmem:[%s7698_s23 + $0x2b0] sm:$0xff]  ;;  %v3750_v18 = vld [vmem:[%s7698_s23 + $0x358] sm:$0xff] }
 0x446   : > { %v7985_v52 = vmax.f32 %v3635_v43, 0.0  ;;  %v6503_v32 = vunpack.c.h.s8.bf16 %v3720_v24  ;;  %v6631_v33 = vunpack.c.h.s8.bf16 %v3722_v25  ;;  %v6505_v37 = vunpack.c.l.s8.bf16 %v3728_v29  ;;  %v3677_v24 = vld [vmem:[%s7698_s23 + $0x110] sm:$0xff] }
 0x447   : > { %v7983_v49 = vmax.f32 %v3636_v47, 0.0  ;;  %v7991_v57 = vmax.f32 %v3638_v48, 0.0  ;;  %v6633_v38 = vunpack.c.l.s8.bf16 %v3730_v30  ;;  %v6507_v41 = vunpack.c.l.s8.bf16 %v3727_v39  ;;  %v3737_v47 = vld [vmem:[%s7698_s23 + $0x2f0] sm:$0xff] }
 0x448   : > { %v6635_v42 = vunpack.c.l.s8.bf16 %v3729_v40  ;;  %v6509_v43 = vunpack.c.h.s8.bf16 %v3728_v29  ;;  %v6637_v45 = vunpack.c.h.s8.bf16 %v3730_v30  ;;  %v6511_v48 = vunpack.c.h.s8.bf16 %v3727_v39  ;;  %v3649_v29 = vld [vmem:[%s7698_s23 + $0x30] sm:$0xff]  ;;  %v3655_v39 = vld [vmem:[%s7698_s23 + $0x60] sm:$0xff] }
 0x449   : > { %4722 = vmatprep.mubr.f32.mxu0 %v7983_v49  ;;  %4864 = vmatprep.mubr.f32.mxu1 %v7983_v49 }
 0x44a   : > { %4723 = vmatmul.mubr.f32.vlgmr.msra.gmra.mrb[2].mxu0 %v7985_v52  ;;  %4865 = vmatmul.mubr.f32.vlgmr.msra.gmra.mrb[2].mxu1 %v7985_v52 }
 0x44b   : > { %6476 = vmatpush1.bf16.msra.mxu0 %v6475_v50  ;;  %6604 = vmatpush1.bf16.msra.mxu1 %v6603_v51  ;;  %v6639_v50 = vunpack.c.h.s8.bf16 %v3729_v40  ;;  %v6513_v51 = vunpack.c.l.s8.bf16 %v3735_v46  ;;  %v3684_v40 = vld [vmem:[%s7698_s23 + $0x148] sm:$0xff] }
 0x44c   : > { %4793 = vmatprep.mubr.f32.mxu0 %v7991_v57  ;;  %4935 = vmatprep.mubr.f32.mxu1 %v7991_v57 }
 0x44d   : > { %6478 = vmatprep.subr.bf16.mxu0 %v6477_v53  ;;  %6606 = vmatprep.subr.bf16.mxu1 %v6605_v54  ;;  %v6641_v53 = vunpack.c.l.s8.bf16 %v3737_v47  ;;  %v3734_v54 = vld [vmem:[%s7698_s23 + $0x2d8] sm:$0xff] }
 0x44e   : > { %v6515_v56 = vunpack.c.l.s8.bf16 %v3734_v54  ;;  %v6519_v63 = vunpack.c.h.s8.bf16 %v3734_v54 }
 0x44f   : > { %6480 = vmatpush1.bf16.msra.mxu0 %v6479_v58  ;;  %6608 = vmatpush1.bf16.msra.mxu1 %v6607_v59  ;;  %v6643_v58 = vunpack.c.l.s8.bf16 %v3736_v55  ;;  %v6517_v59 = vunpack.c.h.s8.bf16 %v3735_v46  ;;  %v3656_v46 = vld [vmem:[%s7698_s23 + $0x68] sm:$0xff] }
 0x450   : > { %6482 = vmatprep.subr.bf16.mxu0 %v6481_v60  ;;  %6610 = vmatprep.subr.bf16.mxu1 %v6609_v61  ;;  %v6645_v60 = vunpack.c.h.s8.bf16 %v3737_v47  ;;  %v3742_v61 = vld [vmem:[%s7698_s23 + $0x318] sm:$0xff] }
 0x453   : > { %6484 = vmatpush1.bf16.msra.mxu0 %v6483_v0  ;;  %6612 = vmatpush1.bf16.msra.mxu1 %v6611_v1  ;;  %v6647_v0 = vunpack.c.h.s8.bf16 %v3736_v55  ;;  %v6521_v1 = vunpack.c.l.s8.bf16 %v3742_v61  ;;  %v6807_v55 = vunpack.c.h.s8.bf16 %v3656_v46 }
 0x454   : > { %6486 = vmatprep.subr.bf16.mxu0 %v6485_v2  ;;  %6614 = vmatprep.subr.bf16.mxu1 %v6613_v3  ;;  %v6649_v2 = vunpack.c.l.s8.bf16 %v3744_v62  ;;  %v3741_v3 = vld [vmem:[%s7698_s23 + $0x310] sm:$0xff] }
 0x455   : > { %v6523_v7 = vunpack.c.l.s8.bf16 %v3741_v3  ;;  %v6527_v13 = vunpack.c.h.s8.bf16 %v3741_v3 }
 0x457   : > { %6488 = vmatpush1.bf16.msra.mxu0 %v6487_v8  ;;  %6616 = vmatpush1.bf16.msra.mxu1 %v6615_v9  ;;  %v6651_v8 = vunpack.c.l.s8.bf16 %v3743_v6  ;;  %v6525_v9 = vunpack.c.h.s8.bf16 %v3742_v61 }
 0x458   : > { %6490 = vmatprep.subr.bf16.mxu0 %v6489_v10  ;;  %6618 = vmatprep.subr.bf16.mxu1 %v6617_v11  ;;  %v6653_v10 = vunpack.c.h.s8.bf16 %v3744_v62  ;;  %v3749_v11 = vld [vmem:[%s7698_s23 + $0x350] sm:$0xff] }
 0x45b   : > { %6492 = vmatpush1.bf16.msra.mxu0 %v6491_v14  ;;  %6620 = vmatpush1.bf16.msra.mxu1 %v6619_v15  ;;  %v6655_v14 = vunpack.c.h.s8.bf16 %v3743_v6  ;;  %v6529_v15 = vunpack.c.l.s8.bf16 %v3749_v11 }
 0x45c   : > { %6494 = vmatprep.subr.bf16.mxu0 %v6493_v16  ;;  %6622 = vmatprep.subr.bf16.mxu1 %v6621_v17  ;;  %v6657_v16 = vunpack.c.l.s8.bf16 %v3751_v12  ;;  %v3748_v17 = vld [vmem:[%s7698_s23 + $0x348] sm:$0xff] }
 0x45d   : > { %v6531_v19 = vunpack.c.l.s8.bf16 %v3748_v17  ;;  %v6535_v25 = vunpack.c.h.s8.bf16 %v3748_v17 }
 0x45f   : > { %6496 = vmatpush1.bf16.msra.mxu0 %v6495_v20  ;;  %6624 = vmatpush1.bf16.msra.mxu1 %v6623_v21  ;;  %v6659_v20 = vunpack.c.l.s8.bf16 %v3750_v18  ;;  %v6533_v21 = vunpack.c.h.s8.bf16 %v3749_v11 }
 0x460   : > { %6498 = vmatprep.subr.bf16.mxu0 %v6497_v22  ;;  %6626 = vmatprep.subr.bf16.mxu1 %v6625_v23  ;;  %v6661_v22 = vunpack.c.h.s8.bf16 %v3751_v12  ;;  %v3648_v23 = vld [vmem:[%s7698_s23 + $0x28] sm:$0xff] }
 0x463   : > { %6500 = vmatpush1.bf16.msra.mxu0 %v6499_v31  ;;  %6628 = vmatpush1.bf16.msra.mxu1 %v6627_v34  ;;  %v6663_v31 = vunpack.c.h.s8.bf16 %v3750_v18  ;;  %v6665_v34 = vunpack.c.l.s8.bf16 %v3648_v23 }
 0x464   : > { %6502 = vmatprep.subr.bf16.mxu0 %v6501_v35  ;;  %6630 = vmatprep.subr.bf16.mxu1 %v6629_v36  ;;  %v6793_v35 = vunpack.c.l.s8.bf16 %v3677_v24  ;;  %v3647_v36 = vld [vmem:[%s7698_s23 + $0x20] sm:$0xff] }
 0x465   : > { %v6667_v30 = vunpack.c.l.s8.bf16 %v3647_v36 }
 0x467   : > { %6504 = vmatpush1.bf16.msra.mxu0 %v6503_v32  ;;  %6632 = vmatpush1.bf16.msra.mxu1 %v6631_v33  ;;  %v8028_v32 = vmax.f32 %v7979_v44, 0.0  ;;  %v6795_v33 = vunpack.c.l.s8.bf16 %v3649_v29  ;;  %v6799_v44 = vunpack.c.h.s8.bf16 %v3649_v29 }
 0x468   : > { %6506 = vmatprep.subr.bf16.mxu0 %v6505_v37  ;;  %6634 = vmatprep.subr.bf16.mxu1 %v6633_v38  ;;  %v6669_v37 = vunpack.c.h.s8.bf16 %v3648_v23  ;;  %v6797_v38 = vunpack.c.h.s8.bf16 %v3677_v24 }
 0x46b   : > { %6508 = vmatpush1.bf16.msra.mxu0 %v6507_v41  ;;  %6636 = vmatpush1.bf16.msra.mxu1 %v6635_v42  ;;  %v6671_v41 = vunpack.c.h.s8.bf16 %v3647_v36  ;;  %v6673_v42 = vunpack.c.l.s8.bf16 %v3655_v39 }
 0x46c   : > { %6510 = vmatprep.subr.bf16.mxu0 %v6509_v43  ;;  %6638 = vmatprep.subr.bf16.mxu1 %v6637_v45  ;;  %v3654_v43 = vld [vmem:[%s7698_s23 + $0x58] sm:$0xff]  ;;  %v6801_v45 = vunpack.c.l.s8.bf16 %v3684_v40 }
 0x46d   : > { %v6675_v47 = vunpack.c.l.s8.bf16 %v3654_v43  ;;  %v6679_v54 = vunpack.c.h.s8.bf16 %v3654_v43  ;;  %v3747_v43 = vld [vmem:[%s7698_s23 + $0x340] sm:$0xff] }
 0x46f   : > { %6512 = vmatpush1.bf16.msra.mxu0 %v6511_v48  ;;  %6640 = vmatpush1.bf16.msra.mxu1 %v6639_v50  ;;  %v6803_v48 = vunpack.c.l.s8.bf16 %v3656_v46  ;;  %v6677_v50 = vunpack.c.h.s8.bf16 %v3655_v39 }
 0x470   : > { %6514 = vmatprep.subr.bf16.mxu0 %v6513_v51  ;;  %6642 = vmatprep.subr.bf16.mxu1 %v6641_v53  ;;  %v6805_v51 = vunpack.c.h.s8.bf16 %v3684_v40  ;;  %v3691_v53 = vld [vmem:[%s7698_s23 + $0x180] sm:$0xff] }
 0x473   : > { %6516 = vmatpush1.bf16.msra.mxu0 %v6515_v56  ;;  %6644 = vmatpush1.bf16.msra.mxu1 %v6643_v58  ;;  %v3661_v58 = vld [vmem:[%s7698_s23 + $0x90] sm:$0xff] }
 0x474   : > { %6518 = vmatprep.subr.bf16.mxu0 %v6517_v59  ;;  %6646 = vmatprep.subr.bf16.mxu1 %v6645_v60  ;;  %v6809_v59 = vunpack.c.l.s8.bf16 %v3691_v53  ;;  %v3663_v60 = vld [vmem:[%s7698_s23 + $0xa0] sm:$0xff]  ;;  %v6683_v61 = vunpack.c.l.s8.bf16 %v3661_v58  ;;  %v6687_v3 = vunpack.c.h.s8.bf16 %v3661_v58  ;;  %v3754_v58 = vld [vmem:[%s7698_s23 + $0x378] sm:$0xff] }
 0x475   : > { %v6811_v62 = vunpack.c.l.s8.bf16 %v3663_v60  ;;  %v6815_v6 = vunpack.c.h.s8.bf16 %v3663_v60 }
 0x477   : > { %6520 = vmatpush1.bf16.msra.mxu0 %v6519_v63  ;;  %6648 = vmatpush1.bf16.msra.mxu1 %v6647_v0  ;;  %v6813_v0 = vunpack.c.h.s8.bf16 %v3691_v53 }
 0x478   : > { %6522 = vmatprep.subr.bf16.mxu0 %v6521_v1  ;;  %6650 = vmatprep.subr.bf16.mxu1 %v6649_v2  ;;  %v3669_v1 = vld [vmem:[%s7698_s23 + $0xd0] sm:$0xff]  ;;  %v3698_v2 = vld [vmem:[%s7698_s23 + $0x1b8] sm:$0xff] }
 0x47b   : > { %6524 = vmatpush1.bf16.msra.mxu0 %v6523_v7  ;;  %6652 = vmatpush1.bf16.msra.mxu1 %v6651_v8  ;;  %v6689_v7 = vunpack.c.l.s8.bf16 %v3669_v1  ;;  %v3668_v8 = vld [vmem:[%s7698_s23 + $0xc8] sm:$0xff] }
 0x47c   : > { %6526 = vmatprep.subr.bf16.mxu0 %v6525_v9  ;;  %6654 = vmatprep.subr.bf16.mxu1 %v6653_v10  ;;  %v6817_v9 = vunpack.c.l.s8.bf16 %v3698_v2  ;;  %v3670_v10 = vld [vmem:[%s7698_s23 + $0xd8] sm:$0xff]  ;;  %v6691_v11 = vunpack.c.l.s8.bf16 %v3668_v8  ;;  %v6695_v17 = vunpack.c.h.s8.bf16 %v3668_v8 }
 0x47d   : > { %v6819_v12 = vunpack.c.l.s8.bf16 %v3670_v10  ;;  %v6823_v18 = vunpack.c.h.s8.bf16 %v3670_v10 }
 0x47f   : > { %6528 = vmatpush1.bf16.msra.mxu0 %v6527_v13  ;;  %6656 = vmatpush1.bf16.msra.mxu1 %v6655_v14  ;;  %v6693_v13 = vunpack.c.h.s8.bf16 %v3669_v1  ;;  %v6821_v14 = vunpack.c.h.s8.bf16 %v3698_v2 }
 0x480   : > { %6530 = vmatprep.subr.bf16.mxu0 %v6529_v15  ;;  %6658 = vmatprep.subr.bf16.mxu1 %v6657_v16  ;;  %v3676_v15 = vld [vmem:[%s7698_s23 + $0x108] sm:$0xff]  ;;  %v3733_v16 = vld [vmem:[%s7698_s23 + $0x2d0] sm:$0xff] }
 0x483   : > { %6532 = vmatpush1.bf16.msra.mxu0 %v6531_v19  ;;  %6660 = vmatpush1.bf16.msra.mxu1 %v6659_v20  ;;  %v6697_v19 = vunpack.c.l.s8.bf16 %v3676_v15  ;;  %v3675_v20 = vld [vmem:[%s7698_s23 + $0x100] sm:$0xff] }
 0x484   : > { %6534 = vmatprep.subr.bf16.mxu0 %v6533_v21  ;;  %6662 = vmatprep.subr.bf16.mxu1 %v6661_v22  ;;  %v6825_v21 = vunpack.c.l.s8.bf16 %v3733_v16  ;;  %v3705_v22 = vld [vmem:[%s7698_s23 + $0x1f0] sm:$0xff]  ;;  %v6699_v23 = vunpack.c.l.s8.bf16 %v3675_v20  ;;  %v6703_v36 = vunpack.c.h.s8.bf16 %v3675_v20  ;;  %v3718_v20 = vld [vmem:[%s7698_s23 + $0x258] sm:$0xff] }
 0x485   : > { %v6827_v24 = vunpack.c.l.s8.bf16 %v3705_v22  ;;  %v6831_v29 = vunpack.c.h.s8.bf16 %v3705_v22  ;;  %v3717_v22 = vld [vmem:[%s7698_s23 + $0x250] sm:$0xff] }
 0x487   : > { %6536 = vmatpush1.bf16.msra.mxu0 %v6535_v25  ;;  %6664 = vmatpush1.bf16.msra.mxu1 %v6663_v31  ;;  %v6701_v25 = vunpack.c.h.s8.bf16 %v3676_v15  ;;  %v6829_v31 = vunpack.c.h.s8.bf16 %v3733_v16 }
 0x488   : > { %6666 = vmatprep.subr.bf16.mxu0 %v6665_v34  ;;  %6794 = vmatprep.subr.bf16.mxu1 %v6793_v35  ;;  %v3683_v34 = vld [vmem:[%s7698_s23 + $0x140] sm:$0xff]  ;;  %v3740_v35 = vld [vmem:[%s7698_s23 + $0x308] sm:$0xff] }
 0x48a   : > { %4794 = vmatmul.mubr.f32.vlgmr.msra.gmra.mrb[2].mxu0 %v8028_v32  ;;  %4936 = vmatmul.mubr.f32.vlgmr.msra.gmra.mrb[2].mxu1 %v8028_v32 }
 0x48b   : > { %6668 = vmatpush1.bf16.msra.mxu0 %v6667_v30  ;;  %5006 = vmatprep.mubr.f32.mxu0 %v7983_v49  ;;  %v6705_v30 = vunpack.c.l.s8.bf16 %v3683_v34 }
 0x48c   : > { %6796 = vmatpush3.bf16.msra.mxu1 %v6795_v33  ;;  %5148 = vmatprep.mubr.f32.mxu1 %v7983_v49  ;;  %v3662_v49 = vld [vmem:[%s7698_s23 + $0x98] sm:$0xff] }
 0x48d   : > { %6670 = vmatprep.subr.bf16.mxu0 %v6669_v37  ;;  %6798 = vmatprep.subr.bf16.mxu1 %v6797_v38  ;;  %v6681_v56 = vunpack.c.l.s8.bf16 %v3662_v49  ;;  %v6685_v63 = vunpack.c.h.s8.bf16 %v3662_v49  ;;  %v3682_v33 = vld [vmem:[%s7698_s23 + $0x138] sm:$0xff]  ;;  %v6833_v37 = vunpack.c.l.s8.bf16 %v3740_v35  ;;  %v3712_v38 = vld [vmem:[%s7698_s23 + $0x228] sm:$0xff] }
 0x48e   : > { %v6707_v39 = vunpack.c.l.s8.bf16 %v3682_v33  ;;  %v6835_v40 = vunpack.c.l.s8.bf16 %v3712_v38  ;;  %v6839_v46 = vunpack.c.h.s8.bf16 %v3712_v38 }
 0x48f   : > { %6672 = vmatpush1.bf16.msra.mxu0 %v6671_v41  ;;  %v6709_v41 = vunpack.c.h.s8.bf16 %v3683_v34  ;;  %v3724_v34 = vld [vmem:[%s7698_s23 + $0x288] sm:$0xff] }
 0x490   : > { %6800 = vmatpush3.bf16.msra.mxu1 %v6799_v44  ;;  %6674 = vmatprep.subr.bf16.mxu0 %v6673_v42  ;;  %v6837_v44 = vunpack.c.h.s8.bf16 %v3740_v35  ;;  %v3690_v42 = vld [vmem:[%s7698_s23 + $0x178] sm:$0xff]  ;;  %v6755_v35 = vunpack.c.l.s8.bf16 %v3724_v34 }
 0x491   : > { %6802 = vmatprep.subr.bf16.mxu1 %v6801_v45  ;;  %v6711_v45 = vunpack.c.h.s8.bf16 %v3682_v33 }
 0x493   : > { %6676 = vmatpush1.bf16.msra.mxu0 %v6675_v47  ;;  %v6713_v47 = vunpack.c.l.s8.bf16 %v3690_v42 }
 0x494   : > { %6804 = vmatpush3.bf16.msra.mxu1 %v6803_v48  ;;  %6678 = vmatprep.subr.bf16.mxu0 %v6677_v50  ;;  %v3689_v48 = vld [vmem:[%s7698_s23 + $0x170] sm:$0xff]  ;;  %v6841_v50 = vunpack.c.l.s8.bf16 %v3747_v43 }
 0x495   : > { %6806 = vmatprep.subr.bf16.mxu1 %v6805_v51  ;;  %v3719_v51 = vld [vmem:[%s7698_s23 + $0x260] sm:$0xff]  ;;  %v6715_v49 = vunpack.c.l.s8.bf16 %v3689_v48 }
 0x496   : > { %v6843_v53 = vunpack.c.l.s8.bf16 %v3719_v51  ;;  %v6847_v60 = vunpack.c.h.s8.bf16 %v3719_v51 }
 0x497   : > { %6680 = vmatpush1.bf16.msra.mxu0 %v6679_v54  ;;  %v6717_v54 = vunpack.c.h.s8.bf16 %v3690_v42  ;;  %v3738_v42 = vld [vmem:[%s7698_s23 + $0x2f8] sm:$0xff] }
 0x498   : > { %6808 = vmatpush3.bf16.msra.mxu1 %v6807_v55  ;;  %6682 = vmatprep.subr.bf16.mxu0 %v6681_v56  ;;  %v6845_v55 = vunpack.c.h.s8.bf16 %v3747_v43  ;;  %v3697_v56 = vld [vmem:[%s7698_s23 + $0x1b0] sm:$0xff]  ;;  %v6771_v43 = vunpack.c.l.s8.bf16 %v3738_v42 }
 0x499   : > { %6810 = vmatprep.subr.bf16.mxu1 %v6809_v59  ;;  %v6719_v59 = vunpack.c.h.s8.bf16 %v3689_v48 }
 0x49b   : > { %6684 = vmatpush1.bf16.msra.mxu0 %v6683_v61  ;;  %v6721_v61 = vunpack.c.l.s8.bf16 %v3697_v56 }
 0x49c   : > { %6812 = vmatpush3.bf16.msra.mxu1 %v6811_v62  ;;  %6686 = vmatprep.subr.bf16.mxu0 %v6685_v63  ;;  %v3696_v62 = vld [vmem:[%s7698_s23 + $0x1a8] sm:$0xff]  ;;  %v6849_v63 = vunpack.c.l.s8.bf16 %v3754_v58 }
 0x49d   : > { %6814 = vmatprep.subr.bf16.mxu1 %v6813_v0  ;;  %v3726_v0 = vld [vmem:[%s7698_s23 + $0x298] sm:$0xff]  ;;  %v6723_v1 = vunpack.c.l.s8.bf16 %v3696_v62  ;;  %v6727_v8 = vunpack.c.h.s8.bf16 %v3696_v62 }
 0x49e   : > { %v6851_v2 = vunpack.c.l.s8.bf16 %v3726_v0  ;;  %v4653_v62 = vld [vmem:[#allocation3 + $0x10] sm:$0xff] }
 0x49f   : > { %6688 = vmatpush1.bf16.msra.mxu0 %v6687_v3  ;;  %v6725_v3 = vunpack.c.h.s8.bf16 %v3697_v56  ;;  %v3752_v56 = vld [vmem:[%s7698_s23 + $0x368] sm:$0xff] }
 0x4a0   : > { %6816 = vmatpush3.bf16.msra.mxu1 %v6815_v6  ;;  %6690 = vmatprep.subr.bf16.mxu0 %v6689_v7  ;;  %v6853_v6 = vunpack.c.h.s8.bf16 %v3754_v58  ;;  %v3704_v7 = vld [vmem:[%s7698_s23 + $0x1e8] sm:$0xff]  ;;  %v6787_v58 = vunpack.c.l.s8.bf16 %v3752_v56 }
 0x4a1   : > { %6818 = vmatprep.subr.bf16.mxu1 %v6817_v9  ;;  %v6855_v9 = vunpack.c.h.s8.bf16 %v3726_v0  ;;  %v6729_v10 = vunpack.c.l.s8.bf16 %v3704_v7  ;;  %v4654_v0 = vld [vmem:[#allocation3 + $0x18] sm:$0xff] }
 0x4a3   : > { %6692 = vmatpush1.bf16.msra.mxu0 %v6691_v11  ;;  %v3703_v11 = vld [vmem:[%s7698_s23 + $0x1e0] sm:$0xff] }
 0x4a4   : > { %6820 = vmatpush3.bf16.msra.mxu1 %v6819_v12  ;;  %6694 = vmatprep.subr.bf16.mxu0 %v6693_v13  ;;  %v6731_v12 = vunpack.c.l.s8.bf16 %v3703_v11  ;;  %v6733_v13 = vunpack.c.h.s8.bf16 %v3704_v7  ;;  %v6735_v15 = vunpack.c.h.s8.bf16 %v3703_v11 }
 0x4a5   : > { %6822 = vmatprep.subr.bf16.mxu1 %v6821_v14  ;;  %v3711_v14 = vld [vmem:[%s7698_s23 + $0x220] sm:$0xff] }
 0x4a6   : > { %v6737_v16 = vunpack.c.l.s8.bf16 %v3711_v14 }
 0x4a7   : > { %6696 = vmatpush1.bf16.msra.mxu0 %v6695_v17  ;;  %v3710_v17 = vld [vmem:[%s7698_s23 + $0x218] sm:$0xff] }
 0x4a8   : > { %6824 = vmatpush3.bf16.msra.mxu1 %v6823_v18  ;;  %6698 = vmatprep.subr.bf16.mxu0 %v6697_v19  ;;  %v6739_v18 = vunpack.c.l.s8.bf16 %v3710_v17  ;;  %v6741_v19 = vunpack.c.h.s8.bf16 %v3711_v14 }
 0x4a9   : > { %6826 = vmatprep.subr.bf16.mxu1 %v6825_v21  ;;  %v6743_v21 = vunpack.c.h.s8.bf16 %v3710_v17 }
 0x4ab   : > { %5149 = vmatmul.mubr.f32.vlgmr.msra.gmra.mrb[4].mxu1 %v7985_v52  ;;  %6700 = vmatpush1.bf16.msra.mxu0 %v6699_v23  ;;  %v6747_v23 = vunpack.c.l.s8.bf16 %v3717_v22 }
 0x4ac   : > { %6828 = vmatpush3.bf16.msra.mxu1 %v6827_v24  ;;  %5218 = vmatprep.mubr.f32.mxu1 %v7991_v57  ;;  %v3725_v24 = vld [vmem:[%s7698_s23 + $0x290] sm:$0xff] }
 0x4ad   : > { %6702 = vmatprep.subr.bf16.mxu0 %v6701_v25  ;;  %6830 = vmatprep.subr.bf16.mxu1 %v6829_v31  ;;  %v6751_v25 = vunpack.c.h.s8.bf16 %v3717_v22  ;;  %v6753_v31 = vunpack.c.l.s8.bf16 %v3725_v24 }
 0x4af   : > { %6704 = vmatpush1.bf16.msra.mxu0 %v6703_v36  ;;  %v6757_v36 = vunpack.c.h.s8.bf16 %v3725_v24  ;;  %v5249_v24 = vld [vmem:[#allocation12] sm:$0xff] (!%p5565_p11) }
 0x4b0   : > { %6832 = vmatpush3.bf16.msra.mxu1 %v6831_v29  ;;  %6706 = vmatprep.subr.bf16.mxu0 %v6705_v30  ;;  %v3732_v29 = vld [vmem:[%s7698_s23 + $0x2c8] sm:$0xff]  ;;  %v6759_v30 = vunpack.c.h.s8.bf16 %v3724_v34  ;;  %v5273_v34 = vsub.s32 (!%p5565_p11), 5, %v7949_v4 }
 0x4b1   : > { %6834 = vmatprep.subr.bf16.mxu1 %v6833_v37  ;;  %v6761_v33 = vunpack.c.l.s8.bf16 %v3732_v29  ;;  %v3731_v37 = vld [vmem:[%s7698_s23 + $0x2c0] sm:$0xff] }
 0x4b2   : > { %v6763_v38 = vunpack.c.l.s8.bf16 %v3731_v37 }
 0x4b3   : > { %6708 = vmatpush1.bf16.msra.mxu0 %v6707_v39  ;;  %v6765_v39 = vunpack.c.h.s8.bf16 %v3732_v29 }
 0x4b4   : > { %6836 = vmatpush3.bf16.msra.mxu1 %v6835_v40  ;;  %6710 = vmatprep.subr.bf16.mxu0 %v6709_v41  ;;  %v3739_v40 = vld [vmem:[%s7698_s23 + $0x300] sm:$0xff]  ;;  %v6767_v41 = vunpack.c.h.s8.bf16 %v3731_v37 }
 0x4b5   : > { %6838 = vmatprep.subr.bf16.mxu1 %v6837_v44  ;;  %v6769_v44 = vunpack.c.l.s8.bf16 %v3739_v40 }
 0x4b7   : > { %6712 = vmatpush1.bf16.msra.mxu0 %v6711_v45  ;;  %v6773_v45 = vunpack.c.h.s8.bf16 %v3739_v40  ;;  %v5262_v40 = vrot.slane (!%p5565_p11), %v5249_v24, %v7952_v5 }
 0x4b8   : > { %6840 = vmatpush3.bf16.msra.mxu1 %v6839_v46  ;;  %6714 = vmatprep.subr.bf16.mxu0 %v6713_v47  ;;  %v3746_v46 = vld [vmem:[%s7698_s23 + $0x338] sm:$0xff]  ;;  %v6775_v47 = vunpack.c.h.s8.bf16 %v3738_v42 }
 0x4b9   : > { %6842 = vmatprep.subr.bf16.mxu1 %v6841_v50  ;;  %v6777_v48 = vunpack.c.l.s8.bf16 %v3746_v46  ;;  %v3745_v50 = vld [vmem:[%s7698_s23 + $0x330] sm:$0xff] }
 0x4ba   : > { %v6779_v51 = vunpack.c.l.s8.bf16 %v3745_v50 }
 0x4bb   : > { %6716 = vmatpush1.bf16.msra.mxu0 %v6715_v49  ;;  %v6781_v49 = vunpack.c.h.s8.bf16 %v3746_v46 }
 0x4bc   : > { %6844 = vmatpush3.bf16.msra.mxu1 %v6843_v53  ;;  %6718 = vmatprep.subr.bf16.mxu0 %v6717_v54  ;;  %v3753_v53 = vld [vmem:[%s7698_s23 + $0x370] sm:$0xff]  ;;  %v6783_v54 = vunpack.c.h.s8.bf16 %v3745_v50 }
 0x4bd   : > { %6846 = vmatprep.subr.bf16.mxu1 %v6845_v55  ;;  %v6785_v55 = vunpack.c.l.s8.bf16 %v3753_v53 }
 0x4bf   : > { %6720 = vmatpush1.bf16.msra.mxu0 %v6719_v59  ;;  %v6789_v59 = vunpack.c.h.s8.bf16 %v3753_v53 }
 0x4c0   : > { %6848 = vmatpush3.bf16.msra.mxu1 %v6847_v60  ;;  %6722 = vmatprep.subr.bf16.mxu0 %v6721_v61  ;;  %v6791_v60 = vunpack.c.h.s8.bf16 %v3752_v56  ;;  %v4651_v61 = vld [vmem:[#allocation3] sm:$0xff] }
 0x4c1   : > { %6850 = vmatprep.subr.bf16.mxu1 %v6849_v63  ;;  %v4652_v63 = vld [vmem:[#allocation3 + $0x8] sm:$0xff] }
 0x4c3   : > { %6724 = vmatpush1.bf16.msra.mxu0 %v6723_v1 }
 0x4c4   : > { %6852 = vmatpush3.bf16.msra.mxu1 %v6851_v2  ;;  %6726 = vmatprep.subr.bf16.mxu0 %v6725_v3 }
 0x4c5   : > { %6854 = vmatprep.subr.bf16.mxu1 %v6853_v6 }
 0x4c7   : > { %6728 = vmatpush1.bf16.msra.mxu0 %v6727_v8 }
 0x4c8   : > { %6856 = vmatpush3.bf16.msra.mxu1 %v6855_v9  ;;  %6730 = vmatprep.subr.bf16.mxu0 %v6729_v10 }
 0x4ca   : > { %5007 = vmatmul.mubr.f32.vlgmr.msra.gmra.mrb[4].mxu0 %v7985_v52  ;;  %v6745_v52 = vunpack.c.l.s8.bf16 %v3718_v20 }
 0x4cb   : > { %5219 = vmatmul.mubr.f32.vlgmr.msra.gmra.mrb[6].mxu1 %v8028_v32  ;;  %6732 = vmatpush1.bf16.msra.mxu0 %v6731_v12 }
 0x4cc   : > { %5077 = vmatprep.mubr.f32.mxu0 %v7991_v57  ;;  %6734 = vmatprep.subr.bf16.mxu0 %v6733_v13  ;;  %v6749_v57 = vunpack.c.h.s8.bf16 %v3718_v20  ;;  %v4656_v20 = vld [vmem:[#allocation3 + $0x28] sm:$0xff] }
 0x4cf   : > { %6736 = vmatpush1.bf16.msra.mxu0 %v6735_v15 }
 0x4d0   : > { %6738 = vmatprep.subr.bf16.mxu0 %v6737_v16  ;;  %v4657_v16 = vld [vmem:[#allocation3 + $0x30] sm:$0xff] }
 0x4d3   : > { %6740 = vmatpush1.bf16.msra.mxu0 %v6739_v18 }
 0x4d4   : > { %6742 = vmatprep.subr.bf16.mxu0 %v6741_v19  ;;  %v4655_v19 = vld [vmem:[#allocation3 + $0x20] sm:$0xff] }
 0x4d7   : > { %6744 = vmatpush1.bf16.msra.mxu0 %v6743_v21 }
 0x4d8   : > { %6746 = vmatprep.subr.bf16.mxu0 %v6745_v52 }
 0x4db   : > { %6748 = vmatpush1.bf16.msra.mxu0 %v6747_v23 }
 0x4dc   : > { %6750 = vmatprep.subr.bf16.mxu0 %v6749_v57 }
 0x4df   : > { %6752 = vmatpush1.bf16.msra.mxu0 %v6751_v25  ;;  %v5293_v25 = vld [vmem:[#allocation13] sm:$0xff] (!%p5565_p11) }
 0x4e0   : > { %6754 = vmatprep.subr.bf16.mxu0 %v6753_v31  ;;  %v5269_v31 = vsub.s32 (!%p5565_p11), 4, %v7949_v4  ;;  %v5298_v29 = vrot.slane (!%p5565_p11), %v5293_v25, %v7965_v26  ;;  %v5302_v37 = vrot.slane (!%p5565_p11), %v5293_v25, %v7968_v27  ;;  %v5310_v42 = vrot.slane (!%p5565_p11), %v5293_v25, %v7971_v28 }
 0x4e2   : > { %v5270_v46 = vrot.slane (!%p5565_p11), %v5249_v24, %v5269_v31 }
 0x4e3   : > { %6756 = vmatpush1.bf16.msra.mxu0 %v6755_v35  ;;  %v5277_v35 = vsub.s32 (!%p5565_p11), 6, %v7949_v4 }
 0x4e4   : > { %6758 = vmatprep.subr.bf16.mxu0 %v6757_v36  ;;  %v5254_v36 = vrot.slane (!%p5565_p11), %v5249_v24, %v7965_v26  ;;  %v5314_v26 = vrot.slane (!%p5565_p11), %v5293_v25, %v5269_v31 }
 0x4e5   : > { %v5278_v56 = vrot.slane (!%p5565_p11), %v5249_v24, %v5277_v35 }
 0x4e7   : > { %6760 = vmatpush1.bf16.msra.mxu0 %v6759_v30 }
 0x4e8   : > { %6762 = vmatprep.subr.bf16.mxu0 %v6761_v33  ;;  %v5258_v33 = vrot.slane (!%p5565_p11), %v5249_v24, %v7968_v27  ;;  %v5318_v27 = vrot.slane (!%p5565_p11), %v5293_v25, %v5273_v34 }
 0x4eb   : > { %6764 = vmatpush1.bf16.msra.mxu0 %v6763_v38 }
 0x4ec   : > { %6766 = vmatprep.subr.bf16.mxu0 %v6765_v39 }
 0x4ef   : > { %6768 = vmatpush1.bf16.msra.mxu0 %v6767_v41  ;;  %v5306_v41 = vrot.slane (!%p5565_p11), %v5293_v25, %v7952_v5 }
 0x4f0   : > { %6770 = vmatprep.subr.bf16.mxu0 %v6769_v44  ;;  %v5266_v44 = vrot.slane (!%p5565_p11), %v5249_v24, %v7971_v28 }
 0x4f3   : > { %6772 = vmatpush1.bf16.msra.mxu0 %v6771_v43 }
 0x4f4   : > { %6774 = vmatprep.subr.bf16.mxu0 %v6773_v45 }
 0x4f7   : > { %6776 = vmatpush1.bf16.msra.mxu0 %v6775_v47 }
 0x4f8   : > { %6778 = vmatprep.subr.bf16.mxu0 %v6777_v48 }
 0x4fb   : > { %6780 = vmatpush1.bf16.msra.mxu0 %v6779_v51  ;;  %v5274_v51 = vrot.slane (!%p5565_p11), %v5249_v24, %v5273_v34 }
 0x4fc   : > { %6782 = vmatprep.subr.bf16.mxu0 %v6781_v49 }
 0x4ff   : > { %6784 = vmatpush1.bf16.msra.mxu0 %v6783_v54 }
 0x500   : > { %6786 = vmatprep.subr.bf16.mxu0 %v6785_v55 }
 0x503   : > { %6788 = vmatpush1.bf16.msra.mxu0 %v6787_v58 }
 0x504   : > { %6790 = vmatprep.subr.bf16.mxu0 %v6789_v59 }
 0x507   : > { %6792 = vmatpush1.bf16.msra.mxu0 %v6791_v60  ;;  %v5322_v60 = vrot.slane (!%p5565_p11), %v5293_v25, %v5277_v35 }
 0x50a   : > { %5078 = vmatmul.mubr.f32.vlgmr.msra.gmra.mrb[4].mxu0 %v8028_v32 }
 0x55d   : > { %v4795_v1 = vpop.f32.mrb[2].mxu0  ;;  %v4937_v2 = vpop.f32.mrb[2].mxu1 }
 0x55e   : > { %v5224_v3 = vadd.f32 %v4795_v1, %v4651_v61  ;;  %v5226_v6 = vadd.f32 %v4937_v2, %v4653_v62  ;;  %v4797_v7 = vpop.f32.mrb[3].mxu0  ;;  %v4939_v8 = vpop.f32.mrb[3].mxu1 }
 0x55f   : > { %v5225_v9 = vadd.f32 %v4797_v7, %v4652_v63  ;;  %v5227_v10 = vadd.f32 %v4939_v8, %v4654_v0 }
 0x560   : > { %5231 = vst [vmem:[#allocation3] sm:$0xff] %v5224_v3  ;;  %5233 = vst [vmem:[#allocation3 + $0x10] sm:$0xff] %v5226_v6 }
 0x561   : > { %5232 = vst [vmem:[#allocation3 + $0x8] sm:$0xff] %v5225_v9  ;;  %5234 = vst [vmem:[#allocation3 + $0x18] sm:$0xff] %v5227_v10 }
 0x567   : > { %v5242_v57 = vld [vmem:[#allocation3] sm:$0xff] (!%p5565_p11)  ;;  %v5244_v38 = vld [vmem:[#allocation3 + $0x10] sm:$0xff] (!%p5565_p11) }
 0x568   : > { %v5243_v30 = vld [vmem:[#allocation3 + $0x8] sm:$0xff] (!%p5565_p11)  ;;  %v5245_v39 = vld [vmem:[#allocation3 + $0x18] sm:$0xff] (!%p5565_p11)  ;;  %v5286_v43 = vmul.f32 (!%p5565_p11), %v5254_v36, %v5242_v57  ;;  %v5288_v48 = vmul.f32 (!%p5565_p11), %v5262_v40, %v5244_v38 }
 0x569   : > { %v5287_v45 = vmul.f32 (!%p5565_p11), %v5258_v33, %v5243_v30  ;;  %v5289_v50 = vmul.f32 (!%p5565_p11), %v5266_v44, %v5245_v39 }
 0x56a   : > { %v5330_v53 = vadd.f32 (!%p5565_p11), %v5298_v29, %v5286_v43  ;;  %v5332_v5 = vadd.f32 (!%p5565_p11), %v5306_v41, %v5288_v48 }
 0x56b   : > { %v5331_v54 = vadd.f32 (!%p5565_p11), %v5302_v37, %v5287_v45  ;;  %v5333_v58 = vadd.f32 (!%p5565_p11), %v5310_v42, %v5289_v50 }
 0x56c   : > { %v5337_v28 = vmul.f32 (!%p5565_p11), 0.5, %v5330_v53  ;;  %v5339_v0 = vmul.f32 (!%p5565_p11), 0.5, %v5332_v5 }
 0x56d   : > { %v5338_v61 = vmul.f32 (!%p5565_p11), 0.5, %v5331_v54  ;;  %v5340_v1 = vmul.f32 (!%p5565_p11), 0.5, %v5333_v58 }
 0x56e   : > { %7028 = vtanh.f32 (!%p5565_p11), %v5337_v28 }
 0x56f   : > { %7030 = vtanh.f32 (!%p5565_p11), %v5338_v61 }
 0x570   : > { %7032 = vtanh.f32 (!%p5565_p11), %v5339_v0 }
 0x571   : > { %7034 = vtanh.f32 (!%p5565_p11), %v5340_v1 }
 0x578   : > { %v7029_v9 = vpop.eup (!%p5565_p11), %7028 }
 0x579   : > { %v7031_v10 = vpop.eup (!%p5565_p11), %7030 }
 0x57e   : > { %v5603_v11 = vpop.f32.mrb[4].mxu1 }
 0x57f   : > { %v5604_v12 = vpop.f32.mrb[5].mxu1 }
 0x580   : > { %v5605_v13 = vadd.f32 %v5604_v12, %v5603_v11  ;;  %v5351_v11 = vadd.f32 (!%p5565_p11), 1.0, %v7029_v9  ;;  %v7033_v12 = vpop.eup (!%p5565_p11), %7032 }
 0x59e   : > { %v5638_v32 = vpop.f32.mrb[6].mxu1 }
 0x59f   : > { %v5639_v14 = vpop.f32.mrb[7].mxu1 }
 0x5a0   : > { %v5640_v15 = vadd.f32 %v5639_v14, %v5638_v32  ;;  %v7035_v32 = vpop.eup (!%p5565_p11), %7034  ;;  %v5358_v14 = vmul.f32 (!%p5565_p11), 0.5, %v5351_v11 }
 0x5a2   : > { %v5221_v17 = vadd.f32 %v5640_v15, %v5605_v13  ;;  %v5352_v13 = vadd.f32 (!%p5565_p11), 1.0, %v7031_v10  ;;  %v5353_v15 = vadd.f32 (!%p5565_p11), 1.0, %v7033_v12  ;;  %5365 = vst [vmem:[%s8194_s0] sm:$0xff] (!%p5565_p11), %v5358_v14 }
 0x5a4   : > { %v5230_v18 = vadd.f32 %v5221_v17, %v4657_v16  ;;  %v5359_v17 = vmul.f32 (!%p5565_p11), 0.5, %v5352_v13 }
 0x5a6   : > { %5237 = vst [vmem:[#allocation3 + $0x30] sm:$0xff] %v5230_v18  ;;  %v5354_v18 = vadd.f32 (!%p5565_p11), 1.0, %v7035_v32  ;;  %5366 = vst [vmem:[%s8194_s0 + $0x8] sm:$0xff] (!%p5565_p11), %v5359_v17 }
 0x5ad   : > { %v5248_v49 = vld [vmem:[#allocation3 + $0x30] sm:$0xff] (!%p5565_p11) }
 0x5ae   : > { %v5292_v63 = vmul.f32 (!%p5565_p11), %v5278_v56, %v5248_v49 }
 0x5b0   : > { %v5336_v6 = vadd.f32 (!%p5565_p11), %v5322_v60, %v5292_v63 }
 0x5b2   : > { %v5343_v8 = vmul.f32 (!%p5565_p11), 0.5, %v5336_v6 }
 0x5db   : > { %5241 = sbr.rel (%p5565_p11) target bundleno = 1536 (0x600), region = 96 }
 0x5dd   : > { %v5079_v21 = vpop.f32.mrb[4].mxu0 }
 0x5de   : > { %v5228_v52 = vadd.f32 %v5079_v21, %v4655_v19  ;;  %v5081_v22 = vpop.f32.mrb[5].mxu0 }
 0x5df   : > { %v5229_v23 = vadd.f32 %v5081_v22, %v4656_v20  ;;  %v5360_v20 = vmul.f32 (!%p5565_p11), 0.5, %v5353_v15  ;;  %v5361_v22 = vmul.f32 (!%p5565_p11), 0.5, %v5354_v18 }
 0x5e0   : > { %5235 = vst [vmem:[#allocation3 + $0x20] sm:$0xff] %v5228_v52 }
 0x5e1   : > { %5236 = vst [vmem:[#allocation3 + $0x28] sm:$0xff] %v5229_v23  ;;  %5367 = vst [vmem:[%s8194_s0 + $0x10] sm:$0xff] (!%p5565_p11), %v5360_v20 }
 0x5e2   : > { %5368 = vst [vmem:[%s8194_s0 + $0x18] sm:$0xff] %v5361_v22 }
 0x5e7   : > { %v5246_v4 = vld [vmem:[#allocation3 + $0x20] sm:$0xff] }
 0x5e8   : > { %v5247_v47 = vld [vmem:[#allocation3 + $0x28] sm:$0xff]  ;;  %v5290_v55 = vmul.f32 %v5270_v46, %v5246_v4 }
 0x5e9   : > { %v5291_v59 = vmul.f32 %v5274_v51, %v5247_v47 }
 0x5ea   : > { %v5334_v62 = vadd.f32 %v5314_v26, %v5290_v55 }
 0x5eb   : > { %v5335_v2 = vadd.f32 %v5318_v27, %v5291_v59 }
 0x5ec   : > { %v5341_v3 = vmul.f32 0.5, %v5334_v62 }
 0x5ed   : > { %v5342_v7 = vmul.f32 0.5, %v5335_v2 }
 0x5ee   : > { %7036 = vtanh.f32 %v5341_v3 }
 0x5ef   : > { %7038 = vtanh.f32 %v5342_v7 }
 0x5f0   : > { %7040 = vtanh.f32 %v5343_v8 }
 0x5f8   : > { %v7037_v16 = vpop.eup %7036 }
 0x5f9   : > { %v7039_v19 = vpop.eup %7038  ;;  %v5355_v21 = vadd.f32 1.0, %v7037_v16 }
 0x5fa   : > { %v7041_v52 = vpop.eup %7040  ;;  %v5356_v23 = vadd.f32 1.0, %v7039_v19 }
 0x5fb   : > { %v5362_v57 = vmul.f32 0.5, %v5355_v21  ;;  %v5357_v24 = vadd.f32 1.0, %v7041_v52 }
 0x5fc   : > { %v5363_v25 = vmul.f32 0.5, %v5356_v23 }
 0x5fd   : > { %5369 = vst [vmem:[%s8194_s0 + $0x20] sm:$0xff] %v5362_v57  ;;  %v5364_v31 = vmul.f32 0.5, %v5357_v24 }
 0x5fe   : > { %5370 = vst [vmem:[%s8194_s0 + $0x28] sm:$0xff] %v5363_v25 }
 0x5ff   : > { %5371 = vst [vmem:[%s8194_s0 + $0x30] sm:$0xff] %v5364_v31 }
 0x600 PF: > { %s8195_s12 = sld [smem:[#allocation21_spill]]  ;;  %s8196_s16 = sld [smem:[#allocation20_spill]] }
 0x601   : > { %s8197_s11 = sld [smem:[#allocation22_spill]]  ;;  %s8198_s30 = smov %s7316_s10 }
 0x606   : > { %p19_p10 = scmp.ge.s32.totalorder %s8195_s12, 6   ;;  %s8199_s10 = smov %s8196_s16 }
 0x608   :  { %21 = sbr.rel (!%p19_p10) target bundleno = 7 (0x7), region = 148 }
 0x60f   :  { %5383 = vsyncpa [#allocation5], 1 }
 0x610   :  { %5385 = vsyncpa [#allocation5 + $0x1], 1 }
 0x611   :  { %5386 = vsyncpa [#allocation7], 1 }
 0x612   :  { %5387 = vsyncpa [#allocation14], 1 }

</bundles_post_ra>
